<compile_context>
chip_gen: v7x
topology: tpu7x:2x2x1
jax: 0.10.0
libtpu: 0.0.40
codegen_flags: <defaults>
</compile_context>

<pallas_src>
import functools

import jax
import jax.numpy as jnp
from jax import lax
from jax.experimental import pallas as pl
from jax.experimental.pallas import tpu as pltpu

LANE = 128


def _round_up(x, m):
    return ((x + m - 1) // m) * m


def _pick_row_tile(H):
    """Row-strip height: 8..32 rows, dividing H, with >=2 strips when possible."""
    for t in (32, 16, 8):
        if H % t == 0 and H // t >= 2:
            return t
    return H


def _bottleneck_kernel(xp_ref, w1_ref, b1_ref, w2_ref, b2_ref, o_ref, y1p_ref, *, add):
    # xp_ref : (1, H+4, W+2, c1p) bf16   whole zero-padded image (fetched once per image)
    # w1_ref : (9, c1p, c_p) bf16        BN-fused cv1 weights, tap-major (dy*3+dx)
    # b1_ref : (1, c_p) f32
    # w2_ref : (9, c_p, c2p) bf16        BN-fused cv2 weights
    # b2_ref : (1, c2p) f32
    # o_ref  : (1, th, W, c2p) f32       one output row strip
    # y1p_ref: VMEM (th+2, W+2, c_p) bf16  zero-bordered intermediate activation strip
    i = pl.program_id(1)
    n_row = pl.num_programs(1)
    _, th, W, c2p = o_ref.shape
    c1p = xp_ref.shape[-1]
    c_p = w1_ref.shape[-1]

    # Strip covering output rows [i*th, i*th+th) plus the 2-row halo of two stacked 3x3 convs.
    row0 = pl.multiple_of(i * th, th)
    xs = xp_ref[0, pl.ds(row0, th + 4), :, :]                     # (th+4, W+2, c1p) bf16

    # ---- cv1: 3x3 conv as 9 tap-accumulated MXU matmuls (K = c1p), f32 accumulate ----
    acc1 = None
    for k in range(9):
        dy, dx = divmod(k, 3)
        tap = xs[dy:dy + th + 2, dx:dx + W, :].reshape((th + 2) * W, c1p)
        d = jnp.dot(tap, w1_ref[k], preferred_element_type=jnp.float32)
        acc1 = d if acc1 is None else acc1 + d
    acc1 = acc1 + b1_ref[...]
    y1 = acc1 * pl.reciprocal(1.0 + jnp.exp(-acc1), approx=True)  # SiLU on the EUP path

    # ---- stash bf16 intermediate with cv2's zero border; interior fully overwritten ----
    y1p_ref[:, 1:1 + W, :] = y1.reshape(th + 2, W, c_p).astype(jnp.bfloat16)
    zcol = jnp.zeros((th + 2, 1, c_p), jnp.bfloat16)
    y1p_ref[:, 0:1, :] = zcol
    y1p_ref[:, W + 1:W + 2, :] = zcol

    @pl.when(i == 0)
    def _():  # y1 row above the image does not exist -> cv2 zero padding
        y1p_ref[0:1, :, :] = jnp.zeros((1, W + 2, c_p), jnp.bfloat16)

    @pl.when(i == n_row - 1)
    def _():  # y1 row below the image
        y1p_ref[th + 1:th + 2, :, :] = jnp.zeros((1, W + 2, c_p), jnp.bfloat16)

    y1p = y1p_ref[...]                                            # (th+2, W+2, c_p) bf16

    # ---- cv2: 3x3 conv as 9 tap-accumulated matmuls (K = c_p) ----
    acc2 = None
    for k in range(9):
        dy, dx = divmod(k, 3)
        tap = y1p[dy:dy + th, dx:dx + W, :].reshape(th * W, c_p)
        d = jnp.dot(tap, w2_ref[k], preferred_element_type=jnp.float32)
        acc2 = d if acc2 is None else acc2 + d
    acc2 = acc2 + b2_ref[...]
    y2 = acc2 * pl.reciprocal(1.0 + jnp.exp(-acc2), approx=True)

    # ---- residual (shortcut and c1 == c2): reuse the resident input strip ----
    if add:
        res = xs[2:2 + th, 1:1 + W, :].astype(jnp.float32).reshape(th * W, c1p)
        y2 = y2 + res

    o_ref[...] = y2.reshape(1, th, W, c2p)


def bottleneck_att_forward(x_nchw, params, *, shortcut=True):
    """x_nchw: (N, c1, H, W) float32. Returns (N, c2, H, W) float32."""
    w1, b1, w2, b2 = params["w1"], params["b1"], params["w2"], params["b2"]
    c2 = params["c2"]
    N, c1, H, W = x_nchw.shape
    _, c1p, c_p = w1.shape
    c2p = w2.shape[-1]
    add = bool(shortcut and (c1 == c2))

    th = _pick_row_tile(H)
    n_row = H // th

    # NCHW -> NHWC, bf16 input stream, 2-row / 1-col zero halo + lane-dense channel pad.
    x = jnp.transpose(x_nchw, (0, 2, 3, 1)).astype(jnp.bfloat16)
    xp = jnp.pad(x, ((0, 0), (2, 2), (1, 1), (0, c1p - c1)))

    kernel = functools.partial(_bottleneck_kernel, add=add)

    out = pl.pallas_call(
        kernel,
        out_shape=jax.ShapeDtypeStruct((N, H, W, c2p), jnp.float32),
        grid_spec=pltpu.PrefetchScalarGridSpec(
            num_scalar_prefetch=0,
            grid=(N, n_row),
            in_specs=[
                # whole padded image per n; block index constant over i -> one DMA per image
                pl.BlockSpec((1, H + 4, W + 2, c1p), lambda n, i: (n, 0, 0, 0)),
                pl.BlockSpec((9, c1p, c_p), lambda n, i: (0, 0, 0)),
                pl.BlockSpec((1, c_p), lambda n, i: (0, 0)),
                pl.BlockSpec((9, c_p, c2p), lambda n, i: (0, 0, 0)),
                pl.BlockSpec((1, c2p), lambda n, i: (0, 0)),
            ],
            out_specs=pl.BlockSpec((1, th, W, c2p), lambda n, i: (n, i, 0, 0)),
            scratch_shapes=[pltpu.VMEM((th + 2, W + 2, c_p), jnp.bfloat16)],
        ),
        compiler_params=pltpu.CompilerParams(
            dimension_semantics=("parallel", "parallel"),
            vmem_limit_bytes=48 * 1024 * 1024),
    )(xp, w1, b1, w2, b2)

    # drop channel padding, NHWC -> NCHW
    return jnp.transpose(out[..., :c2], (0, 3, 1, 2))


def _fuse_bn(conv_w_oihw, gamma, beta, mean, var, eps=1e-5):
    """Fold eval-mode BN into conv weights. conv_w_oihw: (Cout, Cin, kh, kw)."""
    std = jnp.sqrt(var + eps)
    t = gamma / std
    w = conv_w_oihw * t[:, None, None, None]
    b = beta - mean * t
    return w, b


def make_params(c1, c2, key, e=0.5):
    """Deterministic params mirroring Bottleneck_ATT.__init__ (g=1, k=(3,3)), BN fused, lane-padded."""
    c_ = max(1, int(c2 * e))
    ks = jax.random.split(key, 10)
    eps = 1e-5

    # cv1: Conv2d(c1, c_, 3, 1, pad=1, bias=False) + BN(c_) + SiLU
    w1_oihw = 0.2 * jax.random.normal(ks[0], (c_, c1, 3, 3), jnp.float32)
    g1 = 1.0 + 0.1 * jax.random.normal(ks[1], (c_,), jnp.float32)
    be1 = 0.1 * jax.random.normal(ks[2], (c_,), jnp.float32)
    m1 = 0.1 * jax.random.normal(ks[3], (c_,), jnp.float32)
    v1 = jnp.abs(jax.random.normal(ks[4], (c_,), jnp.float32)) + 0.5

    # cv2: Conv2d(c_, c2, 3, 1, pad=1, bias=False) + BN(c2) + SiLU
    w2_oihw = 0.2 * jax.random.normal(ks[5], (c2, c_, 3, 3), jnp.float32)
    g2 = 1.0 + 0.1 * jax.random.normal(ks[6], (c2,), jnp.float32)
    be2 = 0.1 * jax.random.normal(ks[7], (c2,), jnp.float32)
    m2 = 0.1 * jax.random.normal(ks[8], (c2,), jnp.float32)
    v2 = jnp.abs(jax.random.normal(ks[9], (c2,), jnp.float32)) + 0.5

    w1f, bias1 = _fuse_bn(w1_oihw, g1, be1, m1, v1, eps)   # (c_, c1, 3, 3), (c_,)
    w2f, bias2 = _fuse_bn(w2_oihw, g2, be2, m2, v2, eps)   # (c2, c_, 3, 3), (c2,)

    c1p, c_p, c2p = (_round_up(c, LANE) for c in (c1, c_, c2))

    # (Cout, Cin, 3, 3) -> (3, 3, Cin, Cout) -> (9, Cin, Cout); zero-pad channels to lane multiples.
    w1_taps = jnp.transpose(w1f, (2, 3, 1, 0)).reshape(9, c1, c_)
    w2_taps = jnp.transpose(w2f, (2, 3, 1, 0)).reshape(9, c_, c2)
    w1_pack = jnp.zeros((9, c1p, c_p), jnp.float32).at[:, :c1, :c_].set(w1_taps).astype(jnp.bfloat16)
    w2_pack = jnp.zeros((9, c_p, c2p), jnp.float32).at[:, :c_, :c2].set(w2_taps).astype(jnp.bfloat16)
    b1_pack = jnp.zeros((1, c_p), jnp.float32).at[0, :c_].set(bias1)
    b2_pack = jnp.zeros((1, c2p), jnp.float32).at[0, :c2].set(bias2)

    return dict(w1=w1_pack, b1=b1_pack, w2=w2_pack, b2=b2_pack, c1=c1, c_=c_, c2=c2)


def reference_forward(x_nchw, params, *, shortcut=True):
    """Pure-JAX reference (lax conv, unpadded channels, same bf16 operand convention)."""
    c1, c_, c2 = params["c1"], params["c_"], params["c2"]
    w1_hwio = params["w1"][:, :c1, :c_].reshape(3, 3, c1, c_)          # bf16
    w2_hwio = params["w2"][:, :c_, :c2].reshape(3, 3, c_, c2)          # bf16
    b1 = params["b1"][0, :c_]
    b2 = params["b2"][0, :c2]
    N, _, H, W = x_nchw.shape
    add = shortcut and (c1 == c2)

    x = jnp.transpose(x_nchw, (0, 2, 3, 1)).astype(jnp.bfloat16)        # bf16 input stream
    silu = lambda v: v * jax.nn.sigmoid(v)

    y1 = lax.conv_general_dilated(
        x, w1_hwio, (1, 1), ((1, 1), (1, 1)),
        dimension_numbers=('NHWC', 'HWIO', 'NHWC'),
        preferred_element_type=jnp.float32) + b1
    y1 = silu(y1)
    y2 = lax.conv_general_dilated(
        y1.astype(jnp.bfloat16), w2_hwio, (1, 1), ((1, 1), (1, 1)),
        dimension_numbers=('NHWC', 'HWIO', 'NHWC'),
        preferred_element_type=jnp.float32) + b2
    y2 = silu(y2)
    out = y2 + x.astype(jnp.float32) if add else y2
    return jnp.transpose(out, (0, 3, 1, 2))                              # NCHW


if __name__ == "__main__":
    key = jax.random.PRNGKey(0)
    kx, kp = jax.random.split(key)

    N, C, H, W = 2, 4, 16, 16            # c1 == c2 == 4 -> shortcut add is active
    x = jax.random.normal(kx, (N, C, H, W), jnp.float32)
    params = make_params(C, C, kp)

    out = jax.block_until_ready(bottleneck_att_forward(x, params, shortcut=True))
    ref = jax.block_until_ready(reference_forward(x, params, shortcut=True))

    assert out.shape == (N, C, H, W)
    max_err = float(jnp.max(jnp.abs(out - ref)))
    assert jnp.allclose(out, ref, atol=2e-2, rtol=2e-2), f"mismatch vs reference: {max_err}"

    print("KERNEL_OK")
</pallas_src>

<mosaic_0001>
module attributes {stable_mosaic.version = 11 : i64} {
  func.func @_bottleneck_kernel(%arg0: i32, %arg1: i32, %arg2: memref<1x20x18x128xbf16, #tpu.memory_space<vmem>>, %arg3: memref<9x128x128xbf16, #tpu.memory_space<vmem>>, %arg4: memref<1x128xf32, #tpu.memory_space<vmem>>, %arg5: memref<9x128x128xbf16, #tpu.memory_space<vmem>>, %arg6: memref<1x128xf32, #tpu.memory_space<vmem>>, %arg7: memref<1x8x16x128xf32, #tpu.memory_space<vmem>>, %arg8: memref<10x18x128xbf16, #tpu.memory_space<vmem>>) attributes {dimension_semantics = [#tpu.dimension_semantics<parallel>, #tpu.dimension_semantics<parallel>], iteration_bounds = array<i64: 2, 2>, scalar_prefetch = 0 : i64, scratch_operands = 1 : i64, tpu.core_type = #tpu.core_type<tc>, window_params = [{transform_indices = @transform_0, window_bounds = array<i64: 1, 20, 18, 128>}, {pipeline_mode = #tpu.pipeline_mode<synchronous>, transform_indices = @transform_1, window_bounds = array<i64: 9, 128, 128>}, {pipeline_mode = #tpu.pipeline_mode<synchronous>, transform_indices = @transform_2, window_bounds = array<i64: 1, 128>}, {pipeline_mode = #tpu.pipeline_mode<synchronous>, transform_indices = @transform_3, window_bounds = array<i64: 9, 128, 128>}, {pipeline_mode = #tpu.pipeline_mode<synchronous>, transform_indices = @transform_4, window_bounds = array<i64: 1, 128>}, {transform_indices = @transform_5, window_bounds = array<i64: 1, 8, 16, 128>}]} {
    %c8_i32 = arith.constant 8 : i32
    %0 = arith.muli %arg1, %c8_i32 : i32
    %1 = tpu.assume_multiple %0, 8 : i32
    %c0 = arith.constant 0 : index
    %2 = arith.index_cast %1 : i32 to index
    %c0_0 = arith.constant 0 : index
    %c0_1 = arith.constant 0 : index
    %3 = vector.load %arg2[%c0, %2, %c0_0, %c0_1] : memref<1x20x18x128xbf16, #tpu.memory_space<vmem>>, vector<1x12x18x128xbf16>
    %4 = vector.shape_cast %3 : vector<1x12x18x128xbf16> to vector<12x18x128xbf16>
    %5 = vector.extract_strided_slice %4 {offsets = [0, 0, 0], sizes = [10, 16, 128], strides = [1, 1, 1]} : vector<12x18x128xbf16> to vector<10x16x128xbf16>
    %6 = vector.shape_cast %5 : vector<10x16x128xbf16> to vector<160x128xbf16>
    %c0_2 = arith.constant 0 : index
    %c0_3 = arith.constant 0 : index
    %c0_4 = arith.constant 0 : index
    %7 = vector.load %arg3[%c0_2, %c0_3, %c0_4] : memref<9x128x128xbf16, #tpu.memory_space<vmem>>, vector<1x128x128xbf16>
    %8 = vector.shape_cast %7 : vector<1x128x128xbf16> to vector<128x128xbf16>
    %cst = arith.constant dense<0.000000e+00> : vector<160x128xf32>
    %9 = tpu.matmul %6, %8, %cst {dimension_numbers = #tpu.dot_dimension_numbers<[1], [0], [0], [1], [0, 0, 1, 1], [], []>} : vector<160x128xbf16>, vector<128x128xbf16>, vector<160x128xf32> -> vector<160x128xf32>
    %10 = vector.extract_strided_slice %4 {offsets = [0, 1, 0], sizes = [10, 16, 128], strides = [1, 1, 1]} : vector<12x18x128xbf16> to vector<10x16x128xbf16>
    %11 = vector.shape_cast %10 : vector<10x16x128xbf16> to vector<160x128xbf16>
    %c1 = arith.constant 1 : index
    %c0_5 = arith.constant 0 : index
    %c0_6 = arith.constant 0 : index
    %12 = vector.load %arg3[%c1, %c0_5, %c0_6] : memref<9x128x128xbf16, #tpu.memory_space<vmem>>, vector<1x128x128xbf16>
    %13 = vector.shape_cast %12 : vector<1x128x128xbf16> to vector<128x128xbf16>
    %cst_7 = arith.constant dense<0.000000e+00> : vector<160x128xf32>
    %14 = tpu.matmul %11, %13, %cst_7 {dimension_numbers = #tpu.dot_dimension_numbers<[1], [0], [0], [1], [0, 0, 1, 1], [], []>} : vector<160x128xbf16>, vector<128x128xbf16>, vector<160x128xf32> -> vector<160x128xf32>
    %15 = arith.addf %9, %14 : vector<160x128xf32>
    %16 = vector.extract_strided_slice %4 {offsets = [0, 2, 0], sizes = [10, 16, 128], strides = [1, 1, 1]} : vector<12x18x128xbf16> to vector<10x16x128xbf16>
    %17 = vector.shape_cast %16 : vector<10x16x128xbf16> to vector<160x128xbf16>
    %c2 = arith.constant 2 : index
    %c0_8 = arith.constant 0 : index
    %c0_9 = arith.constant 0 : index
    %18 = vector.load %arg3[%c2, %c0_8, %c0_9] : memref<9x128x128xbf16, #tpu.memory_space<vmem>>, vector<1x128x128xbf16>
    %19 = vector.shape_cast %18 : vector<1x128x128xbf16> to vector<128x128xbf16>
    %cst_10 = arith.constant dense<0.000000e+00> : vector<160x128xf32>
    %20 = tpu.matmul %17, %19, %cst_10 {dimension_numbers = #tpu.dot_dimension_numbers<[1], [0], [0], [1], [0, 0, 1, 1], [], []>} : vector<160x128xbf16>, vector<128x128xbf16>, vector<160x128xf32> -> vector<160x128xf32>
    %21 = arith.addf %15, %20 : vector<160x128xf32>
    %22 = vector.extract_strided_slice %4 {offsets = [1, 0, 0], sizes = [10, 16, 128], strides = [1, 1, 1]} : vector<12x18x128xbf16> to vector<10x16x128xbf16>
    %23 = vector.shape_cast %22 : vector<10x16x128xbf16> to vector<160x128xbf16>
    %c3 = arith.constant 3 : index
    %c0_11 = arith.constant 0 : index
    %c0_12 = arith.constant 0 : index
    %24 = vector.load %arg3[%c3, %c0_11, %c0_12] : memref<9x128x128xbf16, #tpu.memory_space<vmem>>, vector<1x128x128xbf16>
    %25 = vector.shape_cast %24 : vector<1x128x128xbf16> to vector<128x128xbf16>
    %cst_13 = arith.constant dense<0.000000e+00> : vector<160x128xf32>
    %26 = tpu.matmul %23, %25, %cst_13 {dimension_numbers = #tpu.dot_dimension_numbers<[1], [0], [0], [1], [0, 0, 1, 1], [], []>} : vector<160x128xbf16>, vector<128x128xbf16>, vector<160x128xf32> -> vector<160x128xf32>
    %27 = arith.addf %21, %26 : vector<160x128xf32>
    %28 = vector.extract_strided_slice %4 {offsets = [1, 1, 0], sizes = [10, 16, 128], strides = [1, 1, 1]} : vector<12x18x128xbf16> to vector<10x16x128xbf16>
    %29 = vector.shape_cast %28 : vector<10x16x128xbf16> to vector<160x128xbf16>
    %c4 = arith.constant 4 : index
    %c0_14 = arith.constant 0 : index
    %c0_15 = arith.constant 0 : index
    %30 = vector.load %arg3[%c4, %c0_14, %c0_15] : memref<9x128x128xbf16, #tpu.memory_space<vmem>>, vector<1x128x128xbf16>
    %31 = vector.shape_cast %30 : vector<1x128x128xbf16> to vector<128x128xbf16>
    %cst_16 = arith.constant dense<0.000000e+00> : vector<160x128xf32>
    %32 = tpu.matmul %29, %31, %cst_16 {dimension_numbers = #tpu.dot_dimension_numbers<[1], [0], [0], [1], [0, 0, 1, 1], [], []>} : vector<160x128xbf16>, vector<128x128xbf16>, vector<160x128xf32> -> vector<160x128xf32>
    %33 = arith.addf %27, %32 : vector<160x128xf32>
    %34 = vector.extract_strided_slice %4 {offsets = [1, 2, 0], sizes = [10, 16, 128], strides = [1, 1, 1]} : vector<12x18x128xbf16> to vector<10x16x128xbf16>
    %35 = vector.shape_cast %34 : vector<10x16x128xbf16> to vector<160x128xbf16>
    %c5 = arith.constant 5 : index
    %c0_17 = arith.constant 0 : index
    %c0_18 = arith.constant 0 : index
    %36 = vector.load %arg3[%c5, %c0_17, %c0_18] : memref<9x128x128xbf16, #tpu.memory_space<vmem>>, vector<1x128x128xbf16>
    %37 = vector.shape_cast %36 : vector<1x128x128xbf16> to vector<128x128xbf16>
    %cst_19 = arith.constant dense<0.000000e+00> : vector<160x128xf32>
    %38 = tpu.matmul %35, %37, %cst_19 {dimension_numbers = #tpu.dot_dimension_numbers<[1], [0], [0], [1], [0, 0, 1, 1], [], []>} : vector<160x128xbf16>, vector<128x128xbf16>, vector<160x128xf32> -> vector<160x128xf32>
    %39 = arith.addf %33, %38 : vector<160x128xf32>
    %40 = vector.extract_strided_slice %4 {offsets = [2, 0, 0], sizes = [10, 16, 128], strides = [1, 1, 1]} : vector<12x18x128xbf16> to vector<10x16x128xbf16>
    %41 = vector.shape_cast %40 : vector<10x16x128xbf16> to vector<160x128xbf16>
    %c6 = arith.constant 6 : index
    %c0_20 = arith.constant 0 : index
    %c0_21 = arith.constant 0 : index
    %42 = vector.load %arg3[%c6, %c0_20, %c0_21] : memref<9x128x128xbf16, #tpu.memory_space<vmem>>, vector<1x128x128xbf16>
    %43 = vector.shape_cast %42 : vector<1x128x128xbf16> to vector<128x128xbf16>
    %cst_22 = arith.constant dense<0.000000e+00> : vector<160x128xf32>
    %44 = tpu.matmul %41, %43, %cst_22 {dimension_numbers = #tpu.dot_dimension_numbers<[1], [0], [0], [1], [0, 0, 1, 1], [], []>} : vector<160x128xbf16>, vector<128x128xbf16>, vector<160x128xf32> -> vector<160x128xf32>
    %45 = arith.addf %39, %44 : vector<160x128xf32>
    %46 = vector.extract_strided_slice %4 {offsets = [2, 1, 0], sizes = [10, 16, 128], strides = [1, 1, 1]} : vector<12x18x128xbf16> to vector<10x16x128xbf16>
    %47 = vector.shape_cast %46 : vector<10x16x128xbf16> to vector<160x128xbf16>
    %c7 = arith.constant 7 : index
    %c0_23 = arith.constant 0 : index
    %c0_24 = arith.constant 0 : index
    %48 = vector.load %arg3[%c7, %c0_23, %c0_24] : memref<9x128x128xbf16, #tpu.memory_space<vmem>>, vector<1x128x128xbf16>
    %49 = vector.shape_cast %48 : vector<1x128x128xbf16> to vector<128x128xbf16>
    %cst_25 = arith.constant dense<0.000000e+00> : vector<160x128xf32>
    %50 = tpu.matmul %47, %49, %cst_25 {dimension_numbers = #tpu.dot_dimension_numbers<[1], [0], [0], [1], [0, 0, 1, 1], [], []>} : vector<160x128xbf16>, vector<128x128xbf16>, vector<160x128xf32> -> vector<160x128xf32>
    %51 = arith.addf %45, %50 : vector<160x128xf32>
    %52 = vector.extract_strided_slice %4 {offsets = [2, 2, 0], sizes = [10, 16, 128], strides = [1, 1, 1]} : vector<12x18x128xbf16> to vector<10x16x128xbf16>
    %53 = vector.shape_cast %52 : vector<10x16x128xbf16> to vector<160x128xbf16>
    %c8 = arith.constant 8 : index
    %c0_26 = arith.constant 0 : index
    %c0_27 = arith.constant 0 : index
    %54 = vector.load %arg3[%c8, %c0_26, %c0_27] : memref<9x128x128xbf16, #tpu.memory_space<vmem>>, vector<1x128x128xbf16>
    %55 = vector.shape_cast %54 : vector<1x128x128xbf16> to vector<128x128xbf16>
    %cst_28 = arith.constant dense<0.000000e+00> : vector<160x128xf32>
    %56 = tpu.matmul %53, %55, %cst_28 {dimension_numbers = #tpu.dot_dimension_numbers<[1], [0], [0], [1], [0, 0, 1, 1], [], []>} : vector<160x128xbf16>, vector<128x128xbf16>, vector<160x128xf32> -> vector<160x128xf32>
    %57 = arith.addf %51, %56 : vector<160x128xf32>
    %c0_29 = arith.constant 0 : index
    %c0_30 = arith.constant 0 : index
    %58 = vector.load %arg4[%c0_29, %c0_30] : memref<1x128xf32, #tpu.memory_space<vmem>>, vector<1x128xf32>
    %59 = vector.broadcast %58 : vector<1x128xf32> to vector<160x128xf32>
    %60 = arith.addf %57, %59 : vector<160x128xf32>
    %cst_31 = arith.constant 0.000000e+00 : f32
    %61 = vector.broadcast %cst_31 : f32 to vector<160x128xf32>
    %62 = arith.subf %61, %60 : vector<160x128xf32>
    %63 = math.exp %62 : vector<160x128xf32>
    %cst_32 = arith.constant 1.000000e+00 : f32
    %64 = vector.broadcast %cst_32 : f32 to vector<160x128xf32>
    %65 = arith.addf %64, %63 : vector<160x128xf32>
    %66 = tpu.reciprocal %65 {approx = true} : vector<160x128xf32> -> vector<160x128xf32>
    %67 = arith.mulf %60, %66 : vector<160x128xf32>
    %68 = vector.shape_cast %67 : vector<160x128xf32> to vector<10x16x128xf32>
    %69 = arith.truncf %68 : vector<10x16x128xf32> to vector<10x16x128xbf16>
    %c0_33 = arith.constant 0 : index
    %c1_34 = arith.constant 1 : index
    %c0_35 = arith.constant 0 : index
    %70 = vector.load %arg8[%c0_33, %c1_34, %c0_35] : memref<10x18x128xbf16, #tpu.memory_space<vmem>>, vector<10x16x128xbf16>
    tpu.vector_store %arg8[%c0_33, %c1_34, %c0_35], %69 {strides = array<i32>} : memref<10x18x128xbf16, #tpu.memory_space<vmem>>, vector<10x16x128xbf16>,
    %cst_36 = arith.constant 0.000000e+00 : bf16
    %71 = vector.broadcast %cst_36 : bf16 to vector<10x1x128xbf16>
    %c0_37 = arith.constant 0 : index
    %c0_38 = arith.constant 0 : index
    %c0_39 = arith.constant 0 : index
    %72 = vector.load %arg8[%c0_37, %c0_38, %c0_39] : memref<10x18x128xbf16, #tpu.memory_space<vmem>>, vector<10x1x128xbf16>
    tpu.vector_store %arg8[%c0_37, %c0_38, %c0_39], %71 {strides = array<i32>} : memref<10x18x128xbf16, #tpu.memory_space<vmem>>, vector<10x1x128xbf16>,
    %c0_40 = arith.constant 0 : index
    %c17 = arith.constant 17 : index
    %c0_41 = arith.constant 0 : index
    %73 = vector.load %arg8[%c0_40, %c17, %c0_41] : memref<10x18x128xbf16, #tpu.memory_space<vmem>>, vector<10x1x128xbf16>
    tpu.vector_store %arg8[%c0_40, %c17, %c0_41], %71 {strides = array<i32>} : memref<10x18x128xbf16, #tpu.memory_space<vmem>>, vector<10x1x128xbf16>,
    %c0_i32 = arith.constant 0 : i32
    %74 = arith.cmpi eq, %arg1, %c0_i32 : i32
    %75 = arith.extui %74 : i1 to i32
    %c0_i32_42 = arith.constant 0 : i32
    %76 = arith.cmpi ne, %75, %c0_i32_42 : i32
    scf.if %76 {
      %cst_91 = arith.constant 0.000000e+00 : bf16
      %150 = vector.broadcast %cst_91 : bf16 to vector<1x18x128xbf16>
      %c0_92 = arith.constant 0 : index
      %c0_93 = arith.constant 0 : index
      %c0_94 = arith.constant 0 : index
      %151 = vector.load %arg8[%c0_92, %c0_93, %c0_94] : memref<10x18x128xbf16, #tpu.memory_space<vmem>>, vector<1x18x128xbf16>
      tpu.vector_store %arg8[%c0_92, %c0_93, %c0_94], %150 {strides = array<i32>} : memref<10x18x128xbf16, #tpu.memory_space<vmem>>, vector<1x18x128xbf16>,
    } else {
    }
    %c1_i32 = arith.constant 1 : i32
    %77 = arith.cmpi eq, %arg1, %c1_i32 : i32
    %78 = arith.extui %77 : i1 to i32
    %c0_i32_43 = arith.constant 0 : i32
    %79 = arith.cmpi ne, %78, %c0_i32_43 : i32
    scf.if %79 {
      %cst_91 = arith.constant 0.000000e+00 : bf16
      %150 = vector.broadcast %cst_91 : bf16 to vector<1x18x128xbf16>
      %c9 = arith.constant 9 : index
      %c0_92 = arith.constant 0 : index
      %c0_93 = arith.constant 0 : index
      %151 = vector.load %arg8[%c9, %c0_92, %c0_93] : memref<10x18x128xbf16, #tpu.memory_space<vmem>>, vector<1x18x128xbf16>
      tpu.vector_store %arg8[%c9, %c0_92, %c0_93], %150 {strides = array<i32>} : memref<10x18x128xbf16, #tpu.memory_space<vmem>>, vector<1x18x128xbf16>,
    } else {
    }
    %c0_44 = arith.constant 0 : index
    %c0_45 = arith.constant 0 : index
    %c0_46 = arith.constant 0 : index
    %80 = vector.load %arg8[%c0_44, %c0_45, %c0_46] : memref<10x18x128xbf16, #tpu.memory_space<vmem>>, vector<10x18x128xbf16>
    %81 = vector.extract_strided_slice %80 {offsets = [0, 0, 0], sizes = [8, 16, 128], strides = [1, 1, 1]} : vector<10x18x128xbf16> to vector<8x16x128xbf16>
    %82 = vector.shape_cast %81 : vector<8x16x128xbf16> to vector<128x128xbf16>
    %c0_47 = arith.constant 0 : index
    %c0_48 = arith.constant 0 : index
    %c0_49 = arith.constant 0 : index
    %83 = vector.load %arg5[%c0_47, %c0_48, %c0_49] : memref<9x128x128xbf16, #tpu.memory_space<vmem>>, vector<1x128x128xbf16>
    %84 = vector.shape_cast %83 : vector<1x128x128xbf16> to vector<128x128xbf16>
    %cst_50 = arith.constant dense<0.000000e+00> : vector<128x128xf32>
    %85 = tpu.matmul %82, %84, %cst_50 {dimension_numbers = #tpu.dot_dimension_numbers<[1], [0], [0], [1], [0, 0, 1, 1], [], []>} : vector<128x128xbf16>, vector<128x128xbf16>, vector<128x128xf32> -> vector<128x128xf32>
    %86 = vector.extract_strided_slice %80 {offsets = [0, 1, 0], sizes = [8, 16, 128], strides = [1, 1, 1]} : vector<10x18x128xbf16> to vector<8x16x128xbf16>
    %87 = vector.shape_cast %86 : vector<8x16x128xbf16> to vector<128x128xbf16>
    %c1_51 = arith.constant 1 : index
    %c0_52 = arith.constant 0 : index
    %c0_53 = arith.constant 0 : index
    %88 = vector.load %arg5[%c1_51, %c0_52, %c0_53] : memref<9x128x128xbf16, #tpu.memory_space<vmem>>, vector<1x128x128xbf16>
    %89 = vector.shape_cast %88 : vector<1x128x128xbf16> to vector<128x128xbf16>
    %cst_54 = arith.constant dense<0.000000e+00> : vector<128x128xf32>
    %90 = tpu.matmul %87, %89, %cst_54 {dimension_numbers = #tpu.dot_dimension_numbers<[1], [0], [0], [1], [0, 0, 1, 1], [], []>} : vector<128x128xbf16>, vector<128x128xbf16>, vector<128x128xf32> -> vector<128x128xf32>
    %91 = arith.addf %85, %90 : vector<128x128xf32>
    %92 = vector.extract_strided_slice %80 {offsets = [0, 2, 0], sizes = [8, 16, 128], strides = [1, 1, 1]} : vector<10x18x128xbf16> to vector<8x16x128xbf16>
    %93 = vector.shape_cast %92 : vector<8x16x128xbf16> to vector<128x128xbf16>
    %c2_55 = arith.constant 2 : index
    %c0_56 = arith.constant 0 : index
    %c0_57 = arith.constant 0 : index
    %94 = vector.load %arg5[%c2_55, %c0_56, %c0_57] : memref<9x128x128xbf16, #tpu.memory_space<vmem>>, vector<1x128x128xbf16>
    %95 = vector.shape_cast %94 : vector<1x128x128xbf16> to vector<128x128xbf16>
    %cst_58 = arith.constant dense<0.000000e+00> : vector<128x128xf32>
    %96 = tpu.matmul %93, %95, %cst_58 {dimension_numbers = #tpu.dot_dimension_numbers<[1], [0], [0], [1], [0, 0, 1, 1], [], []>} : vector<128x128xbf16>, vector<128x128xbf16>, vector<128x128xf32> -> vector<128x128xf32>
    %97 = arith.addf %91, %96 : vector<128x128xf32>
    %98 = vector.extract_strided_slice %80 {offsets = [1, 0, 0], sizes = [8, 16, 128], strides = [1, 1, 1]} : vector<10x18x128xbf16> to vector<8x16x128xbf16>
    %99 = vector.shape_cast %98 : vector<8x16x128xbf16> to vector<128x128xbf16>
    %c3_59 = arith.constant 3 : index
    %c0_60 = arith.constant 0 : index
    %c0_61 = arith.constant 0 : index
    %100 = vector.load %arg5[%c3_59, %c0_60, %c0_61] : memref<9x128x128xbf16, #tpu.memory_space<vmem>>, vector<1x128x128xbf16>
    %101 = vector.shape_cast %100 : vector<1x128x128xbf16> to vector<128x128xbf16>
    %cst_62 = arith.constant dense<0.000000e+00> : vector<128x128xf32>
    %102 = tpu.matmul %99, %101, %cst_62 {dimension_numbers = #tpu.dot_dimension_numbers<[1], [0], [0], [1], [0, 0, 1, 1], [], []>} : vector<128x128xbf16>, vector<128x128xbf16>, vector<128x128xf32> -> vector<128x128xf32>
    %103 = arith.addf %97, %102 : vector<128x128xf32>
    %104 = vector.extract_strided_slice %80 {offsets = [1, 1, 0], sizes = [8, 16, 128], strides = [1, 1, 1]} : vector<10x18x128xbf16> to vector<8x16x128xbf16>
    %105 = vector.shape_cast %104 : vector<8x16x128xbf16> to vector<128x128xbf16>
    %c4_63 = arith.constant 4 : index
    %c0_64 = arith.constant 0 : index
    %c0_65 = arith.constant 0 : index
    %106 = vector.load %arg5[%c4_63, %c0_64, %c0_65] : memref<9x128x128xbf16, #tpu.memory_space<vmem>>, vector<1x128x128xbf16>
    %107 = vector.shape_cast %106 : vector<1x128x128xbf16> to vector<128x128xbf16>
    %cst_66 = arith.constant dense<0.000000e+00> : vector<128x128xf32>
    %108 = tpu.matmul %105, %107, %cst_66 {dimension_numbers = #tpu.dot_dimension_numbers<[1], [0], [0], [1], [0, 0, 1, 1], [], []>} : vector<128x128xbf16>, vector<128x128xbf16>, vector<128x128xf32> -> vector<128x128xf32>
    %109 = arith.addf %103, %108 : vector<128x128xf32>
    %110 = vector.extract_strided_slice %80 {offsets = [1, 2, 0], sizes = [8, 16, 128], strides = [1, 1, 1]} : vector<10x18x128xbf16> to vector<8x16x128xbf16>
    %111 = vector.shape_cast %110 : vector<8x16x128xbf16> to vector<128x128xbf16>
    %c5_67 = arith.constant 5 : index
    %c0_68 = arith.constant 0 : index
    %c0_69 = arith.constant 0 : index
    %112 = vector.load %arg5[%c5_67, %c0_68, %c0_69] : memref<9x128x128xbf16, #tpu.memory_space<vmem>>, vector<1x128x128xbf16>
    %113 = vector.shape_cast %112 : vector<1x128x128xbf16> to vector<128x128xbf16>
    %cst_70 = arith.constant dense<0.000000e+00> : vector<128x128xf32>
    %114 = tpu.matmul %111, %113, %cst_70 {dimension_numbers = #tpu.dot_dimension_numbers<[1], [0], [0], [1], [0, 0, 1, 1], [], []>} : vector<128x128xbf16>, vector<128x128xbf16>, vector<128x128xf32> -> vector<128x128xf32>
    %115 = arith.addf %109, %114 : vector<128x128xf32>
    %116 = vector.extract_strided_slice %80 {offsets = [2, 0, 0], sizes = [8, 16, 128], strides = [1, 1, 1]} : vector<10x18x128xbf16> to vector<8x16x128xbf16>
    %117 = vector.shape_cast %116 : vector<8x16x128xbf16> to vector<128x128xbf16>
    %c6_71 = arith.constant 6 : index
    %c0_72 = arith.constant 0 : index
    %c0_73 = arith.constant 0 : index
    %118 = vector.load %arg5[%c6_71, %c0_72, %c0_73] : memref<9x128x128xbf16, #tpu.memory_space<vmem>>, vector<1x128x128xbf16>
    %119 = vector.shape_cast %118 : vector<1x128x128xbf16> to vector<128x128xbf16>
    %cst_74 = arith.constant dense<0.000000e+00> : vector<128x128xf32>
    %120 = tpu.matmul %117, %119, %cst_74 {dimension_numbers = #tpu.dot_dimension_numbers<[1], [0], [0], [1], [0, 0, 1, 1], [], []>} : vector<128x128xbf16>, vector<128x128xbf16>, vector<128x128xf32> -> vector<128x128xf32>
    %121 = arith.addf %115, %120 : vector<128x128xf32>
    %122 = vector.extract_strided_slice %80 {offsets = [2, 1, 0], sizes = [8, 16, 128], strides = [1, 1, 1]} : vector<10x18x128xbf16> to vector<8x16x128xbf16>
    %123 = vector.shape_cast %122 : vector<8x16x128xbf16> to vector<128x128xbf16>
    %c7_75 = arith.constant 7 : index
    %c0_76 = arith.constant 0 : index
    %c0_77 = arith.constant 0 : index
    %124 = vector.load %arg5[%c7_75, %c0_76, %c0_77] : memref<9x128x128xbf16, #tpu.memory_space<vmem>>, vector<1x128x128xbf16>
    %125 = vector.shape_cast %124 : vector<1x128x128xbf16> to vector<128x128xbf16>
    %cst_78 = arith.constant dense<0.000000e+00> : vector<128x128xf32>
    %126 = tpu.matmul %123, %125, %cst_78 {dimension_numbers = #tpu.dot_dimension_numbers<[1], [0], [0], [1], [0, 0, 1, 1], [], []>} : vector<128x128xbf16>, vector<128x128xbf16>, vector<128x128xf32> -> vector<128x128xf32>
    %127 = arith.addf %121, %126 : vector<128x128xf32>
    %128 = vector.extract_strided_slice %80 {offsets = [2, 2, 0], sizes = [8, 16, 128], strides = [1, 1, 1]} : vector<10x18x128xbf16> to vector<8x16x128xbf16>
    %129 = vector.shape_cast %128 : vector<8x16x128xbf16> to vector<128x128xbf16>
    %c8_79 = arith.constant 8 : index
    %c0_80 = arith.constant 0 : index
    %c0_81 = arith.constant 0 : index
    %130 = vector.load %arg5[%c8_79, %c0_80, %c0_81] : memref<9x128x128xbf16, #tpu.memory_space<vmem>>, vector<1x128x128xbf16>
    %131 = vector.shape_cast %130 : vector<1x128x128xbf16> to vector<128x128xbf16>
    %cst_82 = arith.constant dense<0.000000e+00> : vector<128x128xf32>
    %132 = tpu.matmul %129, %131, %cst_82 {dimension_numbers = #tpu.dot_dimension_numbers<[1], [0], [0], [1], [0, 0, 1, 1], [], []>} : vector<128x128xbf16>, vector<128x128xbf16>, vector<128x128xf32> -> vector<128x128xf32>
    %133 = arith.addf %127, %132 : vector<128x128xf32>
    %c0_83 = arith.constant 0 : index
    %c0_84 = arith.constant 0 : index
    %134 = vector.load %arg6[%c0_83, %c0_84] : memref<1x128xf32, #tpu.memory_space<vmem>>, vector<1x128xf32>
    %135 = vector.broadcast %134 : vector<1x128xf32> to vector<128x128xf32>
    %136 = arith.addf %133, %135 : vector<128x128xf32>
    %cst_85 = arith.constant 0.000000e+00 : f32
    %137 = vector.broadcast %cst_85 : f32 to vector<128x128xf32>
    %138 = arith.subf %137, %136 : vector<128x128xf32>
    %139 = math.exp %138 : vector<128x128xf32>
    %cst_86 = arith.constant 1.000000e+00 : f32
    %140 = vector.broadcast %cst_86 : f32 to vector<128x128xf32>
    %141 = arith.addf %140, %139 : vector<128x128xf32>
    %142 = tpu.reciprocal %141 {approx = true} : vector<128x128xf32> -> vector<128x128xf32>
    %143 = arith.mulf %136, %142 : vector<128x128xf32>
    %144 = vector.extract_strided_slice %4 {offsets = [2, 1, 0], sizes = [8, 16, 128], strides = [1, 1, 1]} : vector<12x18x128xbf16> to vector<8x16x128xbf16>
    %145 = arith.extf %144 : vector<8x16x128xbf16> to vector<8x16x128xf32>
    %146 = vector.shape_cast %145 : vector<8x16x128xf32> to vector<128x128xf32>
    %147 = arith.addf %143, %146 : vector<128x128xf32>
    %148 = vector.shape_cast %147 : vector<128x128xf32> to vector<1x8x16x128xf32>
    %c0_87 = arith.constant 0 : index
    %c0_88 = arith.constant 0 : index
    %c0_89 = arith.constant 0 : index
    %c0_90 = arith.constant 0 : index
    %149 = vector.load %arg7[%c0_87, %c0_88, %c0_89, %c0_90] : memref<1x8x16x128xf32, #tpu.memory_space<vmem>>, vector<1x8x16x128xf32>
    tpu.vector_store %arg7[%c0_87, %c0_88, %c0_89, %c0_90], %148 {strides = array<i32>} : memref<1x8x16x128xf32, #tpu.memory_space<vmem>>, vector<1x8x16x128xf32>,
    return
  }
  func.func @transform_0(%arg0: i32, %arg1: i32) -> (i32, i32, i32, i32) {
    %c0_i32 = arith.constant 0 : i32
    %c0_i32_0 = arith.constant 0 : i32
    %c0_i32_1 = arith.constant 0 : i32
    %c0_i32_2 = arith.constant 0 : i32
    return %arg0, %c0_i32, %c0_i32_0, %c0_i32_1 : i32, i32, i32, i32
  }
  func.func @transform_1(%arg0: i32, %arg1: i32) -> (i32, i32, i32) {
    %c0_i32 = arith.constant 0 : i32
    %c0_i32_0 = arith.constant 0 : i32
    %c0_i32_1 = arith.constant 0 : i32
    %c0_i32_2 = arith.constant 0 : i32
    return %c0_i32, %c0_i32_0, %c0_i32_1 : i32, i32, i32
  }
  func.func @transform_2(%arg0: i32, %arg1: i32) -> (i32, i32) {
    %c0_i32 = arith.constant 0 : i32
    %c0_i32_0 = arith.constant 0 : i32
    %c0_i32_1 = arith.constant 0 : i32
    return %c0_i32, %c0_i32_0 : i32, i32
  }
  func.func @transform_3(%arg0: i32, %arg1: i32) -> (i32, i32, i32) {
    %c0_i32 = arith.constant 0 : i32
    %c0_i32_0 = arith.constant 0 : i32
    %c0_i32_1 = arith.constant 0 : i32
    %c0_i32_2 = arith.constant 0 : i32
    return %c0_i32, %c0_i32_0, %c0_i32_1 : i32, i32, i32
  }
  func.func @transform_4(%arg0: i32, %arg1: i32) -> (i32, i32) {
    %c0_i32 = arith.constant 0 : i32
    %c0_i32_0 = arith.constant 0 : i32
    %c0_i32_1 = arith.constant 0 : i32
    return %c0_i32, %c0_i32_0 : i32, i32
  }
  func.func @transform_5(%arg0: i32, %arg1: i32) -> (i32, i32, i32, i32) {
    %c0_i32 = arith.constant 0 : i32
    %c0_i32_0 = arith.constant 0 : i32
    %c0_i32_1 = arith.constant 0 : i32
    return %arg0, %arg1, %c0_i32, %c0_i32_0 : i32, i32, i32, i32
  }
}

</mosaic_0001>

<bundles_post_ra>
// kernel: tpu_custom_call.1
= control target key start
LH: loop header
LB: loop body
LE: loop exit
PB: predicated region body
PF: predicated region fallthrough
CT: control target
= control target key end

     0   :  { %10 = vsyncpa [#allocation4], 0  ;;  %s9564_s0 = inlined_call_operand.vmem [shape: bf16[2,20,18,128], index: 0, kind: input, shape index: {}]   ;;  %s9565_s1 = inlined_call_operand.vmem [shape: bf16[9,128,128], index: 1, kind: input, shape index: {}]   ;;  %s9566_s2 = inlined_call_operand.vmem [shape: f32[1,128], index: 2, kind: input, shape index: {}]   ;;  %s9567_s3 = inlined_call_operand.hbm [shape: bf16[9,128,128], index: 3, kind: input, shape index: {}]   ;;  %s9568_s4 = inlined_call_operand.vmem [shape: f32[1,128], index: 4, kind: input, shape index: {}]   ;;  %s9569_s5 = inlined_call_operand.hbm [shape: f32[2,16,16,128], index: 5, kind: output, shape index: {}]  }
   0x1   :  { %11 = vsyncpa [#allocation5], 0 }
   0x2   :  { %13 = vsyncpa [#allocation5 + $0x1], 0  ;;  %s7774_s18 = smov 0   ;;  %s7776_s19 = smov 0  }
   0x3   :  { %s7778_s20 = smov 0   ;;  %s7780_s21 = smov 0  }
   0x4   :  { %s7782_s22 = smov 0   ;;  %s7784_s23 = smov 0  }
   0x5   :  { %s7786_s24 = smov 0   ;;  %s7788_s25 = smov 0  }
   0x6 LB: > { %s5576_s26 = sadd.s32 4294967295, %s7734_s25   ;;  %s5577_s27 = sadd.s32 4294967294, %s7734_s25   ;;  %s7734_s25 = sphi %s7788_s25, %s19_s25   ;;  %s7730_s24 = sphi %s7786_s24, %s9685_s24   ;;  %s7726_s23 = sphi %s7784_s23, %s9684_s23   ;;  %s7722_s22 = sphi %s7782_s22, %s9683_s22   ;;  %s7718_s21 = sphi %s7780_s21, %s9682_s21   ;;  %s7714_s20 = sphi %s7778_s20, %s9681_s20   ;;  %s7710_s19 = sphi %s7776_s19, %s9680_s19   ;;  %s7706_s18 = sphi %s7774_s18, %s9679_s18  }
   0x7   : > { %s28_s28 = sadd.s32 1, %s7726_s23  ;;  %s31_s29 = sadd.s32 1, %s7730_s24 }
   0x8   : > { %p29_p0 = scmp.ge.s32.totalorder %s28_s28, 2  ;;  %s150_s30 = sadd.s32 1, %s7714_s20 }
   0x9   : > { %p160_p1 = scmp.ne.s32.totalorder %s7714_s20, %s7710_s19  ;;  %p161_p2 = scmp.eq.s32.totalorder %s5576_s26, 3 }
   0xa   : > { %s9687_s28 = smov (%p29_p0, %s28_s28), 0  ;;  %s9689_s29 = smov (!%p29_p0, %s31_s29), %s7730_s24 }
   0xb   : > { %s146_s6 = ssub.s32 %s7726_s23, %s9687_s28  ;;  %p7826_p3 = por %p161_p2, %p160_p1 }
   0xc   : > { %p33_p4 = scmp.ge.s32.totalorder %s9689_s29, 2  ;;  %p166_p5 = scmp.ne.s32.totalorder %s7710_s19, %s7706_s18 }
   0xd   : > { %s9591_s7 = scalar_select %p7826_p3, 1, 0 }
   0xe   : > { %p167_p6 = scmp.eq.s32.totalorder %s5577_s27, 3  ;;  %p5578_p7 = scmp.ge.s32.totalorder %s7734_s25, 1 }
   0xf   : > { %s9691_s29 = smov (%p33_p4, %s9689_s29), 0  ;;  %p174_p9 = scmp.lt.s32.totalorder %s7734_s25, 5 }
  0x10   : > { %p7835_p8 = por %p167_p6, %p166_p5  ;;  %s145_s9 = ssub.s32 %s7730_s24, %s9691_s29 }
  0x11   : > { %s147_s10 = sor.u32 %s146_s6, %s145_s9  ;;  %p7842_p10 = pnand %p5578_p7, %p174_p9 }
  0x12   : > { %s9592_s8 = scalar_select %p7835_p8, 1, 0 }
  0x13   : > { %s9593_s11 = scalar_select %p7842_p10, 1, 0 }
  0x14   : > { %p148_p11 = scmp.eq.s32.totalorder %s147_s10, 0  ;;  %p7846_p12 = scmp.eq.s32.totalorder %s5576_s26, 0 }
  0x15   : > { %p7214_p13 = pneg %p7842_p10  ;;  %s7736_s14 = smov [#allocation3]  }
  0x16   : > { %s9594_s12 = scalar_select %p7846_p12, 1, 0 }
  0x17   : > { %s7853_s13 = scalar_select %p148_p11, %s7714_s20, %s150_s30  }
  0x18   : > { %s192_s15 = sshll.u32 %s7736_s14, 4  ;;  %p7857_p0 = pnand %p7846_p12, %p7214_p13  ;;  %s193_s15 = int_to_ptr.vmem [resolvable:$true] %s192_s15 }
  0x19   : > { %s7608_s26 = scalar_lea.hbm %s9567_s3, 9216 }
  0x1a   : > { %p7609_p1 = scmp.ne.s32.totalorder %s9567_s3, %s7608_s26  ;;  %p7610_p2 = pneg %p7857_p0 }
  0x1b   : > { %p7615_p6 = scmp.lt.u32.totalorder %s7608_s26, %s9567_s3 }
  0x1c   : > { %p7611_p4 = pnand %p7610_p2, %p7609_p1 }
  0x1e   : > { %p7612_p5 = pneg %p7611_p4 }
  0x20   : > { %p7617_p7 = pnand %p7615_p6, %p7612_p5 }
  0x22   : > { %7620 = shalt.err (!%p7617_p7)
}
  0x23   : > { %s7621_s14 = scalar_lea.vmem %s193_s15, 9216  ;;  %p7629_p8 = scmp.lt.s32.totalorder %s193_s15, %s193_s15 }
  0x24   : > { %p7622_p9 = scmp.ne.s32.totalorder %s193_s15, %s7621_s14  ;;  %p7630_p3 = scmp.lt.s32.totalorder %s7621_s14, %s7621_s14 }
  0x26   : > { %p7624_p11 = pnand %p7622_p9, %p7610_p2  ;;  %p7631_p12 = por %p7630_p3, %p7629_p8 }
  0x28   : > { %p7625_p13 = pneg %p7624_p11 }
  0x2a   : > { %p7632_p10 = pnand %p7631_p12, %p7625_p13 }
  0x2c   : > { %7635 = shalt.err (!%p7632_p10)
}
  0x2d   : > { %s7737_s17 = smov 64   ;;  %s7738_s27 = smov 4  }
  0x2e   : > { %7217 = dma.hbm_to_vmem [thread:$0]  (!%p7857_p0), %s9567_s3, 9216, %s193_s15, [#allocation4], %s7737_s17, %s7737_s17, %s7738_s27  }
  0x2f   : > { %p9596_p1 = scmp.ne.s32.totalorder %s9593_s11, 0 }
  0x31   : > { %219 = sbr.rel (%p9596_p1) target bundleno = 1295 (0x50f), region = 40 }
  0x38   : > { %p9597_p4 = scmp.ne.s32.totalorder %s9594_s12, 0 }
  0x3a   : > { %7697 = dma.done.wait (%p9597_p4), [#allocation4], 9216  }
  0x3b   : > { %7699 = vsyncadd (%p9597_p4), [#allocation4], 4294958080  ;;  %p247_p3 = scmp.lt.s32.totalorder %s7722_s22, 1  ;;  %v7296_v0 = vld [vmem:[%s9565_s1] sm:$0xff]   ;;  %v7297_v1 = vld [vmem:[%s9565_s1 + $0x8] sm:$0xff]   ;;  %s5979_s11 = smul.u32 96, %s7718_s21 }
  0x3c   : > { %6343 = vmatprep.subr.bf16.mxu0 %v7296_v0  ;;  %v7298_v2 = vld [vmem:[%s9565_s1 + $0x10] sm:$0xff]   ;;  %v7299_v3 = vld [vmem:[%s9565_s1 + $0x18] sm:$0xff]   ;;  %v7300_v7 = vld [vmem:[%s9565_s1 + $0x20] sm:$0xff]   ;;  %vm1002_vm0 = vcmask 1042432   ;;  %vm1003_vm1 = vcmask 1046532   ;;  %vm3003_vm6 = vcmask 1043456  }
  0x3d   : > { %s248_s26 = scalar_select %p247_p3, %s7722_s22, 1  ;;  %6344 = vmatpush3.bf16.msra.mxu0 %v7296_v0  ;;  %v7301_v8 = vld [vmem:[%s9565_s1 + $0x28] sm:$0xff]   ;;  %v7302_v15 = vld [vmem:[%s9565_s1 + $0x30] sm:$0xff]   ;;  %v7303_v23 = vld [vmem:[%s9565_s1 + $0x38] sm:$0xff]   ;;  %vm310_vm3 = vsmask.f32 3328 }
  0x3e   : > { %6345 = vmatprep.subr.bf16.mxu0 %v7297_v1  ;;  %v7306_v32 = vld [vmem:[%s9565_s1 + $0x80] sm:$0xff]   ;;  %v7307_v47 = vld [vmem:[%s9565_s1 + $0x88] sm:$0xff]   ;;  %v7310_v60 = vld [vmem:[%s9565_s1 + $0x90] sm:$0xff]   ;;  %vm311_vm4 = vsmask.f32 7440  ;;  %vm3010_vm9 = vcmask 1040384  }
  0x3f   : > { %s7207_s30 = smul.u32 240, %s248_s26  ;;  %vm8065_vm2 = vmor %vm1002_vm0, %vm1003_vm1  ;;  %vm3004_vm7 = vsmask.f32 7938  ;;  %vm2800_vm8 = vsmask.f32 256  ;;  %p5857_p8 = scmp.ne.s32.totalorder %s7718_s21, 0 }
  0x40   : > { %vm8178_vm5 = vmor %vm310_vm3, %vm311_vm4  ;;  %vm2801_vm10 = vsmask.f32 4368 }
  0x41   : > { %s251_s12 = scalar_lea.vmem %s9564_s0, %s7207_s30  ;;  %6346 = vmatpush3.bf16.msra.mxu0 %v7297_v1  ;;  %vm8805_vm11 = vmand %vm3003_vm6, %vm3004_vm7 }
  0x42   : > { %s7898_s26 = scalar_lea.vmem %s251_s12, %s5979_s11  ;;  %6347 = vmatprep.subr.bf16.mxu0 %v7298_v2  ;;  %s244_s11 = sand.u32 1, %s7710_s19   ;;  %vm8811_vm12 = vmand %vm3010_vm9, %vm2800_vm8 }
  0x43   : > { %v7904_v4 = vld [vmem:[%s7898_s26] sm:$0xf]  ;;  %v7907_v5 = vld [vmem:[%s7898_s26 + $0x4] sm:$0xf]  ;;  %v7918_v9 = vld [vmem:[%s7898_s26 + $0x18] sm:$0xf] }
  0x44   : > { %v5622_v6 = vcombine.low %v7904_v4, %v7907_v5  ;;  %v7921_v10 = vld [vmem:[%s7898_s26 + $0x1c] sm:$0xf]  ;;  %v362_v11 = vshrl.u32 %v7918_v9, 16  ;;  %v365_v12 = vshll.u32 %v7918_v9, 16  ;;  %v7931_v16 = vld [vmem:[%s7898_s26 + $0x10] sm:$0xf]  ;;  %vm8818_vm13 = vmor %vm2800_vm8, %vm2801_vm10 }
  0x45   : > { %6348 = vmatpush3.bf16.msra.mxu0 %v7298_v2  ;;  %9598 = vst [vmem:[#allocation9_spill] sm:$0xff] %v7921_v10  ;;  %v371_v13 = vshll.u32 %v7921_v10, 16  ;;  %v375_v14 = vshrl.u32 %v7921_v10, 16  ;;  %v1014_v17 = vrot.slane %v7931_v16, 5  ;;  %v7935_v18 = vld [vmem:[%s7898_s26 + $0xc] sm:$0xf]  ;;  %v7993_v50 = vcombine.low %v7918_v9, %v7921_v10  ;;  %vm8842_vm14 = vmand %vm3010_vm9, %vm3004_vm7 }
  0x46   : > { %6359 = vmatprep.mubr.bf16.mxu0 %v5622_v6  ;;  %6349 = vmatprep.subr.bf16.mxu0 %v7299_v3  ;;  %v364_v19 = vrot.slane %v362_v11, 4  ;;  %v367_v20 = vrot.slane %v365_v12, 5  ;;  %v5640_v24 = vrot.slane %v7904_v4, 9  ;;  %v1007_v25 = vrot.slane %v7907_v5, 5  ;;  %v7953_v31 = vld [vmem:[%s7898_s26 + $0x24] sm:$0xf] }
  0x47   : > { %v7937_v21 = vrot.slane %v371_v13, 5  ;;  %v377_v22 = vrot.slane %v375_v14, 4  ;;  %v338_v26 = vshrl.u32 %v7935_v18, 16  ;;  %v341_v27 = vshll.u32 %v7935_v18, 16  ;;  %v7960_v35 = vld [vmem:[%s7898_s26 + $0x28] sm:$0xf] }
  0x48   : > { %v5641_v29 = vrot.slane %v7935_v18, 9  ;;  %v7950_v30 = vrot.slane %v1014_v17, 4  ;;  %v368_v33 = vor.u32 %v367_v20, %v364_v19  ;;  %v7965_v38 = vld [vmem:[%s7898_s26 + $0x30] sm:$0xf]  ;;  %v7968_v39 = vld [vmem:[%s7898_s26 + $0x34] sm:$0xf]  ;;  %v7982_v46 = vcombine.low %v7935_v18, %v7931_v16 }
  0x49   : > { %6350 = vmatpush3.bf16.msra.mxu0 %v7299_v3  ;;  %v378_v34 = vor.u32 %v377_v22, %v7937_v21  ;;  %9599 = vst [vmem:[#allocation10_spill] sm:$0xff] %v7965_v38  ;;  %9600 = vst [vmem:[#allocation11_spill] sm:$0xff] %v7968_v39  ;;  %v7975_v44 = vld [vmem:[%s7898_s26 + $0x3c] sm:$0xf]  ;;  %v7978_v45 = vld [vmem:[%s7898_s26 + $0x40] sm:$0xf]  ;;  %v8050_v20 = vcombine.low %v7965_v38, %v7968_v39  ;;  %v8093_v52 = vsel %vm8065_vm2, %v5640_v24, %v1007_v25 }
  0x4a   : > { %6351 = vmatprep.subr.bf16.mxu0 %v7300_v7  ;;  %v7987_v48 = vrot.slane %v368_v33, 4  ;;  %v7998_v53 = vld [vmem:[%s7898_s26 + $0x48] sm:$0xf]  ;;  %v8002_v55 = vld [vmem:[%s7898_s26 + $0x4c] sm:$0xf]  ;;  %v7312_v12 = vld [vmem:[%s9565_s1 + $0x98] sm:$0xff]   ;;  %v8113_v43 = vcombine.low %v7975_v44, %v7978_v45 }
  0x4b   : > { %v7989_v49 = vrot.slane %v378_v34, 4  ;;  %9601 = vst [vmem:[#allocation12_spill] sm:$0xff] %v7998_v53  ;;  %9602 = vst [vmem:[#allocation13_spill] sm:$0xff] %v8002_v55  ;;  %v8008_v59 = vld [vmem:[%s7898_s26 + $0x54] sm:$0xf]  ;;  %v1021_v19 = vrot.slane %v7921_v10, 5 }
  0x4c   : > { %v8015_v61 = vld [vmem:[%s7898_s26 + $0x58] sm:$0xf]  ;;  %v8020_v0 = vld [vmem:[%s7898_s26 + $0x60] sm:$0xf]  ;;  %v8024_v1 = vld [vmem:[%s7898_s26 + $0x64] sm:$0xf] }
  0x4d   : > { %6352 = vmatpush3.bf16.msra.mxu0 %v7300_v7  ;;  %9603 = vst [vmem:[#allocation14_spill] sm:$0xff] %v8020_v0  ;;  %9604 = vst [vmem:[#allocation15_spill] sm:$0xff] %v8024_v1  ;;  %v8029_v6 = vld [vmem:[%s7898_s26 + $0x6c] sm:$0xf]  ;;  %v8033_v7 = vcombine.low %v7953_v31, %v7960_v35  ;;  %v8039_v11 = vld [vmem:[%s7898_s26 + $0x14] sm:$0x1] }
  0x4e   : > { %6353 = vmatprep.subr.bf16.mxu0 %v7301_v8  ;;  %9605 = vst [vmem:[#allocation16_spill] sm:$0xff] %v8029_v6  ;;  %v8053_v22 = vld [vmem:[%s7898_s26 + $0x20] sm:$0x1]  ;;  %v1009_v33 = vrot.slane %v1007_v25, 4  ;;  %v5642_v14 = vrot.slane %v7918_v9, 9  ;;  %v1028_v3 = vrot.slane %v7960_v35, 5 }
  0x4f   : > { %9606 = vst [vmem:[#allocation17_spill] sm:$0xff] %v8053_v22  ;;  %v8071_v13 = vld [vmem:[%s7898_s26 + $0x2c] sm:$0x1]  ;;  %v1023_v2 = vrot.slane %v1021_v19, 4  ;;  %v1024_v63 = vrot.slane %v8053_v22, 5  ;;  %v381_v57 = vshll.u32 %v8053_v22, 16 }
  0x50   : > { %9610 = vst [vmem:[#allocation19_spill] sm:$0xff] %v8071_v13  ;;  %v8080_v62 = vld [vmem:[%s7898_s26 + $0x38] sm:$0x1]  ;;  %v5643_v56 = vrot.slane %v7953_v31, 9  ;;  %v1035_v54 = vrot.slane %v7968_v39, 5  ;;  %v1031_v58 = vrot.slane %v8071_v13, 5 }
  0x51   : > { %6354 = vmatpush3.bf16.msra.mxu0 %v7301_v8  ;;  %v8036_v8 = vld [vmem:[%s7898_s26 + $0x8] sm:$0x1]  ;;  %9611 = vst [vmem:[#allocation20_spill] sm:$0xff] %v8080_v62  ;;  %v5644_v51 = vrot.slane %v7965_v38, 9  ;;  %v1030_v24 = vrot.slane %v1028_v3, 4  ;;  %v1038_v25 = vrot.slane %v8080_v62, 5 }
  0x52   : > { %6355 = vmatprep.subr.bf16.mxu0 %v7302_v15  ;;  %v1010_v34 = vrot.slane %v8036_v8, 5  ;;  %v1037_v42 = vrot.slane %v1035_v54, 4  ;;  %v340_v41 = vrot.slane %v338_v26, 4  ;;  %v383_v40 = vrot.slane %v381_v57, 5  ;;  %s8478_s12 = sshll.u32 %s244_s11, 7 }
  0x53   : > { %v1029_v26 = vsel %vm8065_vm2, %v5643_v56, %v1028_v3  ;;  %v347_v36 = vshll.u32 %v7931_v16, 16  ;;  %v1032_v28 = vsel %vm8065_vm2, %v1030_v24, %v1031_v58  ;;  %v9612_v3 = vshrl.u32 %v7931_v16, 16  ;;  %s8974_s15 = scalar_lea.vmem [#allocation6], %s8478_s12 }
  0x54   : > { %v8105_v5 = vsel %vm8065_vm2, %v1009_v33, %v1010_v34  ;;  %v1025_v33 = vsel %vm8065_vm2, %v1023_v2, %v1024_v63  ;;  %v8124_v34 = vld [vmem:[%s7898_s26 + $0x44] sm:$0x1]  ;;  %v7317_v63 = vld [vmem:[%s9565_s1 + $0xa8] sm:$0xff]   ;;  %v1039_v56 = vsel %vm8065_vm2, %v1037_v42, %v1038_v25  ;;  %v8174_v25 = vcombine.low %v1029_v26, %v1032_v28 }
  0x55   : > { %6356 = vmatpush3.bf16.msra.mxu0 %v7302_v15  ;;  %v1017_v15 = vrot.slane %v8039_v11, 5  ;;  %v349_v42 = vrot.slane %v347_v36, 5  ;;  %v374_v28 = vsel %vm8178_vm5, %v7987_v48, %v7937_v21  ;;  %v384_v36 = vsel %vm8178_vm5, %v7989_v49, %v383_v40 }
  0x56   : > { %6357 = vmatprep.subr.bf16.mxu0 %v7303_v23  ;;  %v9617_v21 = vshrl.u32 %v7960_v35, 16  ;;  %v9618_v40 = vshrl.u32 %v7965_v38, 16 }
  0x57   : > { %v1018_v4 = vsel %vm8065_vm2, %v7950_v30, %v1017_v15  ;;  %v8128_v30 = vcombine.low %v8008_v59, %v8015_v61  ;;  %v8132_v15 = vcombine.low %v8020_v0, %v8024_v1 }
  0x58   : > { %v401_v48 = vrot.slane %v9617_v21, 4  ;;  %v412_v49 = vrot.slane %v9618_v40, 4  ;;  %v9620_v21 = vshrl.u32 %v7968_v39, 16  ;;  %v429_v40 = vshll.u32 %v8080_v62, 16 }
  0x59   : > { %6358 = vmatpush3.bf16.msra.mxu0 %v7303_v23  ;;  %v8056_v23 = vld [vmem:[%s7898_s26 + $0x70] sm:$0xf] }
  0x5a   : > { %6379 = vmatprep.subr.bf16.mxu0 %v7306_v32  ;;  %9607 = vst [vmem:[#allocation18_spill] sm:$0xff] %v8056_v23  ;;  %v8141_v2 = vcombine.low %v8029_v6, %v8056_v23 }
  0x5c   : > { %6360 = vmatmul.mubr.bf16.vlgmr.msra.gmra.mrb[0].mxu0 %v7982_v46 }
  0x5d   : > { %6380 = vmatpush3.bf16.msra.mxu0 %v7306_v32  ;;  %6363 = vmatprep.mubr.bf16.mxu0 %v7993_v50  ;;  %v7314_v32 = vld [vmem:[%s9565_s1 + $0xa0] sm:$0xff]  }
  0x5e   : > { %6381 = vmatprep.subr.bf16.mxu0 %v7307_v47 }
  0x61   : > { %6382 = vmatpush3.bf16.msra.mxu0 %v7307_v47 }
  0x62   : > { %6383 = vmatprep.subr.bf16.mxu0 %v7310_v60 }
  0x64   : > { %6364 = vmatmul.mubr.bf16.gmra.mrb[4].mxu0 %v8033_v7 }
  0x65   : > { %6384 = vmatpush3.bf16.msra.mxu0 %v7310_v60  ;;  %6367 = vmatprep.mubr.bf16.mxu0 %v8050_v20  ;;  %v1015_v60 = vsel %vm8065_vm2, %v5641_v29, %v1014_v17  ;;  %v8117_v17 = vcombine.low %v7998_v53, %v8002_v55  ;;  %v1022_v29 = vsel %vm8065_vm2, %v5642_v14, %v1021_v19  ;;  %v343_v19 = vrot.slane %v341_v27, 5  ;;  %v7318_v27 = vld [vmem:[%s9565_s1 + $0xb0] sm:$0xff]  }
  0x66   : > { %6385 = vmatprep.subr.bf16.mxu0 %v7312_v12  ;;  %v8145_v14 = vcombine.low %v1015_v60, %v1018_v4  ;;  %v8149_v37 = vcombine.low %v1022_v29, %v1025_v33  ;;  %v1036_v60 = vsel %vm8065_vm2, %v5644_v51, %v1035_v54  ;;  %v353_v51 = vrot.slane %v9612_v3, 4 }
  0x67   : > { %v344_v18 = vor.u32 %v343_v19, %v340_v41  ;;  %v8176_v33 = vcombine.low %v1036_v60, %v1039_v56  ;;  %v357_v19 = vshll.u32 %v8039_v11, 16  ;;  %v9615_v3 = vshrl.u32 %v7953_v31, 16  ;;  %v7321_v11 = vld [vmem:[%s9565_s1 + $0xb8] sm:$0xff]  }
  0x68   : > { %v354_v58 = vor.u32 %v353_v51, %v349_v42  ;;  %v9616_v60 = vshll.u32 %v7953_v31, 16  ;;  %v395_v56 = vshll.u32 %v7960_v35, 16  ;;  %v425_v4 = vrot.slane %v9620_v21, 4 }
  0x69   : > { %6386 = vmatpush3.bf16.msra.mxu0 %v7312_v12  ;;  %v345_v29 = vrot.slane %v344_v18, 4  ;;  %v388_v41 = vrot.slane %v9615_v3, 4  ;;  %v359_v26 = vrot.slane %v357_v19, 5  ;;  %v9619_v3 = vshll.u32 %v7965_v38, 16 }
  0x6a   : > { %6387 = vmatprep.subr.bf16.mxu0 %v7314_v32  ;;  %v391_v18 = vrot.slane %v9616_v60, 5  ;;  %v355_v51 = vrot.slane %v354_v58, 4  ;;  %v397_v19 = vrot.slane %v395_v56, 5  ;;  %v9622_v21 = vshll.u32 %v7975_v44, 16 }
  0x6c   : > { %6368 = vmatmul.mubr.bf16.gmra.mrb[8].mxu0 %v8113_v43  ;;  %v360_v58 = vsel %vm8178_vm5, %v355_v51, %v359_v26  ;;  %v431_v26 = vrot.slane %v429_v40, 5  ;;  %v9621_v51 = vshrl.u32 %v7975_v44, 16  ;;  %v439_v54 = vrot.slane %v9622_v21, 5 }
  0x6d   : > { %6388 = vmatpush3.bf16.msra.mxu0 %v7314_v32  ;;  %6371 = vmatprep.mubr.bf16.mxu0 %v8117_v17  ;;  %v350_v32 = vsel %vm8178_vm5, %v345_v29, %v349_v42  ;;  %v405_v29 = vshll.u32 %v8071_v13, 16  ;;  %v392_v42 = vor.u32 %v391_v18, %v388_v41  ;;  %v8220_v41 = vld [vmem:[%s9565_s1 + $0xc0] sm:$0xff]   ;;  %v9626_v21 = vshll.u32 %v7998_v53, 16 }
  0x6e   : > { %6389 = vmatprep.subr.bf16.mxu0 %v7317_v63  ;;  %v8222_v18 = vcombine.low %v350_v32, %v360_v58  ;;  %v443_v32 = vshll.u32 %v7978_v45, 16  ;;  %v8236_v58 = vld [vmem:[%s7898_s26 + $0x50] sm:$0x1] }
  0x6f   : > { %v407_v60 = vrot.slane %v405_v29, 5  ;;  %v393_v56 = vrot.slane %v392_v42, 4  ;;  %v436_v29 = vrot.slane %v9621_v51, 4  ;;  %9624 = vst [vmem:[#allocation21_spill] sm:$0xff] %v8236_v58 }
  0x71   : > { %6390 = vmatpush3.bf16.msra.mxu0 %v7317_v63  ;;  %v8197_v63 = vcombine.low %v374_v28, %v384_v36  ;;  %v415_v28 = vrot.slane %v9619_v3, 5  ;;  %v419_v36 = vshll.u32 %v7968_v39, 16  ;;  %v402_v3 = vor.u32 %v401_v48, %v397_v19 }
  0x72   : > { %6391 = vmatprep.subr.bf16.mxu0 %v7318_v27  ;;  %v398_v57 = vsel %vm8178_vm5, %v393_v56, %v397_v19  ;;  %v440_v48 = vor.u32 %v439_v54, %v436_v29  ;;  %v445_v56 = vrot.slane %v443_v32, 5 }
  0x73   : > { %v421_v24 = vrot.slane %v419_v36, 5  ;;  %v403_v12 = vrot.slane %v402_v3, 4  ;;  %v453_v36 = vshll.u32 %v8124_v34, 16 }
  0x74   : > { %6372 = vmatmul.mubr.bf16.gmra.mrb[12].mxu0 %v8128_v30 }
  0x75   : > { %6375 = vmatprep.mubr.bf16.mxu0 %v8132_v15  ;;  %6392 = vmatpush3.bf16.msra.mxu0 %v7318_v27  ;;  %v416_v27 = vor.u32 %v415_v28, %v412_v49  ;;  %v426_v42 = vor.u32 %v425_v4, %v421_v24  ;;  %v9623_v49 = vshrl.u32 %v7978_v45, 16  ;;  %v408_v40 = vsel %vm8178_vm5, %v403_v12, %v407_v60 }
  0x76   : > { %6393 = vmatprep.subr.bf16.mxu0 %v7321_v11  ;;  %v8244_v54 = vcombine.low %v398_v57, %v408_v40  ;;  %v455_v51 = vrot.slane %v453_v36, 5  ;;  %v467_v12 = vshll.u32 %v8002_v55, 16  ;;  %v9628_v60 = vcombine.low %v8093_v52, %v8105_v5 }
  0x77   : > { %v417_v62 = vrot.slane %v416_v27, 4  ;;  %v449_v28 = vrot.slane %v9623_v49, 4  ;;  %v427_v3 = vrot.slane %v426_v42, 4  ;;  %v441_v27 = vrot.slane %v440_v48, 4 }
  0x78   : > { %v463_v49 = vrot.slane %v9626_v21, 5  ;;  %v477_v42 = vshll.u32 %v8236_v58, 16  ;;  %v9629_v48 = vshrl.u32 %v8008_v59, 16  ;;  %v469_v21 = vrot.slane %v467_v12, 5 }
  0x79   : > { %6394 = vmatpush3.bf16.msra.mxu0 %v7321_v11  ;;  %v422_v19 = vsel %vm8178_vm5, %v417_v62, %v421_v24  ;;  %v9625_v11 = vshrl.u32 %v7998_v53, 16  ;;  %v450_v29 = vor.u32 %v449_v28, %v445_v56  ;;  %v9627_v62 = vshrl.u32 %v8002_v55, 16 }
  0x7a   : > { %6415 = vmatprep.subr.bf16.mxu0 %v8220_v41  ;;  %v432_v57 = vsel %vm8178_vm5, %v427_v3, %v431_v26  ;;  %v446_v32 = vsel %vm8178_vm5, %v441_v27, %v445_v56  ;;  %v484_v28 = vrot.slane %v9629_v48, 4  ;;  %v479_v52 = vrot.slane %v477_v42, 5 }
  0x7b   : > { %v460_v4 = vrot.slane %v9625_v11, 4  ;;  %v473_v24 = vrot.slane %v9627_v62, 4  ;;  %v8262_v36 = vcombine.low %v422_v19, %v432_v57  ;;  %v451_v40 = vrot.slane %v450_v29, 4  ;;  %v8265_v62 = vld [vmem:[%s7898_s26 + $0x5c] sm:$0x1] }
  0x7c   : > { %6376 = vmatmul.mubr.bf16.gmra.mrb[16].mxu0 %v8141_v2  ;;  %9630 = vst [vmem:[#allocation22_spill] sm:$0xff] %v8265_v62  ;;  %v9631_v5 = vshll.u32 %v8008_v59, 16  ;;  %v491_v3 = vshll.u32 %v8015_v61, 16  ;;  %v9632_v56 = vshrl.u32 %v8015_v61, 16  ;;  %v501_v29 = vshll.u32 %v8265_v62, 16 }
  0x7d   : > { %6395 = vmatprep.mubr.bf16.mxu0 %v9628_v60  ;;  %v464_v11 = vor.u32 %v463_v49, %v460_v4  ;;  %v456_v60 = vsel %vm8178_vm5, %v451_v40, %v455_v51  ;;  %v474_v19 = vor.u32 %v473_v24, %v469_v21  ;;  %v8276_v4 = vld [vmem:[%s7898_s26 + $0x68] sm:$0x1]  ;;  %v9634_v42 = vshrl.u32 %v8020_v0, 16 }
  0x7e   : > { %v487_v26 = vrot.slane %v9631_v5, 5  ;;  %v497_v27 = vrot.slane %v9632_v56, 4  ;;  %9633 = vst [vmem:[#allocation23_spill] sm:$0xff] %v8276_v4  ;;  %v8278_v49 = vcombine.low %v446_v32, %v456_v60  ;;  %v493_v57 = vrot.slane %v491_v3, 5  ;;  %v7323_v56 = vld [vmem:[%s9565_s1 + $0xc8] sm:$0xff]  }
  0x7f   : > { %v465_v48 = vrot.slane %v464_v11, 4  ;;  %v508_v5 = vrot.slane %v9634_v42, 4  ;;  %v475_v24 = vrot.slane %v474_v19, 4  ;;  %v503_v40 = vrot.slane %v501_v29, 5  ;;  %v7324_v42 = vld [vmem:[%s9565_s1 + $0xd0] sm:$0xff]  }
  0x80   : > { %v488_v12 = vor.u32 %v487_v26, %v484_v28  ;;  %v9635_v11 = vshll.u32 %v8020_v0, 16  ;;  %v498_v60 = vor.u32 %v497_v27, %v493_v57  ;;  %v515_v28 = vshll.u32 %v8024_v1, 16 }
  0x81   : > { %v470_v51 = vsel %vm8178_vm5, %v465_v48, %v469_v21  ;;  %v9636_v26 = vshrl.u32 %v8024_v1, 16  ;;  %v480_v21 = vsel %vm8178_vm5, %v475_v24, %v479_v52  ;;  %v525_v19 = vshll.u32 %v8276_v4, 16 }
  0x82   : > { %v511_v39 = vrot.slane %v9635_v11, 5  ;;  %v489_v32 = vrot.slane %v488_v12, 4  ;;  %v9637_v29 = vshrl.u32 %v8029_v6, 16  ;;  %v8304_v12 = vld [vmem:[%s7898_s26 + $0x74] sm:$0x1]  ;;  %v8306_v11 = vcombine.low %v470_v51, %v480_v21 }
  0x83   : > { %v521_v3 = vrot.slane %v9636_v26, 4  ;;  %9638 = vst [vmem:[#allocation24_spill] sm:$0xff] %v8304_v12  ;;  %v499_v38 = vrot.slane %v498_v60, 4  ;;  %v517_v22 = vrot.slane %v515_v28, 5  ;;  %v527_v52 = vrot.slane %v525_v19, 5 }
  0x84   : > { %6396 = vmatmul.mubr.bf16.vlgmr.msra.gmra.mrb[0].mxu0 %v8145_v14  ;;  %v512_v48 = vor.u32 %v511_v39, %v508_v5  ;;  %v532_v27 = vrot.slane %v9637_v29, 4  ;;  %v494_v26 = vsel %vm8178_vm5, %v489_v32, %v493_v57  ;;  %v9639_v5 = vshll.u32 %v8029_v6, 16 }
  0x85   : > { %6416 = vmatpush3.bf16.msra.mxu0 %v8220_v41  ;;  %6399 = vmatprep.mubr.bf16.mxu0 %v8149_v37  ;;  %v539_v29 = vshll.u32 %v8056_v23, 16  ;;  %v504_v41 = vsel %vm8178_vm5, %v499_v38, %v503_v40  ;;  %v522_v13 = vor.u32 %v521_v3, %v517_v22  ;;  %v9640_v51 = vshrl.u32 %v8056_v23, 16 }
  0x86   : > { %6417 = vmatprep.subr.bf16.mxu0 %v7323_v56  ;;  %v513_v39 = vrot.slane %v512_v48, 4  ;;  %v535_v24 = vrot.slane %v9639_v5, 5  ;;  %v549_v10 = vshll.u32 %v8304_v12, 16  ;;  %v8318_v57 = vcombine.low %v494_v26, %v504_v41  ;;  %v7325_v26 = vld [vmem:[%s9565_s1 + $0xd8] sm:$0xff]  }
  0x87   : > { %v545_v21 = vrot.slane %v9640_v51, 4  ;;  %v541_v28 = vrot.slane %v539_v29, 5  ;;  %v9641_v48 = vrot.slane %v7978_v45, 5  ;;  %v9642_v5 = vrot.slane %v8002_v55, 5 }
  0x88   : > { %v518_v32 = vsel %vm8178_vm5, %v513_v39, %v517_v22  ;;  %v536_v60 = vor.u32 %v535_v24, %v532_v27  ;;  %v1052_v40 = vrot.slane %v8236_v58, 5  ;;  %v523_v3 = vrot.slane %v522_v13, 4  ;;  %v7326_v13 = vld [vmem:[%s9565_s1 + $0xe0] sm:$0xff]  }
  0x89   : > { %6418 = vmatpush3.bf16.msra.mxu0 %v7323_v56  ;;  %v1044_v19 = vrot.slane %v9641_v48, 4  ;;  %v1051_v38 = vrot.slane %v9642_v5, 4  ;;  %v1059_v41 = vrot.slane %v8265_v62, 5  ;;  %v546_v27 = vor.u32 %v545_v21, %v541_v28 }
  0x8a   : > { %6419 = vmatprep.subr.bf16.mxu0 %v7324_v42  ;;  %v537_v22 = vrot.slane %v536_v60, 4  ;;  %v551_v39 = vrot.slane %v549_v10, 5  ;;  %v9643_v56 = vrot.slane %v8015_v61, 5  ;;  %v5648_v29 = vrot.slane %v8020_v0, 9 }
  0x8b   : > { %v528_v51 = vsel %vm8178_vm5, %v523_v3, %v527_v52  ;;  %v1063_v48 = vrot.slane %v8024_v1, 5  ;;  %v547_v21 = vrot.slane %v546_v27, 4  ;;  %v9644_v60 = vrot.slane %v7978_v45, 5 }
  0x8c   : > { %v1058_v24 = vrot.slane %v9643_v56, 4  ;;  %6400 = vmatmul.mubr.bf16.gmra.mrb[4].mxu0 %v8174_v25  ;;  %v8341_v5 = vcombine.low %v518_v32, %v528_v51  ;;  %v542_v10 = vsel %vm8178_vm5, %v537_v22, %v541_v28  ;;  %v9645_v52 = vrot.slane %v7975_v44, 9 }
  0x8d   : > { %6420 = vmatpush3.bf16.msra.mxu0 %v7324_v42  ;;  %6403 = vmatprep.mubr.bf16.mxu0 %v8176_v33  ;;  %v9646_v56 = vrot.slane %v8124_v34, 5  ;;  %v1066_v51 = vrot.slane %v8276_v4, 5  ;;  %v5649_v28 = vrot.slane %v8029_v6, 9  ;;  %v9647_v42 = vrot.slane %v8002_v55, 5  ;;  %v7327_v4 = vld [vmem:[%s9565_s1 + $0xe8] sm:$0xff]  }
  0x8e   : > { %v1043_v3 = vsel %vm8065_vm2, %v9645_v52, %v9644_v60  ;;  %6421 = vmatprep.subr.bf16.mxu0 %v7325_v26  ;;  %v9648_v22 = vrot.slane %v7998_v53, 9  ;;  %v1053_v60 = vsel %vm8065_vm2, %v1051_v38, %v1052_v40  ;;  %v1065_v1 = vrot.slane %v1063_v48, 4  ;;  %v8379_v38 = vld [vmem:[%s7898_s26 + $0x78] sm:$0xf] }
  0x8f   : > { %v1046_v32 = vsel %vm8065_vm2, %v1044_v19, %v9646_v56  ;;  %v552_v19 = vsel %vm8178_vm5, %v547_v21, %v551_v39  ;;  %v1070_v0 = vrot.slane %v8056_v23, 5  ;;  %v9649_v40 = vrot.slane %v8015_v61, 5 }
  0x90   : > { %v1050_v27 = vsel %vm8065_vm2, %v9648_v22, %v9647_v42  ;;  %v8368_v52 = vcombine.low %v542_v10, %v552_v19  ;;  %v8370_v56 = vcombine.low %v1043_v3, %v1046_v32  ;;  %v9650_v39 = vrot.slane %v8008_v59, 9  ;;  %v8394_v3 = vld [vmem:[%s7898_s26 + $0x7c] sm:$0xf]  ;;  %v8397_v32 = vld [vmem:[%s7898_s26 + $0x80] sm:$0x1] }
  0x91   : > { %6422 = vmatpush3.bf16.msra.mxu0 %v7325_v26  ;;  %v8376_v42 = vcombine.low %v1050_v27, %v1053_v60  ;;  %v1060_v21 = vsel %vm8065_vm2, %v1058_v24, %v1059_v41  ;;  %v7328_v26 = vld [vmem:[%s9565_s1 + $0xf0] sm:$0xff]   ;;  %v1073_v22 = vrot.slane %v8304_v12, 5  ;;  %v5734_v27 = vrot.slane %v8379_v38, 9  ;;  %v7329_v12 = vld [vmem:[%s9565_s1 + $0xf8] sm:$0xff]  }
  0x92   : > { %6423 = vmatprep.subr.bf16.mxu0 %v7326_v13  ;;  %v1057_v10 = vsel %vm8065_vm2, %v9650_v39, %v9649_v40  ;;  %v1746_v60 = vrot.slane %v8394_v3, 5  ;;  %v1749_v19 = vrot.slane %v8397_v32, 5  ;;  %v1064_v41 = vsel %vm8065_vm2, %v5648_v29, %v1063_v48 }
  0x93   : > { %v1067_v24 = vsel %vm8065_vm2, %v1065_v1, %v1066_v51  ;;  %v1072_v40 = vrot.slane %v1070_v0, 4  ;;  %v8410_v23 = vcombine.low %v1057_v10, %v1060_v21  ;;  %v1071_v1 = vsel %vm8065_vm2, %v5649_v28, %v1070_v0  ;;  %v7331_v0 = vld [vmem:[%s9565_s1 + $0x108] sm:$0xff]   ;;  %v7332_v28 = vld [vmem:[%s9565_s1 + $0x110] sm:$0xff]  }
  0x94   : > { %6404 = vmatmul.mubr.bf16.gmra.mrb[8].mxu0 %v8370_v56  ;;  %v1748_v39 = vrot.slane %v1746_v60, 4  ;;  %v8415_v6 = vcombine.low %v1064_v41, %v1067_v24  ;;  %v7335_v21 = vld [vmem:[%s9565_s1 + $0x128] sm:$0xff]  }
  0x95   : > { %6424 = vmatpush3.bf16.msra.mxu0 %v7326_v13  ;;  %6407 = vmatprep.mubr.bf16.mxu0 %v8376_v42  ;;  %v1747_v13 = vsel %vm8065_vm2, %v5734_v27, %v1746_v60  ;;  %v1074_v51 = vsel %vm8065_vm2, %v1072_v40, %v1073_v22  ;;  %v7338_v22 = vld [vmem:[%s9565_s1 + $0x138] sm:$0xff]   ;;  %v7339_v27 = vld [vmem:[%s9565_s1 + $0x140] sm:$0xff]   ;;  %v8468_v60 = vcombine.low %v8379_v38, %v8394_v3  ;;  %v7340_v41 = vld [vmem:[%s9565_s1 + $0x148] sm:$0xff]  }
  0x96   : > { %6425 = vmatprep.subr.bf16.mxu0 %v7327_v4  ;;  %v1750_v29 = vsel %vm8065_vm2, %v1748_v39, %v1749_v19  ;;  %v8430_v10 = vcombine.low %v1071_v1, %v1074_v51  ;;  %v7366_v19 = vld [vmem:[%s9565_s1 + $0x40] sm:$0xff]   ;;  %v7367_v24 = vld [vmem:[%s9565_s1 + $0x48] sm:$0xff]   ;;  %v7369_v40 = vld [vmem:[%s9565_s1 + $0x50] sm:$0xff]   ;;  %v1518_v1 = vshrl.u32 %v8379_v38, 16  ;;  %v1521_v51 = vshll.u32 %v8379_v38, 16 }
  0x97   : > { %v8419_v48 = vcombine.low %v1747_v13, %v1750_v29  ;;  %6307 = vmatprep.subr.bf16.mxu1 %v7366_v19  ;;  %v7341_v13 = vld [vmem:[%s9565_s1 + $0x150] sm:$0xff]   ;;  %v7342_v39 = vld [vmem:[%s9565_s1 + $0x158] sm:$0xff]  }
  0x98   : > { %6308 = vmatpush3.bf16.msra.mxu1 %v7366_v19  ;;  %v7371_v29 = vld [vmem:[%s9565_s1 + $0x58] sm:$0xff]   ;;  %v1520_v38 = vrot.slane %v1518_v1, 4  ;;  %v1537_v1 = vshll.u32 %v8397_v32, 16  ;;  %v333_v32 = vshll.u32 %v8036_v8, 16 }
  0x99   : > { %6426 = vmatpush3.bf16.msra.mxu0 %v7327_v4  ;;  %v7330_v4 = vld [vmem:[%s9565_s1 + $0x100] sm:$0xff]   ;;  %6309 = vmatprep.subr.bf16.mxu1 %v7367_v24 }
  0x9a   : > { %6427 = vmatprep.subr.bf16.mxu0 %v7328_v26  ;;  %v1539_v58 = vrot.slane %v1537_v1, 5 }
  0x9c   : > { %6408 = vmatmul.mubr.bf16.gmra.mrb[12].mxu0 %v8410_v23  ;;  %6310 = vmatpush3.bf16.msra.mxu1 %v7367_v24  ;;  %v7461_v24 = vld [vmem:[%s7898_s26 + $0x4] sm:$0xf] }
  0x9d   : > { %6411 = vmatprep.mubr.bf16.mxu0 %v8415_v6  ;;  %6428 = vmatpush3.bf16.msra.mxu0 %v7328_v26  ;;  %v7336_v26 = vld [vmem:[%s9565_s1 + $0x130] sm:$0xff]  }
  0x9e   : > { %6429 = vmatprep.subr.bf16.mxu0 %v7329_v12  ;;  %6311 = vmatprep.subr.bf16.mxu1 %v7369_v40 }
  0xa0   : > { %6312 = vmatpush3.bf16.msra.mxu1 %v7369_v40  ;;  %v327_v40 = vshrl.u32 %v7461_v24, 16 }
  0xa1   : > { %6430 = vmatpush3.bf16.msra.mxu0 %v7329_v12  ;;  %v7334_v12 = vld [vmem:[%s9565_s1 + $0x120] sm:$0xff]   ;;  %6313 = vmatprep.subr.bf16.mxu1 %v7371_v29 }
  0xa2   : > { %6451 = vmatprep.subr.bf16.mxu0 %v7330_v4 }
  0xa4   : > { %6412 = vmatmul.mubr.bf16.gmra.mrb[16].mxu0 %v8430_v10  ;;  %6314 = vmatpush3.bf16.msra.mxu1 %v7371_v29 }
  0xa5   : > { %6431 = vmatprep.mubr.bf16.mxu0 %v7982_v46  ;;  %v7333_v46 = vld [vmem:[%s9565_s1 + $0x118] sm:$0xff]  }
  0xac   : > { %6432 = vmatmul.mubr.bf16.vlgmr.msra.gmra.mrb[0].mxu0 %v7993_v50 }
  0xad   : > { %6452 = vmatpush3.bf16.msra.mxu0 %v7330_v4  ;;  %6435 = vmatprep.mubr.bf16.mxu0 %v8033_v7  ;;  %v1531_v4 = vshrl.u32 %v8394_v3, 16 }
  0xae   : > { %6453 = vmatprep.subr.bf16.mxu0 %v7331_v0 }
  0xb1   : > { %6454 = vmatpush3.bf16.msra.mxu0 %v7331_v0  ;;  %v1527_v0 = vshll.u32 %v8394_v3, 16  ;;  %v7344_v3 = vld [vmem:[%s9565_s1 + $0x168] sm:$0xff]  }
  0xb2   : > { %6455 = vmatprep.subr.bf16.mxu0 %v7332_v28 }
  0xb4   : > { %6436 = vmatmul.mubr.bf16.gmra.mrb[4].mxu0 %v8050_v20 }
  0xb5   : > { %6456 = vmatpush3.bf16.msra.mxu0 %v7332_v28  ;;  %6439 = vmatprep.mubr.bf16.mxu0 %v8113_v43  ;;  %v7373_v28 = vld [vmem:[%s9565_s1 + $0x60] sm:$0xff]  }
  0xb6   : > { %6457 = vmatprep.subr.bf16.mxu0 %v7333_v46  ;;  %6315 = vmatprep.subr.bf16.mxu1 %v7373_v28 }
  0xb7   : > { %6316 = vmatpush3.bf16.msra.mxu1 %v7373_v28 }
  0xb9   : > { %6458 = vmatpush3.bf16.msra.mxu0 %v7333_v46  ;;  %v7343_v46 = vld [vmem:[%s9565_s1 + $0x160] sm:$0xff]  }
  0xba   : > { %6459 = vmatprep.subr.bf16.mxu0 %v7334_v12 }
  0xbc   : > { %6440 = vmatmul.mubr.bf16.gmra.mrb[8].mxu0 %v8117_v17 }
  0xbd   : > { %6460 = vmatpush3.bf16.msra.mxu0 %v7334_v12  ;;  %6443 = vmatprep.mubr.bf16.mxu0 %v8128_v30  ;;  %v1523_v12 = vrot.slane %v1521_v51, 5  ;;  %v323_v51 = vshll.u32 %v7461_v24, 16  ;;  %v7346_v24 = vld [vmem:[%s9565_s1 + $0x178] sm:$0xff]  }
  0xbe   : > { %6461 = vmatprep.subr.bf16.mxu0 %v7335_v21 }
  0xc1   : > { %6462 = vmatpush3.bf16.msra.mxu0 %v7335_v21  ;;  %v1529_v21 = vrot.slane %v1527_v0, 5 }
  0xc2   : > { %6463 = vmatprep.subr.bf16.mxu0 %v7336_v26 }
  0xc4   : > { %6444 = vmatmul.mubr.bf16.gmra.mrb[12].mxu0 %v8132_v15 }
  0xc5   : > { %6447 = vmatprep.mubr.bf16.mxu0 %v8141_v2  ;;  %6464 = vmatpush3.bf16.msra.mxu0 %v7336_v26  ;;  %v1533_v26 = vrot.slane %v1531_v4, 4  ;;  %v7345_v4 = vld [vmem:[%s9565_s1 + $0x170] sm:$0xff]  }
  0xc6   : > { %6465 = vmatprep.subr.bf16.mxu0 %v7338_v22 }
  0xc7   : > { %v1534_v29 = vor.u32 %v1533_v26, %v1529_v21 }
  0xc9   : > { %6466 = vmatpush3.bf16.msra.mxu0 %v7338_v22  ;;  %v7460_v22 = vld [vmem:[%s7898_s26] sm:$0xf] }
  0xca   : > { %6487 = vmatprep.subr.bf16.mxu0 %v7339_v27  ;;  %v317_v19 = vshll.u32 %v7460_v22, 16 }
  0xcc   : > { %6448 = vmatmul.mubr.bf16.gmra.mrb[16].mxu0 %v8468_v60  ;;  %v319_v28 = vrot.slane %v317_v19, 5 }
  0xcd   : > { %6467 = vmatprep.mubr.bf16.mxu0 %v8222_v18 }
  0xd4   : > { %6468 = vmatmul.mubr.bf16.vlgmr.msra.gmra.mrb[0].mxu0 %v8197_v63 }
  0xd5   : > { %6488 = vmatpush3.bf16.msra.mxu0 %v7339_v27  ;;  %6471 = vmatprep.mubr.bf16.mxu0 %v8244_v54  ;;  %v314_v27 = vshrl.u32 %v7460_v22, 16  ;;  %v329_v22 = vrot.slane %v327_v40, 4 }
  0xd6   : > { %6489 = vmatprep.subr.bf16.mxu0 %v7340_v41 }
  0xd7   : > { %v316_v0 = vrot.slane %v314_v27, 4  ;;  %v7378_v27 = vld [vmem:[%s9565_s1 + $0x78] sm:$0xff]  }
  0xd9   : > { %6490 = vmatpush3.bf16.msra.mxu0 %v7340_v41  ;;  %v7375_v41 = vld [vmem:[%s9565_s1 + $0x68] sm:$0xff]   ;;  %v320_v26 = vor.u32 %v319_v28, %v316_v0  ;;  %v7354_v0 = vld [vmem:[%s9565_s1 + $0x1b8] sm:$0xff]   ;;  %v7355_v28 = vld [vmem:[%s9565_s1 + $0x1c0] sm:$0xff]  }
  0xda   : > { %6491 = vmatprep.subr.bf16.mxu0 %v7341_v13  ;;  %6317 = vmatprep.subr.bf16.mxu1 %v7375_v41 }
  0xdb   : > { %6318 = vmatpush3.bf16.msra.mxu1 %v7375_v41  ;;  %v321_v19 = vrot.slane %v320_v26, 4  ;;  %v335_v41 = vrot.slane %v333_v32, 5 }
  0xdc   : > { %6472 = vmatmul.mubr.bf16.gmra.mrb[4].mxu0 %v8262_v36 }
  0xdd   : > { %6492 = vmatpush3.bf16.msra.mxu0 %v7341_v13  ;;  %6475 = vmatprep.mubr.bf16.mxu0 %v8278_v49  ;;  %v1524_v13 = vor.u32 %v1523_v12, %v1520_v38  ;;  %v325_v12 = vrot.slane %v323_v51, 5  ;;  %v7352_v51 = vld [vmem:[%s9565_s1 + $0x1a8] sm:$0xff]  }
  0xde   : > { %6493 = vmatprep.subr.bf16.mxu0 %v7342_v39 }
  0xdf   : > { %v1525_v38 = vrot.slane %v1524_v13, 4  ;;  %v330_v62 = vor.u32 %v329_v22, %v325_v12  ;;  %v326_v13 = vsel %vm8178_vm5, %v321_v19, %v325_v12  ;;  %v7357_v12 = vld [vmem:[%s9565_s1 + $0x1d0] sm:$0xff]   ;;  %v8629_v22 = vld [vmem:[%s7898_s26 + $0x88] sm:$0xf] }
  0xe0   : > { %v2167_v32 = vshll.u32 %v8629_v22, 16 }
  0xe1   : > { %6494 = vmatpush3.bf16.msra.mxu0 %v7342_v39  ;;  %v7376_v39 = vld [vmem:[%s9565_s1 + $0x70] sm:$0xff]   ;;  %v1530_v8 = vsel %vm8178_vm5, %v1525_v38, %v1529_v21  ;;  %v7351_v21 = vld [vmem:[%s9565_s1 + $0x1a0] sm:$0xff]   ;;  %v7356_v38 = vld [vmem:[%s9565_s1 + $0x1c8] sm:$0xff]  }
  0xe2   : > { %6495 = vmatprep.subr.bf16.mxu0 %v7343_v46  ;;  %6319 = vmatprep.subr.bf16.mxu1 %v7376_v39  ;;  %v2169_v19 = vrot.slane %v2167_v32, 5 }
  0xe3   : > { %6320 = vmatpush3.bf16.msra.mxu1 %v7376_v39  ;;  %v7347_v39 = vld [vmem:[%s9565_s1 + $0x180] sm:$0xff]  }
  0xe4   : > { %6476 = vmatmul.mubr.bf16.gmra.mrb[8].mxu0 %v8306_v11  ;;  %6321 = vmatprep.subr.bf16.mxu1 %v7378_v27 }
  0xe5   : > { %6496 = vmatpush3.bf16.msra.mxu0 %v7343_v46  ;;  %6479 = vmatprep.mubr.bf16.mxu0 %v8318_v57  ;;  %v1535_v46 = vrot.slane %v1534_v29, 4 }
  0xe6   : > { %6497 = vmatprep.subr.bf16.mxu0 %v7344_v3 }
  0xe7   : > { %v1540_v40 = vsel %vm8178_vm5, %v1535_v46, %v1539_v58  ;;  %6322 = vmatpush3.bf16.msra.mxu1 %v7378_v27  ;;  %v7348_v58 = vld [vmem:[%s9565_s1 + $0x188] sm:$0xff]  }
  0xe8   : > { %v8549_v1 = vcombine.low %v1530_v8, %v1540_v40  ;;  %v293_v8 = vld [vmem:[%s7898_s26 + $0x8c] sm:$0x1] }
  0xe9   : > { %6498 = vmatpush3.bf16.msra.mxu0 %v7344_v3  ;;  %v331_v3 = vrot.slane %v330_v62, 4 }
  0xea   : > { %6499 = vmatprep.subr.bf16.mxu0 %v7345_v4 }
  0xeb   : > { %v336_v62 = vsel %vm8178_vm5, %v331_v3, %v335_v41  ;;  %v7374_v3 = vld [vmem:[%s9565_s1 + $0x228] sm:$0xff]  }
  0xec   : > { %6480 = vmatmul.mubr.bf16.gmra.mrb[12].mxu0 %v8341_v5  ;;  %v5604_v29 = vcombine.low %v326_v13, %v336_v62  ;;  %v2177_v13 = vshll.u32 %v293_v8, 16 }
  0xed   : > { %6483 = vmatprep.mubr.bf16.mxu0 %v8368_v52  ;;  %6500 = vmatpush3.bf16.msra.mxu0 %v7345_v4  ;;  %v7353_v4 = vld [vmem:[%s9565_s1 + $0x1b0] sm:$0xff]  }
  0xee   : > { %6501 = vmatprep.subr.bf16.mxu0 %v7346_v24  ;;  %6323 = vmatprep.mubr.bf16.mxu1 %v5604_v29 }
  0xef   : > { %6324 = vmatmul.mubr.bf16.vlgmr.msra.gmra.mrb[0].mxu1 %v8222_v18  ;;  %v7349_v18 = vld [vmem:[%s9565_s1 + $0x190] sm:$0xff]  }
  0xf0   : > { %6327 = vmatprep.mubr.bf16.mxu1 %v8197_v63 }
  0xf1   : > { %6502 = vmatpush3.bf16.msra.mxu0 %v7346_v24  ;;  %v7372_v24 = vld [vmem:[%s9565_s1 + $0x220] sm:$0xff]  }
  0xf2   : > { %6523 = vmatprep.subr.bf16.mxu0 %v7347_v39 }
  0xf4   : > { %6484 = vmatmul.mubr.bf16.gmra.mrb[16].mxu0 %v8549_v1 }
  0xf5   : > { %6503 = vmatprep.mubr.bf16.mxu0 %v8145_v14  ;;  %v7350_v14 = vld [vmem:[%s9565_s1 + $0x198] sm:$0xff]  }
  0xf7   : > { %6328 = vmatmul.mubr.bf16.gmra.mrb[4].mxu1 %v8244_v54 }
  0xf8   : > { %6331 = vmatprep.mubr.bf16.mxu1 %v8262_v36 }
  0xfc   : > { %6504 = vmatmul.mubr.bf16.vlgmr.msra.gmra.mrb[0].mxu0 %v8149_v37 }
  0xfd   : > { %6524 = vmatpush3.bf16.msra.mxu0 %v7347_v39  ;;  %6507 = vmatprep.mubr.bf16.mxu0 %v8174_v25  ;;  %v7377_v39 = vld [vmem:[%s9565_s1 + $0x230] sm:$0xff]  }
  0xfe   : > { %6525 = vmatprep.subr.bf16.mxu0 %v7348_v58 }
  0xff   : > { %6332 = vmatmul.mubr.bf16.gmra.mrb[8].mxu1 %v8278_v49 }
 0x100   : > { %6335 = vmatprep.mubr.bf16.mxu1 %v8306_v11 }
 0x101   : > { %6526 = vmatpush3.bf16.msra.mxu0 %v7348_v58  ;;  %v2179_v58 = vrot.slane %v2177_v13, 5 }
 0x102   : > { %6527 = vmatprep.subr.bf16.mxu0 %v7349_v18 }
 0x104   : > { %6508 = vmatmul.mubr.bf16.gmra.mrb[4].mxu0 %v8176_v33 }
 0x105   : > { %6528 = vmatpush3.bf16.msra.mxu0 %v7349_v18  ;;  %6511 = vmatprep.mubr.bf16.mxu0 %v8370_v56 }
 0x106   : > { %6529 = vmatprep.subr.bf16.mxu0 %v7350_v14 }
 0x107   : > { %6336 = vmatmul.mubr.bf16.gmra.mrb[12].mxu1 %v8318_v57 }
 0x108   : > { %6339 = vmatprep.mubr.bf16.mxu1 %v8341_v5 }
 0x109   : > { %6530 = vmatpush3.bf16.msra.mxu0 %v7350_v14 }
 0x10a   : > { %6531 = vmatprep.subr.bf16.mxu0 %v7351_v21 }
 0x10c   : > { %6512 = vmatmul.mubr.bf16.gmra.mrb[8].mxu0 %v8376_v42 }
 0x10d   : > { %6532 = vmatpush3.bf16.msra.mxu0 %v7351_v21  ;;  %6515 = vmatprep.mubr.bf16.mxu0 %v8410_v23 }
 0x10e   : > { %6533 = vmatprep.subr.bf16.mxu0 %v7352_v51 }
 0x10f   : > { %6340 = vmatmul.mubr.bf16.gmra.mrb[16].mxu1 %v8368_v52 }
 0x111   : > { %6534 = vmatpush3.bf16.msra.mxu0 %v7352_v51  ;;  %v2389_v51 = vrot.slane %v293_v8, 5 }
 0x112   : > { %6535 = vmatprep.subr.bf16.mxu0 %v7353_v4 }
 0x114   : > { %6516 = vmatmul.mubr.bf16.gmra.mrb[12].mxu0 %v8415_v6 }
 0x115   : > { %6519 = vmatprep.mubr.bf16.mxu0 %v8430_v10  ;;  %6536 = vmatpush3.bf16.msra.mxu0 %v7353_v4 }
 0x116   : > { %6537 = vmatprep.subr.bf16.mxu0 %v7354_v0 }
 0x119   : > { %6538 = vmatpush3.bf16.msra.mxu0 %v7354_v0 }
 0x11a   : > { %6559 = vmatprep.subr.bf16.mxu0 %v7355_v28 }
 0x11c   : > { %6520 = vmatmul.mubr.bf16.gmra.mrb[16].mxu0 %v8419_v48 }
 0x11d   : > { %6539 = vmatprep.mubr.bf16.mxu0 %v7993_v50  ;;  %v7358_v50 = vld [vmem:[%s9565_s1 + $0x1d8] sm:$0xff]  }
 0x124   : > { %6540 = vmatmul.mubr.bf16.vlgmr.msra.gmra.mrb[0].mxu0 %v8033_v7  ;;  %v7359_v7 = vld [vmem:[%s9565_s1 + $0x1e0] sm:$0xff]  }
 0x125   : > { %6560 = vmatpush3.bf16.msra.mxu0 %v7355_v28  ;;  %6543 = vmatprep.mubr.bf16.mxu0 %v8050_v20  ;;  %v7360_v20 = vld [vmem:[%s9565_s1 + $0x1e8] sm:$0xff]  }
 0x126   : > { %6561 = vmatprep.subr.bf16.mxu0 %v7356_v38 }
 0x129   : > { %6562 = vmatpush3.bf16.msra.mxu0 %v7356_v38 }
 0x12a   : > { %6563 = vmatprep.subr.bf16.mxu0 %v7357_v12 }
 0x12c   : > { %6544 = vmatmul.mubr.bf16.gmra.mrb[4].mxu0 %v8113_v43  ;;  %v7361_v43 = vld [vmem:[%s9565_s1 + $0x1f0] sm:$0xff]  }
 0x12d   : > { %6564 = vmatpush3.bf16.msra.mxu0 %v7357_v12  ;;  %6547 = vmatprep.mubr.bf16.mxu0 %v8117_v17  ;;  %v7363_v17 = vld [vmem:[%s9565_s1 + $0x1f8] sm:$0xff]  }
 0x12e   : > { %6565 = vmatprep.subr.bf16.mxu0 %v7358_v50 }
 0x131   : > { %6566 = vmatpush3.bf16.msra.mxu0 %v7358_v50 }
 0x132   : > { %6567 = vmatprep.subr.bf16.mxu0 %v7359_v7 }
 0x134   : > { %6548 = vmatmul.mubr.bf16.gmra.mrb[8].mxu0 %v8128_v30  ;;  %v8626_v30 = vld [vmem:[%s7898_s26 + $0x84] sm:$0xf] }
 0x135   : > { %6568 = vmatpush3.bf16.msra.mxu0 %v7359_v7  ;;  %6551 = vmatprep.mubr.bf16.mxu0 %v8132_v15  ;;  %v7364_v15 = vld [vmem:[%s9565_s1 + $0x200] sm:$0xff]   ;;  %v5776_v46 = vcombine.low %v8626_v30, %v8629_v22  ;;  %v2158_v26 = vshrl.u32 %v8626_v30, 16 }
 0x136   : > { %6569 = vmatprep.subr.bf16.mxu0 %v7360_v20 }
 0x137   : > { %v2160_v27 = vrot.slane %v2158_v26, 4 }
 0x139   : > { %6570 = vmatpush3.bf16.msra.mxu0 %v7360_v20 }
 0x13a   : > { %6571 = vmatprep.subr.bf16.mxu0 %v7361_v43 }
 0x13c   : > { %6552 = vmatmul.mubr.bf16.gmra.mrb[12].mxu0 %v8141_v2  ;;  %v7365_v2 = vld [vmem:[%s9565_s1 + $0x208] sm:$0xff]  }
 0x13d   : > { %6555 = vmatprep.mubr.bf16.mxu0 %v8468_v60  ;;  %6572 = vmatpush3.bf16.msra.mxu0 %v7361_v43  ;;  %v7368_v60 = vld [vmem:[%s9565_s1 + $0x210] sm:$0xff]  }
 0x13e   : > { %6573 = vmatprep.subr.bf16.mxu0 %v7363_v17 }
 0x141   : > { %6574 = vmatpush3.bf16.msra.mxu0 %v7363_v17 }
 0x142   : > { %6595 = vmatprep.subr.bf16.mxu0 %v7364_v15 }
 0x144   : > { %6556 = vmatmul.mubr.bf16.gmra.mrb[16].mxu0 %v5776_v46 }
 0x145   : > { %6575 = vmatprep.mubr.bf16.mxu0 %v8197_v63  ;;  %v7370_v63 = vld [vmem:[%s9565_s1 + $0x218] sm:$0xff]  }
 0x14c   : > { %6576 = vmatmul.mubr.bf16.vlgmr.msra.gmra.mrb[0].mxu0 %v8244_v54  ;;  %v2161_v54 = vshll.u32 %v8626_v30, 16 }
 0x14d   : > { %6596 = vmatpush3.bf16.msra.mxu0 %v7364_v15  ;;  %6579 = vmatprep.mubr.bf16.mxu0 %v8262_v36  ;;  %v2171_v36 = vshrl.u32 %v8629_v22, 16 }
 0x14e   : > { %6597 = vmatprep.subr.bf16.mxu0 %v7365_v2 }
 0x14f   : > { %v2173_v41 = vrot.slane %v2171_v36, 4 }
 0x151   : > { %6598 = vmatpush3.bf16.msra.mxu0 %v7365_v2  ;;  %v2174_v40 = vor.u32 %v2173_v41, %v2169_v19 }
 0x152   : > { %6599 = vmatprep.subr.bf16.mxu0 %v7368_v60 }
 0x153   : > { %v2175_v29 = vrot.slane %v2174_v40, 4 }
 0x154   : > { %6580 = vmatmul.mubr.bf16.gmra.mrb[4].mxu0 %v8278_v49  ;;  %v2163_v49 = vrot.slane %v2161_v54, 5 }
 0x155   : > { %6600 = vmatpush3.bf16.msra.mxu0 %v7368_v60  ;;  %6583 = vmatprep.mubr.bf16.mxu0 %v8306_v11  ;;  %v2180_v18 = vsel %vm8178_vm5, %v2175_v29, %v2179_v58  ;;  %v8713_v60 = vld [vmem:[%s9566_s2] ss:$0 sm:$0xff] }
 0x156   : > { %6601 = vmatprep.subr.bf16.mxu0 %v7370_v63  ;;  %v2164_v11 = vor.u32 %v2163_v49, %v2160_v27 }
 0x158   : > { %v2165_v62 = vrot.slane %v2164_v11, 4 }
 0x159   : > { %6602 = vmatpush3.bf16.msra.mxu0 %v7370_v63 }
 0x15a   : > { %6603 = vmatprep.subr.bf16.mxu0 %v7372_v24 }
 0x15c   : > { %6584 = vmatmul.mubr.bf16.gmra.mrb[8].mxu0 %v8318_v57  ;;  %v7379_v57 = vld [vmem:[%s9565_s1 + $0x238] sm:$0xff]  }
 0x15d   : > { %6604 = vmatpush3.bf16.msra.mxu0 %v7372_v24  ;;  %6587 = vmatprep.mubr.bf16.mxu0 %v8341_v5  ;;  %v2170_v5 = vsel %vm8178_vm5, %v2165_v62, %v2169_v19 }
 0x15e   : > { %6605 = vmatprep.subr.bf16.mxu0 %v7374_v3  ;;  %v5801_v14 = vcombine.low %v2170_v5, %v2180_v18 }
 0x161   : > { %6606 = vmatpush3.bf16.msra.mxu0 %v7374_v3 }
 0x162   : > { %6607 = vmatprep.subr.bf16.mxu0 %v7377_v39 }
 0x164   : > { %6588 = vmatmul.mubr.bf16.gmra.mrb[12].mxu0 %v8368_v52  ;;  %v2386_v52 = vrot.slane %v8629_v22, 5 }
 0x165   : > { %6591 = vmatprep.mubr.bf16.mxu0 %v8549_v1  ;;  %6608 = vmatpush3.bf16.msra.mxu0 %v7377_v39  ;;  %v5810_v1 = vrot.slane %v8626_v30, 9 }
 0x166   : > { %6609 = vmatprep.subr.bf16.mxu0 %v7379_v57  ;;  %v2388_v21 = vrot.slane %v2386_v52, 4 }
 0x169   : > { %6610 = vmatpush3.bf16.msra.mxu0 %v7379_v57 }
 0x16c   : > { %6592 = vmatmul.mubr.bf16.gmra.mrb[16].mxu0 %v5801_v14 }
 0x16d   : > { %6611 = vmatprep.mubr.bf16.mxu0 %v8149_v37  ;;  %v2387_v37 = vsel %vm8065_vm2, %v5810_v1, %v2386_v52 }
 0x174   : > { %6612 = vmatmul.mubr.bf16.vlgmr.msra.gmra.mrb[0].mxu0 %v8174_v25  ;;  %v2390_v25 = vsel %vm8065_vm2, %v2388_v21, %v2389_v51 }
 0x175   : > { %6615 = vmatprep.mubr.bf16.mxu0 %v8176_v33  ;;  %v5827_v33 = vcombine.low %v2387_v37, %v2390_v25 }
 0x17c   : > { %6616 = vmatmul.mubr.bf16.gmra.mrb[4].mxu0 %v8370_v56 }
 0x17d   : > { %6619 = vmatprep.mubr.bf16.mxu0 %v8376_v42 }
 0x184   : > { %6620 = vmatmul.mubr.bf16.gmra.mrb[8].mxu0 %v8410_v23 }
 0x185   : > { %6623 = vmatprep.mubr.bf16.mxu0 %v8415_v6 }
 0x18c   : > { %6624 = vmatmul.mubr.bf16.gmra.mrb[12].mxu0 %v8430_v10 }
 0x18d   : > { %6627 = vmatprep.mubr.bf16.mxu0 %v8419_v48 }
 0x194   : > { %6628 = vmatmul.mubr.bf16.gmra.mrb[16].mxu0 %v5827_v33 }
 0x1c2   : > { %v6325_v23 = vpop.f32.mrb[0].mxu1 }
 0x1c3   : > { %v692_v6 = vpop.f32.mrb[1].mxu1 }
 0x1c4   : > { %v6326_v56 = vpop.f32.mrb[2].mxu1 }
 0x1c5   : > { %v695_v42 = vpop.f32.mrb[3].mxu1 }
 0x1ca   : > { %v6329_v4 = vpop.f32.mrb[4].mxu1 }
 0x1cb   : > { %v708_v0 = vpop.f32.mrb[5].mxu1 }
 0x1cc   : > { %v6330_v28 = vpop.f32.mrb[6].mxu1 }
 0x1cd   : > { %v711_v38 = vpop.f32.mrb[7].mxu1 }
 0x1d2   : > { %v6333_v12 = vpop.f32.mrb[8].mxu1 }
 0x1d3   : > { %v724_v10 = vpop.f32.mrb[9].mxu1 }
 0x1d4   : > { %v8690_v50 = vpop.f32.mrb[10].mxu1 }
 0x1d5   : > { %v8692_v48 = vpop.f32.mrb[11].mxu1 }
 0x1da   : > { %v8694_v7 = vpop.f32.mrb[12].mxu1 }
 0x1db   : > { %v8696_v20 = vpop.f32.mrb[13].mxu1 }
 0x1dc   : > { %v8698_v43 = vpop.f32.mrb[14].mxu1 }
 0x1dd   : > { %v8700_v17 = vpop.f32.mrb[15].mxu1 }
 0x1e2   : > { %v8702_v30 = vpop.f32.mrb[16].mxu1 }
 0x1e3   : > { %v8704_v22 = vpop.f32.mrb[17].mxu1 }
 0x1e4   : > { %v8706_v15 = vpop.f32.mrb[18].mxu1 }
 0x1e5   : > { %v8708_v46 = vpop.f32.mrb[19].mxu1 }
 0x247   : > { %v6613_v2 = vpop.f32.mrb[0].mxu0 }
 0x248   : > { %v6919_v63 = vadd.f32 %v6613_v2, %v6325_v23  ;;  %v2494_v26 = vpop.f32.mrb[1].mxu0 }
 0x249   : > { %v6920_v54 = vadd.f32 %v2494_v26, %v692_v6  ;;  %v6614_v36 = vpop.f32.mrb[2].mxu0 }
 0x24a   : > { %v8716_v32 = vadd.f32 %v6919_v63, %v8713_v60  ;;  %v6921_v24 = vadd.f32 %v6614_v36, %v6326_v56  ;;  %v2497_v27 = vpop.f32.mrb[3].mxu0 }
 0x24b   : > { %v8719_v49 = vadd.f32 %v6920_v54, %v8713_v60  ;;  %v6922_v19 = vadd.f32 %v2497_v27, %v695_v42 }
 0x24c   : > { %v2622_v41 = vsub.f32 0.0, %v8716_v32  ;;  %v8723_v3 = vadd.f32 %v6921_v24, %v8713_v60 }
 0x24d   : > { %v2620_v8 = vsub.f32 0.0, %v8719_v49  ;;  %v8727_v11 = vadd.f32 %v6922_v19, %v8713_v60 }
 0x24e   : > { %v2644_v40 = vmul.f32 1.442695, %v2622_v41  ;;  %v2623_v13 = vsub.f32 0.0, %v8723_v3 }
 0x24f   : > { %v2640_v39 = vmul.f32 1.442695, %v2620_v8  ;;  %v2621_v62 = vsub.f32 0.0, %v8727_v11  ;;  %v6617_v29 = vpop.f32.mrb[4].mxu0 }
 0x250   : > { %7380 = vpow2.f32 %v2644_v40  ;;  %v2646_v58 = vmul.f32 1.442695, %v2623_v13  ;;  %v6923_v57 = vadd.f32 %v6617_v29, %v6329_v4  ;;  %v2510_v5 = vpop.f32.mrb[5].mxu0 }
 0x251   : > { %7382 = vpow2.f32 %v2640_v39  ;;  %v2642_v18 = vmul.f32 1.442695, %v2621_v62  ;;  %v6924_v14 = vadd.f32 %v2510_v5, %v708_v0  ;;  %v6618_v52 = vpop.f32.mrb[6].mxu0 }
 0x252   : > { %7384 = vpow2.f32 %v2646_v58  ;;  %v8732_v1 = vadd.f32 %v6923_v57, %v8713_v60  ;;  %v6925_v21 = vadd.f32 %v6618_v52, %v6330_v28  ;;  %v2513_v51 = vpop.f32.mrb[7].mxu0 }
 0x253   : > { %7386 = vpow2.f32 %v2642_v18  ;;  %v8735_v37 = vadd.f32 %v6924_v14, %v8713_v60  ;;  %v6926_v25 = vadd.f32 %v2513_v51, %v711_v38 }
 0x254   : > { %v2626_v33 = vsub.f32 0.0, %v8732_v1  ;;  %v8739_v23 = vadd.f32 %v6925_v21, %v8713_v60 }
 0x255   : > { %v2624_v6 = vsub.f32 0.0, %v8735_v37  ;;  %v8743_v56 = vadd.f32 %v6926_v25, %v8713_v60 }
 0x256   : > { %v2652_v42 = vmul.f32 1.442695, %v2626_v33  ;;  %v2627_v4 = vsub.f32 0.0, %v8739_v23 }
 0x257   : > { %v2648_v0 = vmul.f32 1.442695, %v2624_v6  ;;  %v2625_v28 = vsub.f32 0.0, %v8743_v56  ;;  %v6621_v2 = vpop.f32.mrb[8].mxu0 }
 0x258   : > { %7388 = vpow2.f32 %v2652_v42  ;;  %v2654_v63 = vmul.f32 1.442695, %v2627_v4  ;;  %v6927_v38 = vadd.f32 %v6621_v2, %v6333_v12  ;;  %v2526_v26 = vpop.f32.mrb[9].mxu0 }
 0x259   : > { %7390 = vpow2.f32 %v2648_v0  ;;  %v2650_v54 = vmul.f32 1.442695, %v2625_v28  ;;  %v6928_v36 = vadd.f32 %v2526_v26, %v724_v10  ;;  %v6622_v24 = vpop.f32.mrb[10].mxu0 }
 0x25a   : > { %v7381_v27 = vpop.eup %7380  ;;  %7392 = vpow2.f32 %v2654_v63  ;;  %v8748_v19 = vadd.f32 %v6927_v38, %v8713_v60  ;;  %v6929_v41 = vadd.f32 %v6622_v24, %v8690_v50  ;;  %v2529_v8 = vpop.f32.mrb[11].mxu0 }
 0x25b   : > { %v7383_v40 = vpop.eup %7382  ;;  %v2682_v13 = vadd.f32 1.0, %v7381_v27  ;;  %7394 = vpow2.f32 %v2650_v54  ;;  %v8752_v39 = vadd.f32 %v6928_v36, %v8713_v60  ;;  %v6930_v12 = vadd.f32 %v2529_v8, %v8692_v48 }
 0x25c   : > { %v7385_v62 = vpop.eup %7384  ;;  %v2680_v29 = vadd.f32 1.0, %v7383_v40  ;;  %v2630_v10 = vsub.f32 0.0, %v8748_v19  ;;  %v8757_v58 = vadd.f32 %v6929_v41, %v8713_v60 }
 0x25d   : > { %v7387_v57 = vpop.eup %7386  ;;  %7396 = vrcp.f32 %v2682_v13  ;;  %v2683_v5 = vadd.f32 1.0, %v7385_v62  ;;  %v2628_v50 = vsub.f32 0.0, %v8752_v39  ;;  %v8761_v18 = vadd.f32 %v6930_v12, %v8713_v60 }
 0x25e   : > { %7398 = vrcp.f32 %v2680_v29  ;;  %v2681_v14 = vadd.f32 1.0, %v7387_v57  ;;  %v2660_v52 = vmul.f32 1.442695, %v2630_v10  ;;  %v2631_v48 = vsub.f32 0.0, %v8757_v58 }
 0x25f   : > { %7400 = vrcp.f32 %v2683_v5  ;;  %v2656_v21 = vmul.f32 1.442695, %v2628_v50  ;;  %v2629_v51 = vsub.f32 0.0, %v8761_v18  ;;  %v6625_v25 = vpop.f32.mrb[12].mxu0 }
 0x260   : > { %7402 = vrcp.f32 %v2681_v14  ;;  %v2662_v33 = vmul.f32 1.442695, %v2631_v48  ;;  %v6931_v6 = vadd.f32 %v6625_v25, %v8694_v7  ;;  %v2542_v42 = vpop.f32.mrb[13].mxu0 }
 0x261   : > { %7404 = vpow2.f32 %v2660_v52  ;;  %v2658_v4 = vmul.f32 1.442695, %v2629_v51  ;;  %v6932_v0 = vadd.f32 %v2542_v42, %v8696_v20  ;;  %v6626_v28 = vpop.f32.mrb[14].mxu0 }
 0x262   : > { %v7389_v2 = vpop.eup %7388  ;;  %7406 = vpow2.f32 %v2656_v21  ;;  %v8768_v63 = vadd.f32 %v6931_v6, %v8713_v60  ;;  %v6933_v38 = vadd.f32 %v6626_v28, %v8698_v43  ;;  %v2545_v26 = vpop.f32.mrb[15].mxu0 }
 0x263   : > { %v7391_v54 = vpop.eup %7390  ;;  %v2686_v36 = vadd.f32 1.0, %v7389_v2  ;;  %7408 = vpow2.f32 %v2662_v33  ;;  %v8772_v24 = vadd.f32 %v6932_v0, %v8713_v60  ;;  %v6934_v7 = vadd.f32 %v2545_v26, %v8700_v17 }
 0x264   : > { %v7393_v27 = vpop.eup %7392  ;;  %v2684_v20 = vadd.f32 1.0, %v7391_v54  ;;  %7410 = vpow2.f32 %v2658_v4  ;;  %v2634_v41 = vsub.f32 0.0, %v8768_v63  ;;  %v8777_v8 = vadd.f32 %v6933_v38, %v8713_v60 }
 0x265   : > { %v7395_v43 = vpop.eup %7394  ;;  %7412 = vrcp.f32 %v2686_v36  ;;  %v2687_v40 = vadd.f32 1.0, %v7393_v27  ;;  %v2632_v13 = vsub.f32 0.0, %v8772_v24  ;;  %v8781_v12 = vadd.f32 %v6934_v7, %v8713_v60 }
 0x266   : > { %7414 = vrcp.f32 %v2684_v20  ;;  %v2685_v17 = vadd.f32 1.0, %v7395_v43  ;;  %v2668_v62 = vmul.f32 1.442695, %v2634_v41  ;;  %v2635_v29 = vsub.f32 0.0, %v8777_v8 }
 0x267   : > { %v7397_v10 = vpop.eup %7396  ;;  %7416 = vrcp.f32 %v2687_v40  ;;  %v2664_v57 = vmul.f32 1.442695, %v2632_v13  ;;  %v2633_v5 = vsub.f32 0.0, %v8781_v12  ;;  %v6629_v50 = vpop.f32.mrb[16].mxu0 }
 0x268   : > { %v7399_v14 = vpop.eup %7398  ;;  %v2722_v52 = vmul.f32 %v7397_v10, %v8716_v32  ;;  %7418 = vrcp.f32 %v2685_v17  ;;  %v2670_v48 = vmul.f32 1.442695, %v2635_v29  ;;  %v6935_v21 = vadd.f32 %v6629_v50, %v8702_v30  ;;  %v2558_v51 = vpop.f32.mrb[17].mxu0 }
 0x269   : > { %v7401_v25 = vpop.eup %7400  ;;  %v2720_v33 = vmul.f32 %v7399_v14, %v8719_v49  ;;  %7420 = vpow2.f32 %v2668_v62  ;;  %v8788_v6 = vmul.f32 1.442695, %v2633_v5  ;;  %v6936_v42 = vadd.f32 %v2558_v51, %v8704_v22  ;;  %v8791_v4 = vpop.f32.mrb[18].mxu0  ;;  %v3015_v5 = vld [vmem:[#allocation2 + $0xc] sm:$0xf] }
 0x26a   : > { %v7403_v0 = vpop.eup %7402  ;;  %v5982_v28 = vpack.c.bf16 %v2722_v52, %v2722_v52  ;;  %v2723_v2 = vmul.f32 %v7401_v25, %v8723_v3  ;;  %7422 = vpow2.f32 %v2664_v57  ;;  %v8795_v32 = vadd.f32 %v6935_v21, %v8713_v60  ;;  %v8797_v30 = vpop.f32.mrb[19].mxu0 }
 0x26b   : > { %v7405_v38 = vpop.eup %7404  ;;  %v5980_v26 = vpack.c.bf16 %v2720_v33, %v2720_v33  ;;  %v2721_v49 = vmul.f32 %v7403_v0, %v8727_v11  ;;  %7424 = vpow2.f32 %v2670_v48  ;;  %v8801_v54 = vadd.f32 %v6936_v42, %v8713_v60  ;;  %v3006_v33 = vld [vmem:[#allocation2] sm:$0xf] }
 0x26c   : > { %v7407_v22 = vpop.eup %7406  ;;  %v2821_v36 = vshrl.u32 %v5982_v28, 16  ;;  %v2824_v7 = vshll.u32 %v5982_v28, 16  ;;  %v5983_v27 = vpack.c.bf16 %v2723_v2, %v2723_v2  ;;  %v2690_v20 = vadd.f32 1.0, %v7405_v38 }
 0x26d   : > { %v7409_v3 = vpop.eup %7408  ;;  %v2804_v41 = vshrl.u32 %v5980_v26, 16  ;;  %v2807_v43 = vshll.u32 %v5980_v26, 16  ;;  %v5981_v40 = vpack.c.bf16 %v2721_v49, %v2721_v49  ;;  %v2688_v13 = vadd.f32 1.0, %v7407_v22  ;;  %v3019_v49 = vld [vmem:[#allocation2 + $0x14] sm:$0x1] }
 0x26e   : > { %v7411_v17 = vpop.eup %7410  ;;  %v2823_v62 = vrot.slane %v2821_v36, 7  ;;  %v2829_v29 = vshrl.u32 %v5983_v27, 16  ;;  %v2832_v10 = vshll.u32 %v5983_v27, 16  ;;  %7426 = vrcp.f32 %v2690_v20 }
 0x26f   : > { %v7413_v11 = vpop.eup %7412  ;;  %v2806_v50 = vrot.slane %v2804_v41, 7  ;;  %v2812_v14 = vshrl.u32 %v5981_v40, 16  ;;  %v2815_v52 = vshll.u32 %v5981_v40, 16  ;;  %7428 = vrcp.f32 %v2688_v13 }
 0x270   : > { %v7415_v48 = vpop.eup %7414  ;;  %v2826_v21 = vor.u32 %v2824_v7, %v2823_v62  ;;  %v2827_v51 = vrot.slane %v2823_v62, 4  ;;  %v2831_v42 = vrot.slane %v2829_v29, 7  ;;  %v2726_v0 = vmul.f32 %v7413_v11, %v8732_v1  ;;  %v3012_v1 = vld [vmem:[#allocation2 + $0x8] sm:$0x1] }
 0x271   : > { %v7417_v28 = vpop.eup %7416  ;;  %v2809_v2 = vor.u32 %v2807_v43, %v2806_v50  ;;  %v2810_v38 = vrot.slane %v2806_v50, 4  ;;  %v2814_v22 = vrot.slane %v2812_v14, 7  ;;  %v2724_v36 = vmul.f32 %v7415_v48, %v8735_v37 }
 0x272   : > { %v7419_v7 = vpop.eup %7418  ;;  %v3016_v27 = vsel %vm8805_vm11, %v2826_v21, %v3015_v5  ;;  %v2834_v20 = vor.u32 %v2832_v10, %v2831_v42  ;;  %v2836_v41 = vrot.slane %v2831_v42, 4  ;;  %v5986_v40 = vpack.c.bf16 %v2726_v0, %v2726_v0 }
 0x273   : > { %v7421_v43 = vpop.eup %7420  ;;  %3017 = vst [vmem:[#allocation2 + $0xc] sm:$0xf] %v3016_v27  ;;  %v3007_v13 = vsel %vm8805_vm11, %v2809_v2, %v3006_v33  ;;  %v2817_v62 = vor.u32 %v2815_v52, %v2814_v22  ;;  %v2819_v29 = vrot.slane %v2814_v22, 4  ;;  %v5984_v11 = vpack.c.bf16 %v2724_v36, %v2724_v36  ;;  %v3029_v22 = vld [vmem:[#allocation2 + $0x24] sm:$0xf] }
 0x274   : > { %v7423_v50 = vpop.eup %7422  ;;  %3008 = vst [vmem:[#allocation2] sm:$0xf] %v3007_v13  ;;  %v2835_v37 = vsel %vm8818_vm13, %v2827_v51, %v2834_v20  ;;  %v3020_v5 = vsel %vm8811_vm12, %v2836_v41, %v3019_v49  ;;  %v2855_v10 = vshrl.u32 %v5986_v40, 16  ;;  %v2858_v14 = vshll.u32 %v5986_v40, 16 }
 0x275   : > { %v8831_v48 = vpop.eup %7424  ;;  %3018 = vst [vmem:[#allocation2 + $0x10] sm:$0xf] %v2835_v37  ;;  %3021 = vst [vmem:[#allocation2 + $0x14] sm:$0x1] %v3020_v5  ;;  %v2818_v21 = vsel %vm8818_vm13, %v2810_v38, %v2817_v62  ;;  %v3013_v52 = vsel %vm8811_vm12, %v2819_v29, %v3012_v1  ;;  %v2838_v33 = vshrl.u32 %v5984_v11, 16  ;;  %v2841_v42 = vshll.u32 %v5984_v11, 16 }
 0x276   : > { %3009 = vst [vmem:[#allocation2 + $0x4] sm:$0xf] %v2818_v21  ;;  %3014 = vst [vmem:[#allocation2 + $0x8] sm:$0x1] %v3013_v52  ;;  %v2857_v51 = vrot.slane %v2855_v10, 7  ;;  %v2727_v0 = vmul.f32 %v7417_v28, %v8739_v23  ;;  %v2725_v2 = vmul.f32 %v7419_v7, %v8743_v56  ;;  %v2691_v49 = vadd.f32 1.0, %v7409_v3 }
 0x277   : > { %v2840_v36 = vrot.slane %v2838_v33, 7  ;;  %v2689_v27 = vadd.f32 1.0, %v7411_v17  ;;  %v2694_v20 = vadd.f32 1.0, %v7421_v43  ;;  %v2692_v41 = vadd.f32 1.0, %v7423_v50  ;;  %v3022_v62 = vld [vmem:[#allocation2 + $0x18] sm:$0xf] }
 0x278   : > { %v7427_v40 = vpop.eup %7426  ;;  %v2860_v38 = vor.u32 %v2858_v14, %v2857_v51  ;;  %v2861_v13 = vrot.slane %v2857_v51, 4  ;;  %v5987_v1 = vpack.c.bf16 %v2727_v0, %v2727_v0  ;;  %v5985_v29 = vpack.c.bf16 %v2725_v2, %v2725_v2  ;;  %v3033_v14 = vld [vmem:[#allocation2 + $0x2c] sm:$0x1] }
 0x279   : > { %v7429_v11 = vpop.eup %7428  ;;  %v2843_v37 = vor.u32 %v2841_v42, %v2840_v36  ;;  %v2844_v5 = vrot.slane %v2840_v36, 4  ;;  %v2730_v10 = vmul.f32 %v7427_v40, %v8748_v19  ;;  %7430 = vrcp.f32 %v2691_v49 }
 0x27a   : > { %v3081_v23 = vld [vmem:[#allocation2 + $0xc] sm:$0x1]  ;;  %v3030_v3 = vsel %vm8805_vm11, %v2860_v38, %v3029_v22  ;;  %v2863_v17 = vshrl.u32 %v5987_v1, 16  ;;  %v2866_v28 = vshll.u32 %v5987_v1, 16  ;;  %v2846_v7 = vshrl.u32 %v5985_v29, 16 }
 0x27b   : > { %v3082_v43 = vsel %vm8811_vm12, 0, %v3081_v23  ;;  %v3078_v50 = vld [vmem:[#allocation2] sm:$0x1]  ;;  %3031 = vst [vmem:[#allocation2 + $0x24] sm:$0xf] %v3030_v3  ;;  %v3023_v19 = vsel %vm8805_vm11, %v2843_v37, %v3022_v62  ;;  %v2849_v21 = vshll.u32 %v5985_v29, 16  ;;  %v5990_v52 = vpack.c.bf16 %v2730_v10, %v2730_v10 }
 0x27c   : > { %3083 = vst [vmem:[#allocation2 + $0xc] sm:$0x1] %v3082_v43  ;;  %v3079_v33 = vsel %vm8811_vm12, 0, %v3078_v50  ;;  %v3112_v42 = vld [vmem:[#allocation2 + $0x14] sm:$0x1]  ;;  %v2865_v51 = vrot.slane %v2863_v17, 7  ;;  %v2728_v2 = vmul.f32 %v7429_v11, %v8752_v39  ;;  %7432 = vrcp.f32 %v2689_v27 }
 0x27d   : > { %3024 = vst [vmem:[#allocation2 + $0x18] sm:$0xf] %v3023_v19  ;;  %v2848_v0 = vrot.slane %v2846_v7, 7  ;;  %3080 = vst [vmem:[#allocation2] sm:$0x1] %v3079_v33  ;;  %v3113_v49 = vsel %vm8842_vm14, 0, %v3112_v42  ;;  %7434 = vrcp.f32 %v2694_v20 }
 0x27e   : > { %v3109_v22 = vld [vmem:[#allocation2 + $0x8] sm:$0x1]  ;;  %v2889_v36 = vshrl.u32 %v5990_v52, 16  ;;  %v2892_v40 = vshll.u32 %v5990_v52, 16  ;;  %3114 = vst [vmem:[#allocation2 + $0x14] sm:$0x1] %v3113_v49  ;;  %v2868_v62 = vor.u32 %v2866_v28, %v2865_v51  ;;  %v5988_v39 = vpack.c.bf16 %v2728_v2, %v2728_v2 }
 0x27f   : > { %v3110_v38 = vsel %vm8842_vm14, 0, %v3109_v22  ;;  %v2870_v1 = vrot.slane %v2865_v51, 4  ;;  %v2851_v29 = vor.u32 %v2849_v21, %v2848_v0  ;;  %v3026_v37 = vld [vmem:[#allocation2 + $0x20] sm:$0x1]  ;;  %v2853_v10 = vrot.slane %v2848_v0, 4 }
 0x280   : > { %3111 = vst [vmem:[#allocation2 + $0x8] sm:$0x1] %v3110_v38  ;;  %v8859_v23 = vrot.slane %v2889_v36, 7  ;;  %v2869_v11 = vsel %vm8818_vm13, %v2861_v13, %v2868_v62  ;;  %v3043_v17 = vld [vmem:[#allocation2 + $0x3c] sm:$0xf]  ;;  %7436 = vrcp.f32 %v2692_v41  ;;  %v2872_v20 = vshrl.u32 %v5988_v39, 16 }
 0x281   : > { %v3034_v27 = vsel %vm8811_vm12, %v2870_v1, %v3033_v14  ;;  %v2852_v3 = vsel %vm8818_vm13, %v2844_v5, %v2851_v29  ;;  %3032 = vst [vmem:[#allocation2 + $0x28] sm:$0xf] %v2869_v11  ;;  %v3027_v28 = vsel %vm8811_vm12, %v2853_v10, %v3026_v37  ;;  %v2875_v13 = vshll.u32 %v5988_v39, 16 }
 0x282   : > { %3035 = vst [vmem:[#allocation2 + $0x2c] sm:$0x1] %v3034_v27  ;;  %3025 = vst [vmem:[#allocation2 + $0x1c] sm:$0xf] %v2852_v3  ;;  %v2894_v7 = vor.u32 %v2892_v40, %v8859_v23  ;;  %v3087_v43 = vld [vmem:[#allocation2 + $0x24] sm:$0x1]  ;;  %7438 = vpow2.f32 %v8788_v6  ;;  %v6937_v49 = vadd.f32 %v8791_v4, %v8706_v15  ;;  %v6938_v36 = vadd.f32 %v8797_v30, %v8708_v46 }
 0x283   : > { %3028 = vst [vmem:[#allocation2 + $0x20] sm:$0x1] %v3027_v28  ;;  %v2695_v50 = vadd.f32 1.0, %v8831_v48  ;;  %v2638_v5 = vsub.f32 0.0, %v8795_v32  ;;  %v7431_v19 = vpop.eup %7430  ;;  %v3088_v41 = vsel %vm8811_vm12, 0, %v3087_v43  ;;  %v8877_v52 = vrot.slane %v2872_v20, 7 }
 0x284   : > { %v3084_v14 = vld [vmem:[#allocation2 + $0x18] sm:$0x1]  ;;  %v3044_v21 = vsel %vm8805_vm11, %v2894_v7, %v3043_v17  ;;  %v2636_v33 = vsub.f32 0.0, %v8801_v54  ;;  %3089 = vst [vmem:[#allocation2 + $0x24] sm:$0x1] %v3088_v41  ;;  %v2731_v42 = vmul.f32 %v7431_v19, %v8757_v58  ;;  %v8891_v58 = vadd.f32 %v6937_v49, %v8713_v60 }
 0x285   : > { %v3085_v48 = vsel %vm8811_vm12, 0, %v3084_v14  ;;  %3045 = vst [vmem:[#allocation2 + $0x3c] sm:$0xf] %v3044_v21  ;;  %v3036_v6 = vld [vmem:[#allocation2 + $0x30] sm:$0xf]  ;;  %7440 = vrcp.f32 %v2695_v50  ;;  %v2877_v0 = vor.u32 %v2875_v13, %v8877_v52  ;;  %v8895_v15 = vadd.f32 %v6938_v36, %v8713_v60 }
 0x286   : > { %v2676_v51 = vmul.f32 1.442695, %v2638_v5  ;;  %3086 = vst [vmem:[#allocation2 + $0x18] sm:$0x1] %v3085_v48  ;;  %v2672_v2 = vmul.f32 1.442695, %v2636_v33  ;;  %v5991_v22 = vpack.c.bf16 %v2731_v42, %v2731_v42  ;;  %v7433_v40 = vpop.eup %7432 }
 0x287   : > { %v3037_v38 = vsel %vm8805_vm11, %v2877_v0, %v3036_v6  ;;  %v2729_v29 = vmul.f32 %v7433_v40, %v8761_v18  ;;  %v7435_v4 = vpop.eup %7434  ;;  %v2895_v37 = vrot.slane %v8859_v23, 4  ;;  %v2639_v39 = vsub.f32 0.0, %v8891_v58  ;;  %v3047_v18 = vld [vmem:[#allocation2 + $0x44] sm:$0x1]  ;;  %v3040_v42 = vld [vmem:[#allocation2 + $0x38] sm:$0x1] }
 0x288   : > { %7442 = vpow2.f32 %v2676_v51  ;;  %3038 = vst [vmem:[#allocation2 + $0x30] sm:$0xf] %v3037_v38  ;;  %v2897_v1 = vshrl.u32 %v5991_v22, 16  ;;  %v2900_v10 = vshll.u32 %v5991_v22, 16  ;;  %v2734_v60 = vmul.f32 %v7435_v4, %v8768_v63 }
 0x289   : > { %7444 = vpow2.f32 %v2672_v2  ;;  %v3118_v62 = vld [vmem:[#allocation2 + $0x2c] sm:$0x1]  ;;  %v5989_v17 = vpack.c.bf16 %v2729_v29, %v2729_v29  ;;  %v2878_v7 = vrot.slane %v8877_v52, 4  ;;  %v2678_v23 = vmul.f32 1.442695, %v2639_v39 }
 0x28a   : > { %v3119_v46 = vsel %vm8842_vm14, 0, %v3118_v62  ;;  %v3115_v30 = vld [vmem:[#allocation2 + $0x20] sm:$0x1]  ;;  %v7437_v11 = vpop.eup %7436  ;;  %v2899_v3 = vrot.slane %v2897_v1, 7  ;;  %v2637_v43 = vsub.f32 0.0, %v8895_v15  ;;  %v5994_v21 = vpack.c.bf16 %v2734_v60, %v2734_v60 }
 0x28b   : > { %3120 = vst [vmem:[#allocation2 + $0x2c] sm:$0x1] %v3119_v46  ;;  %v3116_v27 = vsel %vm8842_vm14, 0, %v3115_v30  ;;  %v2732_v20 = vmul.f32 %v7437_v11, %v8772_v24  ;;  %v2880_v41 = vshrl.u32 %v5989_v17, 16  ;;  %v2883_v14 = vshll.u32 %v5989_v17, 16 }
 0x28c   : > { %3117 = vst [vmem:[#allocation2 + $0x20] sm:$0x1] %v3116_v27  ;;  %v3093_v28 = vld [vmem:[#allocation2 + $0x3c] sm:$0x1]  ;;  %v7439_v13 = vpop.eup %7438  ;;  %v2902_v5 = vor.u32 %v2900_v10, %v2899_v3  ;;  %v2904_v19 = vrot.slane %v2899_v3, 4  ;;  %7446 = vpow2.f32 %v2678_v23  ;;  %v2923_v0 = vshrl.u32 %v5994_v21, 16 }
 0x28d   : > { %v3094_v50 = vsel %vm8811_vm12, 0, %v3093_v28  ;;  %v5992_v63 = vpack.c.bf16 %v2732_v20, %v2732_v20  ;;  %v2693_v33 = vadd.f32 1.0, %v7439_v13  ;;  %v2882_v6 = vrot.slane %v2880_v41, 7  ;;  %v3057_v39 = vld [vmem:[#allocation2 + $0x54] sm:$0xf] }
 0x28e   : > { %3095 = vst [vmem:[#allocation2 + $0x3c] sm:$0x1] %v3094_v50  ;;  %v2903_v52 = vsel %vm8818_vm13, %v2895_v37, %v2902_v5  ;;  %v3048_v24 = vsel %vm8811_vm12, %v2904_v19, %v3047_v18  ;;  %v2926_v2 = vshll.u32 %v5994_v21, 16  ;;  %v2925_v4 = vrot.slane %v2923_v0, 7  ;;  %v3050_v11 = vld [vmem:[#allocation2 + $0x48] sm:$0xf] }
 0x28f   : > { %v7441_v48 = vpop.eup %7440  ;;  %v3090_v51 = vld [vmem:[#allocation2 + $0x30] sm:$0x1]  ;;  %3046 = vst [vmem:[#allocation2 + $0x40] sm:$0xf] %v2903_v52  ;;  %3049 = vst [vmem:[#allocation2 + $0x44] sm:$0x1] %v3048_v24  ;;  %v2885_v38 = vor.u32 %v2883_v14, %v2882_v6  ;;  %7448 = vrcp.f32 %v2693_v33 }
 0x290   : > { %v2906_v49 = vshrl.u32 %v5992_v63, 16  ;;  %v2909_v22 = vshll.u32 %v5992_v63, 16  ;;  %v3091_v40 = vsel %vm8811_vm12, 0, %v3090_v51  ;;  %v2887_v62 = vrot.slane %v2882_v6, 4  ;;  %v3061_v5 = vld [vmem:[#allocation2 + $0x5c] sm:$0x1] }
 0x291   : > { %v2735_v1 = vmul.f32 %v7441_v48, %v8777_v8  ;;  %3092 = vst [vmem:[#allocation2 + $0x30] sm:$0x1] %v3091_v40  ;;  %v2886_v37 = vsel %vm8818_vm13, %v2878_v7, %v2885_v38  ;;  %v2928_v8 = vor.u32 %v2926_v2, %v2925_v4  ;;  %v2674_v60 = vmul.f32 1.442695, %v2637_v43 }
 0x292   : > { %v7443_v36 = vpop.eup %7442  ;;  %v8916_v46 = vrot.slane %v2906_v49, 7  ;;  %v3041_v10 = vsel %vm8811_vm12, %v2887_v62, %v3040_v42  ;;  %3039 = vst [vmem:[#allocation2 + $0x34] sm:$0xf] %v2886_v37  ;;  %v2929_v43 = vrot.slane %v2925_v4, 4  ;;  %v7739_v26 = vmov (!%p5857_p8), 0  }
 0x293   : > { %v7445_v29 = vpop.eup %7444  ;;  %v2698_v30 = vadd.f32 1.0, %v7443_v36  ;;  %v5995_v27 = vpack.c.bf16 %v2735_v1, %v2735_v1  ;;  %3042 = vst [vmem:[#allocation2 + $0x38] sm:$0x1] %v3041_v10  ;;  %v3058_v28 = vsel %vm8805_vm11, %v2928_v8, %v3057_v39  ;;  %3143 = vst [vmem:[#allocation2] sm:$0xf] (!%p5857_p8), %v7739_v26 }
 0x294   : > { %v2696_v3 = vadd.f32 1.0, %v7445_v29  ;;  %v2911_v18 = vor.u32 %v2909_v22, %v8916_v46  ;;  %3059 = vst [vmem:[#allocation2 + $0x54] sm:$0xf] %v3058_v28  ;;  %3144 = vst [vmem:[#allocation2 + $0x4] sm:$0xf] (!%p5857_p8), %v7739_v26 }
 0x295   : > { %v2931_v17 = vshrl.u32 %v5995_v27, 16  ;;  %7450 = vrcp.f32 %v2698_v30  ;;  %v2934_v13 = vshll.u32 %v5995_v27, 16  ;;  %3145 = vst [vmem:[#allocation2 + $0x8] sm:$0x1] (!%p5857_p8), %v7739_v26 }
 0x296   : > { %v3051_v7 = vsel %vm8805_vm11, %v2911_v18, %v3050_v11  ;;  %7452 = vrcp.f32 %v2696_v3  ;;  %v3124_v20 = vld [vmem:[#allocation2 + $0x44] sm:$0x1]  ;;  %v7447_v19 = vpop.eup %7446  ;;  %v3054_v11 = vld [vmem:[#allocation2 + $0x50] sm:$0x1]  ;;  %v2912_v3 = vrot.slane %v8916_v46, 4 }
 0x297   : > { %3052 = vst [vmem:[#allocation2 + $0x48] sm:$0xf] %v3051_v7  ;;  %v2933_v23 = vrot.slane %v2931_v17, 7  ;;  %7454 = vpow2.f32 %v2674_v60  ;;  %v3125_v50 = vsel %vm8842_vm14, 0, %v3124_v20  ;;  %v2699_v21 = vadd.f32 1.0, %v7447_v19 }
 0x298   : > { %3126 = vst [vmem:[#allocation2 + $0x44] sm:$0x1] %v3125_v50 }
 0x299   : > { %v2936_v41 = vor.u32 %v2934_v13, %v2933_v23  ;;  %v2938_v14 = vrot.slane %v2933_v23, 4  ;;  %v7449_v52 = vpop.eup %7448  ;;  %7456 = vrcp.f32 %v2699_v21  ;;  %v3071_v23 = vld [vmem:[#allocation2 + $0x6c] sm:$0xf] }
 0x29a   : > { %v3121_v63 = vld [vmem:[#allocation2 + $0x38] sm:$0x1]  ;;  %v2733_v6 = vmul.f32 %v7449_v52, %v8781_v12  ;;  %v3075_v52 = vld [vmem:[#allocation2 + $0x74] sm:$0x1] }
 0x29b   : > { %v2937_v33 = vsel %vm8818_vm13, %v2929_v43, %v2936_v41  ;;  %v3062_v48 = vsel %vm8811_vm12, %v2938_v14, %v3061_v5  ;;  %v3122_v24 = vsel %vm8842_vm14, 0, %v3121_v63  ;;  %v3099_v42 = vld [vmem:[#allocation2 + $0x54] sm:$0x1]  ;;  %v3064_v5 = vld [vmem:[#allocation2 + $0x60] sm:$0xf] }
 0x29c   : > { %3060 = vst [vmem:[#allocation2 + $0x58] sm:$0xf] %v2937_v33  ;;  %3063 = vst [vmem:[#allocation2 + $0x5c] sm:$0x1] %v3062_v48  ;;  %v3100_v2 = vsel %vm8811_vm12, 0, %v3099_v42  ;;  %v5993_v22 = vpack.c.bf16 %v2733_v6, %v2733_v6 }
 0x29d   : > { %3123 = vst [vmem:[#allocation2 + $0x38] sm:$0x1] %v3122_v24  ;;  %3101 = vst [vmem:[#allocation2 + $0x54] sm:$0x1] %v3100_v2 }
 0x29e   : > { %v3096_v51 = vld [vmem:[#allocation2 + $0x48] sm:$0x1]  ;;  %v2914_v62 = vshrl.u32 %v5993_v22, 16  ;;  %v2917_v37 = vshll.u32 %v5993_v22, 16 }
 0x29f   : > { %v7451_v0 = vpop.eup %7450  ;;  %v3097_v49 = vsel %vm8811_vm12, 0, %v3096_v51 }
 0x2a0   : > { %v7453_v36 = vpop.eup %7452  ;;  %3098 = vst [vmem:[#allocation2 + $0x48] sm:$0x1] %v3097_v49  ;;  %v2738_v40 = vmul.f32 %v7451_v0, %v8795_v32  ;;  %v2916_v30 = vrot.slane %v2914_v62, 7 }
 0x2a1   : > { %v7455_v38 = vpop.eup %7454  ;;  %v2736_v1 = vmul.f32 %v7453_v36, %v8801_v54 }
 0x2a2   : > { %v5998_v12 = vpack.c.bf16 %v2738_v40, %v2738_v40  ;;  %v2697_v29 = vadd.f32 1.0, %v7455_v38  ;;  %v2919_v32 = vor.u32 %v2917_v37, %v2916_v30  ;;  %v2921_v8 = vrot.slane %v2916_v30, 4 }
 0x2a3   : > { %v3130_v4 = vld [vmem:[#allocation2 + $0x5c] sm:$0x1]  ;;  %v5996_v10 = vpack.c.bf16 %v2736_v1, %v2736_v1  ;;  %v7457_v17 = vpop.eup %7456 }
 0x2a4   : > { %v3131_v39 = vsel %vm8842_vm14, 0, %v3130_v4  ;;  %v2957_v27 = vshrl.u32 %v5998_v12, 16  ;;  %7458 = vrcp.f32 %v2697_v29  ;;  %v2960_v60 = vshll.u32 %v5998_v12, 16  ;;  %v3068_v12 = vld [vmem:[#allocation2 + $0x68] sm:$0x1] }
 0x2a5   : > { %3132 = vst [vmem:[#allocation2 + $0x5c] sm:$0x1] %v3131_v39  ;;  %v2940_v18 = vshrl.u32 %v5996_v10, 16  ;;  %v2943_v28 = vshll.u32 %v5996_v10, 16  ;;  %v2920_v7 = vsel %vm8818_vm13, %v2912_v3, %v2919_v32  ;;  %v3055_v20 = vsel %vm8811_vm12, %v2921_v8, %v3054_v11 }
 0x2a6   : > { %v2959_v54 = vrot.slane %v2957_v27, 7  ;;  %v2739_v50 = vmul.f32 %v7457_v17, %v8891_v58  ;;  %3053 = vst [vmem:[#allocation2 + $0x4c] sm:$0xf] %v2920_v7  ;;  %3056 = vst [vmem:[#allocation2 + $0x50] sm:$0x1] %v3055_v20 }
 0x2a7   : > { %v2942_v13 = vrot.slane %v2940_v18, 7 }
 0x2a8   : > { %v2962_v46 = vor.u32 %v2960_v60, %v2959_v54  ;;  %v5999_v43 = vpack.c.bf16 %v2739_v50, %v2739_v50  ;;  %v2963_v24 = vrot.slane %v2959_v54, 4 }
 0x2a9   : > { %v2945_v19 = vor.u32 %v2943_v28, %v2942_v13  ;;  %v2946_v29 = vrot.slane %v2942_v13, 4 }
 0x2aa   : > { %v3072_v41 = vsel %vm8805_vm11, %v2962_v46, %v3071_v23  ;;  %v2965_v21 = vshrl.u32 %v5999_v43, 16  ;;  %v2968_v33 = vshll.u32 %v5999_v43, 16 }
 0x2ab   : > { %3073 = vst [vmem:[#allocation2 + $0x6c] sm:$0xf] %v3072_v41  ;;  %v3065_v14 = vsel %vm8805_vm11, %v2945_v19, %v3064_v5 }
 0x2ac   : > { %3066 = vst [vmem:[#allocation2 + $0x60] sm:$0xf] %v3065_v14  ;;  %v2967_v63 = vrot.slane %v2965_v21, 7 }
 0x2ad   : > { %v3127_v58 = vld [vmem:[#allocation2 + $0x50] sm:$0x1] }
 0x2ae   : > { %v7459_v48 = vpop.eup %7458  ;;  %v2970_v6 = vor.u32 %v2968_v33, %v2967_v63  ;;  %v2972_v42 = vrot.slane %v2967_v63, 4  ;;  %v3128_v0 = vsel %vm8842_vm14, 0, %v3127_v58 }
 0x2af   : > { %v2737_v51 = vmul.f32 %v7459_v48, %v8895_v15  ;;  %3129 = vst [vmem:[#allocation2 + $0x50] sm:$0x1] %v3128_v0 }
 0x2b0   : > { %v2971_v57 = vsel %vm8818_vm13, %v2963_v24, %v2970_v6  ;;  %v3076_v2 = vsel %vm8811_vm12, %v2972_v42, %v3075_v52 }
 0x2b1   : > { %v5997_v49 = vpack.c.bf16 %v2737_v51, %v2737_v51  ;;  %3074 = vst [vmem:[#allocation2 + $0x70] sm:$0xf] %v2971_v57  ;;  %3077 = vst [vmem:[#allocation2 + $0x74] sm:$0x1] %v3076_v2 }
 0x2b2   : > { %v3105_v22 = vld [vmem:[#allocation2 + $0x6c] sm:$0x1] }
 0x2b3   : > { %v3106_v36 = vsel %vm8811_vm12, 0, %v3105_v22  ;;  %v3102_v40 = vld [vmem:[#allocation2 + $0x60] sm:$0x1]  ;;  %v2948_v38 = vshrl.u32 %v5997_v49, 16  ;;  %v2951_v1 = vshll.u32 %v5997_v49, 16 }
 0x2b4   : > { %3107 = vst [vmem:[#allocation2 + $0x6c] sm:$0x1] %v3106_v36  ;;  %v3103_v15 = vsel %vm8811_vm12, 0, %v3102_v40 }
 0x2b5   : > { %3104 = vst [vmem:[#allocation2 + $0x60] sm:$0x1] %v3103_v15  ;;  %v2950_v62 = vrot.slane %v2948_v38, 7 }
 0x2b7   : > { %v2953_v4 = vor.u32 %v2951_v1, %v2950_v62  ;;  %v2955_v30 = vrot.slane %v2950_v62, 4 }
 0x2b8   : > { %v3136_v37 = vld [vmem:[#allocation2 + $0x74] sm:$0x1] }
 0x2b9   : > { %v2954_v10 = vsel %vm8818_vm13, %v2946_v29, %v2953_v4  ;;  %v3069_v39 = vsel %vm8811_vm12, %v2955_v30, %v3068_v12  ;;  %v3137_v11 = vsel %vm8842_vm14, 0, %v3136_v37 }
 0x2ba   : > { %3067 = vst [vmem:[#allocation2 + $0x64] sm:$0xf] %v2954_v10  ;;  %3070 = vst [vmem:[#allocation2 + $0x68] sm:$0x1] %v3069_v39 }
 0x2bb   : > { %3138 = vst [vmem:[#allocation2 + $0x74] sm:$0x1] %v3137_v11 }
 0x2bd   : > { %3142 = sbr.rel (%p5857_p8) target bundleno = 708 (0x2c4), region = 48 }
 0x2c1   : > { %v3133_v27 = vld [vmem:[#allocation2 + $0x68] sm:$0x1] }
 0x2c2   : > { %v3134_v3 = vsel %vm8842_vm14, 0, %v3133_v27 }
 0x2c3   : > { %3135 = vst [vmem:[#allocation2 + $0x68] sm:$0x1] %v3134_v3 }
 0x2c4 PF: > { %p5858_p10 = scmp.ne.s32.totalorder %s7718_s21, 1 }
 0x2c5   : > { %v7740_v25 = vmov (!%p5858_p10), 0  }
 0x2c6   : > { %3149 = sbr.rel (%p5858_p10) target bundleno = 717 (0x2cd), region = 52  ;;  %3151 = vst [vmem:[#allocation2 + $0x6c] sm:$0xf] (!%p5858_p10), %v7740_v25  ;;  %3152 = vst [vmem:[#allocation2 + $0x70] sm:$0xf] (!%p5858_p10), %v7740_v25 }
 0x2c7   : > { %3153 = vst [vmem:[#allocation2 + $0x74] sm:$0x1] (!%p5858_p10), %v7740_v25 }
 0x2cd PF: > { %v7462_v56 = vld [vmem:[#allocation3 + $0x40] sm:$0xff]   ;;  %v7463_v32 = vld [vmem:[#allocation3 + $0x48] sm:$0xff]   ;;  %v7464_v8 = vld [vmem:[#allocation3 + $0x50] sm:$0xff]   ;;  %vm5380_vm15 = vcmask 1046528   ;;  %s6000_s17 = sshll.u32 %s7718_s21, 4  ;;  %s5975_s27 = sshll.u32 %s7722_s22, 5 }
 0x2ce   : > { %6631 = vmatprep.subr.bf16.mxu1 %v7462_v56  ;;  %v7465_v18 = vld [vmem:[#allocation3 + $0x58] sm:$0xff]   ;;  %v8978_v17 = vld [vmem:[#allocation2] sm:$0xf]  ;;  %v8980_v54 = vld [vmem:[#allocation2 + $0x4] sm:$0xf]  ;;  %s5483_s6 = sadd.s32 %s6000_s17, %s5975_s27  ;;  %s5486_s22 = sshll.u32 %s8974_s15, 4  ;;  %s9505_s22 = int_to_ptr.vmem [resolvable:$true] %s5486_s22 }
 0x2cf   : > { %6632 = vmatpush3.bf16.msra.mxu1 %v7462_v56  ;;  %v8982_v60 = vld [vmem:[#allocation2 + $0x8] sm:$0x1]  ;;  %v3201_v28 = vshrl.u32 %v8978_v17, 16  ;;  %v3204_v7 = vshll.u32 %v8978_v17, 16  ;;  %v3210_v20 = vshll.u32 %v8980_v54, 16  ;;  %v3214_v23 = vshrl.u32 %v8980_v54, 16 }
 0x2d0   : > { %6633 = vmatprep.subr.bf16.mxu1 %v7463_v32  ;;  %v8988_v13 = vld [vmem:[#allocation2 + $0xc] sm:$0xf]  ;;  %v3220_v50 = vshll.u32 %v8982_v60, 16  ;;  %v8991_v46 = vld [vmem:[#allocation2 + $0x10] sm:$0xf]  ;;  %v7466_v14 = vld [vmem:[#allocation3 + $0x60] sm:$0xff]  }
 0x2d1   : > { %v3203_v5 = vrot.slane %v3201_v28, 4  ;;  %v3206_v19 = vrot.slane %v3204_v7, 5  ;;  %v3212_v43 = vrot.slane %v3210_v20, 5  ;;  %v3216_v41 = vrot.slane %v3214_v23, 4  ;;  %v3159_v24 = vld [vmem:[#allocation2 + $0x14] sm:$0x1] }
 0x2d2   : > { %v3225_v21 = vshrl.u32 %v8988_v13, 16  ;;  %v3228_v63 = vshll.u32 %v8988_v13, 16  ;;  %v3234_v33 = vshll.u32 %v8991_v46, 16  ;;  %v3222_v58 = vrot.slane %v3220_v50, 5  ;;  %v9000_v36 = vld [vmem:[#allocation2 + $0x18] sm:$0xf] }
 0x2d3   : > { %6634 = vmatpush3.bf16.msra.mxu1 %v7463_v32  ;;  %v3207_v48 = vor.u32 %v3206_v19, %v3203_v5  ;;  %v3217_v52 = vor.u32 %v3216_v41, %v3212_v43  ;;  %v3238_v6 = vshrl.u32 %v8991_v46, 16  ;;  %v9588_v57 = vrot.slane %v8991_v46, 5  ;;  %v7467_v40 = vld [vmem:[#allocation3 + $0x68] sm:$0xff]   ;;  %v9004_v12 = vld [vmem:[#allocation2 + $0x1c] sm:$0xf]  ;;  %v7468_v11 = vld [vmem:[#allocation3 + $0x70] sm:$0xff]  }
 0x2d4   : > { %6635 = vmatprep.subr.bf16.mxu1 %v7464_v8  ;;  %v3227_v42 = vrot.slane %v3225_v21, 4  ;;  %v3230_v51 = vrot.slane %v3228_v63, 5  ;;  %v8997_v0 = vrot.slane %v3234_v33, 5  ;;  %v3244_v15 = vshll.u32 %v3159_v24, 16  ;;  %v9011_v37 = vld [vmem:[#allocation2 + $0x20] sm:$0x1] }
 0x2d5   : > { %v3208_v2 = vrot.slane %v3207_v48, 4  ;;  %v3218_v49 = vrot.slane %v3217_v52, 4  ;;  %v3240_v22 = vrot.slane %v3238_v6, 4  ;;  %v3798_v62 = vrot.slane %v9588_v57, 4  ;;  %v9014_v39 = vld [vmem:[#allocation2 + $0x24] sm:$0xf] }
 0x2d6   : > { %v3231_v38 = vor.u32 %v3230_v51, %v3227_v42  ;;  %v3799_v1 = vrot.slane %v3159_v24, 5  ;;  %v3249_v10 = vshrl.u32 %v9000_v36, 16  ;;  %v3252_v25 = vshll.u32 %v9000_v36, 16  ;;  %v9021_v56 = vld [vmem:[#allocation2 + $0x28] sm:$0xf]  ;;  %v7473_v57 = vld [vmem:[#allocation3 + $0x18] sm:$0xff]  }
 0x2d7   : > { %6636 = vmatpush3.bf16.msra.mxu1 %v7464_v8  ;;  %v3213_v29 = vsel %vm8178_vm5, %v3208_v2, %v3212_v43  ;;  %v3223_v4 = vsel %vm8178_vm5, %v3218_v49, %v3222_v58  ;;  %v3241_v30 = vor.u32 %v3240_v22, %v8997_v0  ;;  %v3262_v28 = vshrl.u32 %v9004_v12, 16  ;;  %v9026_v7 = vld [vmem:[#allocation2 + $0x2c] sm:$0x1]  ;;  %v9034_v52 = vld [vmem:[#allocation2 + $0x30] sm:$0xf]  ;;  %s5976_s21 = sshll.u32 %s5483_s6, 7 }
 0x2d8   : > { %6637 = vmatprep.subr.bf16.mxu1 %v7465_v18  ;;  %v5859_v27 = vcombine.low %v3213_v29, %v3223_v4  ;;  %v3232_v3 = vrot.slane %v3231_v38, 4  ;;  %v9018_v26 = vsel %vm8065_vm2, %v3798_v62, %v3799_v1  ;;  %v3251_v8 = vrot.slane %v3249_v10, 4  ;;  %v7469_v58 = vld [vmem:[#allocation3 + $0x78] sm:$0xff]   ;;  %v9045_v29 = vld [vmem:[#allocation2 + $0x38] sm:$0x1]  ;;  %s9503_s26 = scalar_lea.hbm %s9569_s5, %s5976_s21  ;;  %s9512_s10 = scalar_lea.sflag [#allocation5], %s244_s11 }
 0x2d9   : > { %v3246_v20 = vrot.slane %v3244_v15, 5  ;;  %v3254_v23 = vrot.slane %v3252_v25, 5  ;;  %v3268_v50 = vshll.u32 %v9011_v37, 16  ;;  %v3273_v5 = vshrl.u32 %v9014_v39, 16  ;;  %v9039_v22 = vld [vmem:[#allocation2 + $0x34] sm:$0xf] }
 0x2da   : > { %6647 = vmatprep.mubr.bf16.mxu1 %v5859_v27  ;;  %v3242_v19 = vrot.slane %v3241_v30, 4  ;;  %v3264_v41 = vrot.slane %v3262_v28, 4  ;;  %v3237_v21 = vsel %vm8178_vm5, %v3232_v3, %v8997_v0  ;;  %v3282_v42 = vshll.u32 %v9021_v56, 16  ;;  %v7470_v30 = vld [vmem:[#allocation3] sm:$0xff]   ;;  %s7636_s30 = scalar_lea.vmem %s9505_s22, 2048  ;;  %p9677_p0 = scmp.ne.s32.totalorder %s9591_s7, 0 }
 0x2db   : > { %6638 = vmatpush3.bf16.msra.mxu1 %v7465_v18  ;;  %v3258_v18 = vshll.u32 %v9004_v12, 16  ;;  %v3255_v63 = vor.u32 %v3254_v23, %v3251_v8  ;;  %v3270_v33 = vrot.slane %v3268_v50, 5  ;;  %v3275_v48 = vrot.slane %v3273_v5, 4  ;;  %v9051_v25 = vld [vmem:[#allocation2 + $0x3c] sm:$0xf]  ;;  %p7637_p12 = scmp.ne.s32.totalorder %s9505_s22, %s7636_s30  ;;  %s7741_s12 = smov [#allocation6]  }
 0x2dc   : > { %6639 = vmatprep.subr.bf16.mxu1 %v7466_v14  ;;  %v3286_v51 = vshrl.u32 %v9021_v56, 16  ;;  %v3292_v49 = vshll.u32 %v9026_v7, 16  ;;  %v3297_v0 = vshrl.u32 %v9034_v52, 16  ;;  %v3300_v38 = vshll.u32 %v9034_v52, 16  ;;  %v9053_v8 = vld [vmem:[#allocation2 + $0x40] sm:$0xf] }
 0x2dd   : > { %v3260_v43 = vrot.slane %v3258_v18, 5  ;;  %v3256_v2 = vrot.slane %v3255_v63, 4  ;;  %v3247_v4 = vsel %vm8178_vm5, %v3242_v19, %v3246_v20  ;;  %v3306_v50 = vshll.u32 %v9039_v22, 16  ;;  %p7638_p2 = pnand %p7637_p12, %p9677_p0  ;;  %s7640_s14 = sshll.u32 %s7741_s12, 4  ;;  %s7641_s14 = int_to_ptr.vmem [resolvable:$false] %s7640_s14 }
 0x2de   : > { %v3288_v1 = vrot.slane %v3286_v51, 4  ;;  %v3299_v27 = vrot.slane %v3297_v0, 4  ;;  %v3302_v3 = vrot.slane %v3300_v38, 5  ;;  %v3310_v5 = vshrl.u32 %v9039_v22, 16  ;;  %v9076_v0 = vld [vmem:[#allocation2 + $0x4c] sm:$0xf]  ;;  %p7643_p6 = scmp.lt.s32.totalorder %s9505_s22, %s7641_s14 }
 0x2df   : > { %6640 = vmatpush3.bf16.msra.mxu1 %v7466_v14  ;;  %v3276_v14 = vshll.u32 %v9014_v39, 16  ;;  %v3265_v24 = vor.u32 %v3264_v41, %v3260_v43  ;;  %v3261_v10 = vsel %vm8178_vm5, %v3256_v2, %v3260_v43  ;;  %v3316_v19 = vshll.u32 %v9045_v29, 16  ;;  %v7471_v38 = vld [vmem:[#allocation3 + $0x8] sm:$0xff]   ;;  %p7639_p5 = pneg %p7638_p2  ;;  %s7642_s17 = scalar_lea.vmem %s7641_s14, 4096 }
 0x2e0   : > { %6641 = vmatprep.subr.bf16.mxu1 %v7467_v40  ;;  %v3303_v20 = vor.u32 %v3302_v3, %v3299_v27  ;;  %v9061_v43 = vcombine.low %v3237_v21, %v3247_v4  ;;  %v3294_v41 = vrot.slane %v3292_v49, 5  ;;  %v3330_v2 = vshll.u32 %v9053_v8, 16  ;;  %v9078_v4 = vld [vmem:[#allocation2 + $0x50] sm:$0x1]  ;;  %p7644_p7 = scmp.lt.s32.totalorder %s7642_s17, %s7636_s30 }
 0x2e1   : > { %v3278_v6 = vrot.slane %v3276_v14, 5  ;;  %v3266_v15 = vrot.slane %v3265_v24, 4  ;;  %v3308_v14 = vrot.slane %v3306_v50, 5  ;;  %v9069_v24 = vld [vmem:[#allocation2 + $0x44] sm:$0x1]  ;;  %v3334_v49 = vshrl.u32 %v9053_v8, 16 }
 0x2e2   : > { %p7645_p9 = por %p7644_p7, %p7643_p6 }
 0x2e3   : > { %6642 = vmatpush3.bf16.msra.mxu1 %v7467_v40  ;;  %v3279_v62 = vor.u32 %v3278_v6, %v3275_v48  ;;  %v9043_v40 = vrot.slane %v3282_v42, 5  ;;  %v3271_v18 = vsel %vm8178_vm5, %v3266_v15, %v3270_v33  ;;  %v3312_v48 = vrot.slane %v3310_v5, 4  ;;  %v9072_v42 = vld [vmem:[#allocation2 + $0x48] sm:$0xf] }
 0x2e4   : > { %6643 = vmatprep.subr.bf16.mxu1 %v7468_v11  ;;  %v9064_v63 = vcombine.low %v3261_v10, %v3271_v18  ;;  %v3324_v6 = vshll.u32 %v9051_v25, 16  ;;  %v3304_v15 = vrot.slane %v3303_v20, 4  ;;  %v9080_v10 = vrot.slane %v3330_v2, 5  ;;  %v9084_v18 = vld [vmem:[#allocation2 + $0x54] sm:$0xf]  ;;  %p7646_p11 = pnand %p7645_p9, %p7639_p5 }
 0x2e5   : > { %v3280_v28 = vrot.slane %v3279_v62, 4  ;;  %v3289_v23 = vor.u32 %v3288_v1, %v9043_v40  ;;  %v3313_v62 = vor.u32 %v3312_v48, %v3308_v14  ;;  %v3336_v27 = vrot.slane %v3334_v49, 4  ;;  %v9094_v2 = vld [vmem:[#allocation2 + $0x58] sm:$0xf] }
 0x2e6   : > { %v3326_v1 = vrot.slane %v3324_v6, 5  ;;  %v3345_v3 = vshrl.u32 %v9072_v42, 16  ;;  %v3348_v20 = vshll.u32 %v9072_v42, 16  ;;  %v3354_v5 = vshll.u32 %v9076_v0, 16 }
 0x2e7   : > { %6644 = vmatpush3.bf16.msra.mxu1 %v7468_v11  ;;  %v3321_v11 = vshrl.u32 %v9051_v25, 16  ;;  %v3285_v33 = vsel %vm8178_vm5, %v3280_v28, %v9043_v40  ;;  %v3290_v21 = vrot.slane %v3289_v23, 4  ;;  %v3318_v40 = vrot.slane %v3316_v19, 5  ;;  %v7472_v28 = vld [vmem:[#allocation3 + $0x10] sm:$0xff]  }
 0x2e8   : > { %6645 = vmatprep.subr.bf16.mxu1 %v7469_v58  ;;  %v3314_v23 = vrot.slane %v3313_v62, 4  ;;  %v3347_v48 = vrot.slane %v3345_v3, 4  ;;  %v3358_v6 = vshrl.u32 %v9076_v0, 16  ;;  %v3356_v62 = vrot.slane %v3354_v5, 5 }
 0x2e9   : > { %v3323_v51 = vrot.slane %v3321_v11, 4  ;;  %v3295_v19 = vsel %vm8178_vm5, %v3290_v21, %v3294_v41  ;;  %v3337_v11 = vor.u32 %v3336_v27, %v9080_v10  ;;  %v3364_v27 = vshll.u32 %v9078_v4, 16 }
 0x2ea   : > { %v3319_v49 = vsel %vm8178_vm5, %v3314_v23, %v3318_v40  ;;  %v3360_v21 = vrot.slane %v3358_v6, 4  ;;  %v9103_v3 = vcombine.low %v3285_v33, %v3295_v19  ;;  %v3369_v53 = vshrl.u32 %v9084_v18, 16 }
 0x2eb   : > { %6646 = vmatpush3.bf16.msra.mxu1 %v7469_v58  ;;  %v3340_v58 = vshll.u32 %v9069_v24, 16  ;;  %v3327_v50 = vor.u32 %v3326_v1, %v3323_v51  ;;  %v3309_v51 = vsel %vm8178_vm5, %v3304_v15, %v3308_v14  ;;  %v9100_v1 = vld [vmem:[#allocation2 + $0x5c] sm:$0x1]  ;;  %v3372_v14 = vshll.u32 %v9084_v18, 16 }
 0x2ec   : > { %6663 = vmatprep.subr.bf16.mxu1 %v7470_v30  ;;  %v9107_v15 = vcombine.low %v3309_v51, %v3319_v49  ;;  %v3338_v40 = vrot.slane %v3337_v11, 4  ;;  %v3361_v23 = vor.u32 %v3360_v21, %v3356_v62  ;;  %v3371_v5 = vrot.slane %v3369_v53, 4 }
 0x2ed   : > { %v3328_v32 = vrot.slane %v3327_v50, 4  ;;  %v3342_v41 = vrot.slane %v3340_v58, 5  ;;  %v3366_v50 = vrot.slane %v3364_v27, 5  ;;  %v3374_v6 = vrot.slane %v3372_v14, 5 }
 0x2ee   : > { %6648 = vmatmul.mubr.bf16.vlgmr.msra.gmra.mrb[20].mxu1 %v9061_v43  ;;  %v3362_v33 = vrot.slane %v3361_v23, 4  ;;  %v5875_v23 = vcombine.low %v8978_v17, %v8980_v54 }
 0x2ef   : > { %6664 = vmatpush3.bf16.msra.mxu1 %v7470_v30  ;;  %6651 = vmatprep.mubr.bf16.mxu1 %v9064_v63  ;;  %v3350_v30 = vrot.slane %v3348_v20, 5  ;;  %v3378_v20 = vshll.u32 %v9094_v2, 16  ;;  %v3333_v11 = vsel %vm8178_vm5, %v3328_v32, %v9080_v10  ;;  %v3343_v53 = vsel %vm8178_vm5, %v3338_v40, %v3342_v41  ;;  %v7475_v32 = vld [vmem:[#allocation3 + $0x28] sm:$0xff]  }
 0x2f0   : > { %6665 = vmatprep.subr.bf16.mxu1 %v7471_v38  ;;  %v3367_v21 = vsel %vm8178_vm5, %v3362_v33, %v3366_v50  ;;  %v5891_v10 = vrot.slane %v8978_v17, 9  ;;  %v3789_v41 = vrot.slane %v8980_v54, 5  ;;  %v5892_v40 = vrot.slane %v8988_v13, 9 }
 0x2f1   : > { %v3351_v55 = vor.u32 %v3350_v30, %v3347_v48  ;;  %v3380_v19 = vrot.slane %v3378_v20, 5  ;;  %v3382_v48 = vshrl.u32 %v9094_v2, 16  ;;  %v3388_v30 = vshll.u32 %v9100_v1, 16 }
 0x2f2   : > { %v9125_v20 = vcombine.low %v3333_v11, %v3343_v53  ;;  %v3791_v33 = vrot.slane %v3789_v41, 4  ;;  %v3806_v11 = vrot.slane %v9011_v37, 5  ;;  %v5894_v53 = vrot.slane %v9014_v39, 9 }
 0x2f3   : > { %6666 = vmatpush3.bf16.msra.mxu1 %v7471_v38  ;;  %v3352_v58 = vrot.slane %v3351_v55, 4  ;;  %v3375_v38 = vor.u32 %v3374_v6, %v3371_v5  ;;  %v7474_v55 = vld [vmem:[#allocation3 + $0x20] sm:$0xff]   ;;  %v3384_v51 = vrot.slane %v3382_v48, 4  ;;  %v5893_v5 = vrot.slane %v9000_v36, 9 }
 0x2f4   : > { %6667 = vmatprep.subr.bf16.mxu1 %v7472_v28  ;;  %v9137_v6 = vsel %vm8065_vm2, %v5891_v10, %v3789_v41  ;;  %v9659_v48 = vrot.slane %v8991_v46, 5  ;;  %v7476_v10 = vld [vmem:[#allocation3 + $0x30] sm:$0xff]   ;;  %v9221_v17 = vcombine.low %v9000_v36, %v9004_v12  ;;  %v9233_v36 = vcombine.low %v9034_v52, %v9039_v22 }
 0x2f5   : > { %v3357_v49 = vsel %vm8178_vm5, %v3352_v58, %v3356_v62  ;;  %v3376_v27 = vrot.slane %v3375_v38, 4  ;;  %v3385_v14 = vor.u32 %v3384_v51, %v3380_v19 }
 0x2f6   : > { %6652 = vmatmul.mubr.bf16.gmra.mrb[24].mxu1 %v9103_v3  ;;  %v9130_v62 = vcombine.low %v3357_v49, %v3367_v21  ;;  %v9660_v49 = vrot.slane %v8982_v60, 5  ;;  %v5895_v60 = vrot.slane %v9034_v52, 9  ;;  %v7492_v52 = vld [vmem:[#allocation3 + $0xb0] sm:$0xff]  }
 0x2f7   : > { %6668 = vmatpush3.bf16.msra.mxu1 %v7472_v28  ;;  %6655 = vmatprep.mubr.bf16.mxu1 %v9107_v15  ;;  %v3390_v28 = vrot.slane %v3388_v30, 5  ;;  %v3381_v58 = vsel %vm8178_vm5, %v3376_v27, %v3380_v19  ;;  %v3386_v50 = vrot.slane %v3385_v14, 4  ;;  %v3797_v30 = vsel %vm8065_vm2, %v5892_v40, %v9659_v48  ;;  %v7477_v48 = vld [vmem:[#allocation3 + $0x38] sm:$0xff]  }
 0x2f8   : > { %6669 = vmatprep.subr.bf16.mxu1 %v7473_v57  ;;  %v9147_v19 = vcombine.low %v3797_v30, %v9018_v26  ;;  %v9158_v21 = vsel %vm8065_vm2, %v3791_v33, %v9660_v49  ;;  %v3810_v26 = vrot.slane %v9021_v56, 5  ;;  %v3813_v14 = vrot.slane %v9026_v7, 5 }
 0x2f9   : > { %v3391_v38 = vsel %vm8178_vm5, %v3386_v50, %v3390_v28  ;;  %v5899_v37 = vcombine.low %v9137_v6, %v9158_v21  ;;  %v3817_v40 = vrot.slane %v9039_v22, 5  ;;  %v3824_v7 = vrot.slane %v9053_v8, 5  ;;  %v7499_v6 = vld [vmem:[#allocation3 + $0xe8] sm:$0xff]   ;;  %v7500_v21 = vld [vmem:[#allocation3 + $0xf0] sm:$0xff]  }
 0x2fa   : > { %v9152_v51 = vcombine.low %v3381_v58, %v3391_v38  ;;  %v5896_v58 = vrot.slane %v9051_v25, 9  ;;  %v3812_v33 = vrot.slane %v3810_v26, 4  ;;  %v3827_v38 = vrot.slane %v9069_v24, 5 }
 0x2fb   : > { %6670 = vmatpush3.bf16.msra.mxu1 %v7473_v57  ;;  %v3803_v57 = vrot.slane %v9004_v12, 5  ;;  %v3818_v30 = vsel %vm8065_vm2, %v5895_v60, %v3817_v40  ;;  %v3834_v24 = vrot.slane %v9078_v4, 5  ;;  %v5898_v60 = vrot.slane %v9084_v18, 9  ;;  %v7485_v12 = vld [vmem:[#allocation3 + $0x98] sm:$0xff]  }
 0x2fc   : > { %6671 = vmatprep.subr.bf16.mxu1 %v7474_v55  ;;  %v3825_v49 = vsel %vm8065_vm2, %v5896_v58, %v3824_v7  ;;  %v9249_v22 = vcombine.low %v9084_v18, %v9094_v2  ;;  %v7497_v18 = vld [vmem:[#allocation3 + $0xd8] sm:$0xff]  }
 0x2fd   : > { %v3804_v27 = vsel %vm8065_vm2, %v5893_v5, %v3803_v57  ;;  %v3805_v28 = vrot.slane %v3803_v57, 4  ;;  %v3811_v5 = vsel %vm8065_vm2, %v5894_v53, %v3810_v26  ;;  %v3819_v57 = vrot.slane %v3817_v40, 4 }
 0x2fe   : > { %6656 = vmatmul.mubr.bf16.gmra.mrb[28].mxu1 %v9125_v20  ;;  %v3826_v53 = vrot.slane %v3824_v7, 4 }
 0x2ff   : > { %6672 = vmatpush3.bf16.msra.mxu1 %v7474_v55  ;;  %6659 = vmatprep.mubr.bf16.mxu1 %v9130_v62  ;;  %v3807_v41 = vsel %vm8065_vm2, %v3805_v28, %v3806_v11  ;;  %v3820_v55 = vrot.slane %v9045_v29, 5  ;;  %v5897_v11 = vrot.slane %v9072_v42, 9  ;;  %v3814_v29 = vsel %vm8065_vm2, %v3812_v33, %v3813_v14  ;;  %v7480_v33 = vld [vmem:[#allocation3 + $0x80] sm:$0xff]  }
 0x300   : > { %6673 = vmatprep.subr.bf16.mxu1 %v7475_v32  ;;  %v9173_v50 = vcombine.low %v3804_v27, %v3807_v41  ;;  %v3831_v27 = vrot.slane %v9076_v0, 5  ;;  %v9187_v28 = vcombine.low %v3811_v5, %v3814_v29  ;;  %v3828_v14 = vsel %vm8065_vm2, %v3826_v53, %v3827_v38  ;;  %v7503_v29 = vld [vmem:[#allocation3 + $0x108] sm:$0xff]   ;;  %v7505_v53 = vld [vmem:[#allocation3 + $0x118] sm:$0xff]  }
 0x301   : > { %v3821_v26 = vsel %vm8065_vm2, %v3819_v57, %v3820_v55  ;;  %v9200_v58 = vcombine.low %v3825_v49, %v3828_v14  ;;  %v3838_v5 = vrot.slane %v9094_v2, 5  ;;  %v3841_v55 = vrot.slane %v9100_v1, 5  ;;  %v7498_v2 = vld [vmem:[#allocation3 + $0xe0] sm:$0xff]   ;;  %v7504_v49 = vld [vmem:[#allocation3 + $0x110] sm:$0xff]  }
 0x302   : > { %v3832_v41 = vsel %vm8065_vm2, %v5897_v11, %v3831_v27  ;;  %v3833_v40 = vrot.slane %v3831_v27, 4  ;;  %v9215_v38 = vcombine.low %v8988_v13, %v8991_v46  ;;  %v7484_v13 = vld [vmem:[#allocation3 + $0x90] sm:$0xff]   ;;  %v9229_v46 = vcombine.low %v9014_v39, %v9021_v56  ;;  %v7489_v56 = vld [vmem:[#allocation3 + $0xa8] sm:$0xff]   ;;  %v7502_v11 = vld [vmem:[#allocation3 + $0x100] sm:$0xff]  }
 0x303   : > { %6674 = vmatpush3.bf16.msra.mxu1 %v7475_v32  ;;  %v9193_v32 = vcombine.low %v3818_v30, %v3821_v26  ;;  %v3839_v30 = vsel %vm8065_vm2, %v5898_v60, %v3838_v5  ;;  %v3840_v57 = vrot.slane %v3838_v5, 4  ;;  %v9243_v39 = vcombine.low %v9072_v42, %v9076_v0  ;;  %v7495_v42 = vld [vmem:[#allocation3 + $0xc8] sm:$0xff]   ;;  %v7496_v0 = vld [vmem:[#allocation3 + $0xd0] sm:$0xff]   ;;  %v7506_v27 = vld [vmem:[#allocation3 + $0x120] sm:$0xff]  }
 0x304   : > { %6675 = vmatprep.subr.bf16.mxu1 %v7476_v10  ;;  %v3835_v4 = vsel %vm8065_vm2, %v3833_v40, %v3834_v24  ;;  %v7507_v26 = vld [vmem:[#allocation3 + $0x128] sm:$0xff]   ;;  %v7509_v14 = vld [vmem:[#allocation3 + $0x130] sm:$0xff]   ;;  %v7510_v40 = vld [vmem:[#allocation3 + $0x138] sm:$0xff]  }
 0x305   : > { %v9209_v7 = vcombine.low %v3832_v41, %v3835_v4  ;;  %v3842_v1 = vsel %vm8065_vm2, %v3840_v57, %v3841_v55  ;;  %v9269_v24 = vld [vmem:[#allocation2 + $0x60] sm:$0xf]  ;;  %v9271_v60 = vld [vmem:[#allocation2 + $0x64] sm:$0xf]  ;;  %v7511_v5 = vld [vmem:[#allocation3 + $0x140] sm:$0xff]  }
 0x306   : > { %6660 = vmatmul.mubr.bf16.gmra.mrb[32].mxu1 %v9152_v51  ;;  %v9223_v54 = vcombine.low %v3839_v30, %v3842_v1  ;;  %v9275_v41 = vcombine.low %v9269_v24, %v9271_v60  ;;  %v7512_v55 = vld [vmem:[#allocation3 + $0x148] sm:$0xff]   ;;  %v4238_v4 = vshrl.u32 %v9269_v24, 16  ;;  %v4247_v30 = vshll.u32 %v9271_v60, 16 }
 0x307   : > { %6676 = vmatpush3.bf16.msra.mxu1 %v7476_v10  ;;  %6679 = vmatprep.mubr.bf16.mxu1 %v5875_v23  ;;  %v7481_v23 = vld [vmem:[#allocation3 + $0x88] sm:$0xff]   ;;  %v7488_v10 = vld [vmem:[#allocation3 + $0xa0] sm:$0xff]   ;;  %v4251_v57 = vshrl.u32 %v9271_v60, 16 }
 0x308   : > { %6677 = vmatprep.subr.bf16.mxu1 %v7477_v48 }
 0x30b   : > { %6678 = vmatpush3.bf16.msra.mxu1 %v7477_v48  ;;  %v9239_v48 = vcombine.low %v9051_v25, %v9053_v8  ;;  %v7493_v25 = vld [vmem:[#allocation3 + $0xb8] sm:$0xff]   ;;  %v7494_v8 = vld [vmem:[#allocation3 + $0xc0] sm:$0xff]  }
 0x30c   : > { %6695 = vmatprep.subr.bf16.mxu1 %v7480_v33 }
 0x30e   : > { %6680 = vmatmul.mubr.bf16.vlgmr.msra.gmra.mrb[20].mxu1 %v9215_v38 }
 0x30f   : > { %6696 = vmatpush3.bf16.msra.mxu1 %v7480_v33  ;;  %6683 = vmatprep.mubr.bf16.mxu1 %v9221_v17  ;;  %v4241_v33 = vshll.u32 %v9269_v24, 16 }
 0x310   : > { %6697 = vmatprep.subr.bf16.mxu1 %v7481_v23 }
 0x311   : > { %v4243_v1 = vrot.slane %v4241_v33, 5 }
 0x313   : > { %6698 = vmatpush3.bf16.msra.mxu1 %v7481_v23  ;;  %v4249_v23 = vrot.slane %v4247_v30, 5  ;;  %v7525_v30 = vld [vmem:[#allocation3 + $0x1b0] sm:$0xff]  }
 0x314   : > { %6699 = vmatprep.subr.bf16.mxu1 %v7484_v13 }
 0x316   : > { %6684 = vmatmul.mubr.bf16.gmra.mrb[24].mxu1 %v9229_v46 }
 0x317   : > { %6700 = vmatpush3.bf16.msra.mxu1 %v7484_v13  ;;  %6687 = vmatprep.mubr.bf16.mxu1 %v9233_v36  ;;  %v4253_v13 = vrot.slane %v4251_v57, 4 }
 0x318   : > { %6701 = vmatprep.subr.bf16.mxu1 %v7485_v12 }
 0x31b   : > { %6702 = vmatpush3.bf16.msra.mxu1 %v7485_v12  ;;  %v7514_v12 = vld [vmem:[#allocation3 + $0x158] sm:$0xff]  }
 0x31c   : > { %6703 = vmatprep.subr.bf16.mxu1 %v7488_v10 }
 0x31e   : > { %6688 = vmatmul.mubr.bf16.gmra.mrb[28].mxu1 %v9239_v48 }
 0x31f   : > { %6704 = vmatpush3.bf16.msra.mxu1 %v7488_v10  ;;  %6691 = vmatprep.mubr.bf16.mxu1 %v9243_v39  ;;  %v3180_v10 = vld [vmem:[#allocation2 + $0x68] sm:$0x1] }
 0x320   : > { %6705 = vmatprep.subr.bf16.mxu1 %v7489_v56 }
 0x323   : > { %6706 = vmatpush3.bf16.msra.mxu1 %v7489_v56 }
 0x324   : > { %6707 = vmatprep.subr.bf16.mxu1 %v7492_v52 }
 0x326   : > { %6692 = vmatmul.mubr.bf16.gmra.mrb[32].mxu1 %v9249_v22 }
 0x327   : > { %6708 = vmatpush3.bf16.msra.mxu1 %v7492_v52  ;;  %6711 = vmatprep.mubr.bf16.mxu1 %v5899_v37  ;;  %v7501_v37 = vld [vmem:[#allocation3 + $0xf8] sm:$0xff]   ;;  %v4254_v52 = vor.u32 %v4253_v13, %v4249_v23  ;;  %v7532_v13 = vld [vmem:[#allocation3 + $0x1e8] sm:$0xff]  }
 0x328   : > { %6709 = vmatprep.subr.bf16.mxu1 %v7493_v25 }
 0x32b   : > { %6710 = vmatpush3.bf16.msra.mxu1 %v7493_v25  ;;  %v4257_v25 = vshll.u32 %v3180_v10, 16 }
 0x32c   : > { %6727 = vmatprep.subr.bf16.mxu1 %v7494_v8 }
 0x32e   : > { %6712 = vmatmul.mubr.bf16.vlgmr.msra.gmra.mrb[20].mxu1 %v9147_v19 }
 0x32f   : > { %6728 = vmatpush3.bf16.msra.mxu1 %v7494_v8  ;;  %6715 = vmatprep.mubr.bf16.mxu1 %v9173_v50  ;;  %v7515_v8 = vld [vmem:[#allocation3 + $0x160] sm:$0xff]  }
 0x330   : > { %6729 = vmatprep.subr.bf16.mxu1 %v7495_v42 }
 0x333   : > { %6730 = vmatpush3.bf16.msra.mxu1 %v7495_v42 }
 0x334   : > { %6731 = vmatprep.subr.bf16.mxu1 %v7496_v0 }
 0x336   : > { %6716 = vmatmul.mubr.bf16.gmra.mrb[24].mxu1 %v9187_v28 }
 0x337   : > { %6732 = vmatpush3.bf16.msra.mxu1 %v7496_v0  ;;  %6719 = vmatprep.mubr.bf16.mxu1 %v9193_v32  ;;  %v4255_v0 = vrot.slane %v4254_v52, 4 }
 0x338   : > { %6733 = vmatprep.subr.bf16.mxu1 %v7497_v18 }
 0x33b   : > { %6734 = vmatpush3.bf16.msra.mxu1 %v7497_v18  ;;  %v4259_v18 = vrot.slane %v4257_v25, 5 }
 0x33c   : > { %6735 = vmatprep.subr.bf16.mxu1 %v7498_v2 }
 0x33e   : > { %6720 = vmatmul.mubr.bf16.gmra.mrb[28].mxu1 %v9200_v58 }
 0x33f   : > { %6736 = vmatpush3.bf16.msra.mxu1 %v7498_v2  ;;  %6723 = vmatprep.mubr.bf16.mxu1 %v9209_v7  ;;  %v7516_v2 = vld [vmem:[#allocation3 + $0x168] sm:$0xff]  }
 0x340   : > { %6737 = vmatprep.subr.bf16.mxu1 %v7499_v6 }
 0x343   : > { %6738 = vmatpush3.bf16.msra.mxu1 %v7499_v6 }
 0x344   : > { %6739 = vmatprep.subr.bf16.mxu1 %v7500_v21 }
 0x346   : > { %6724 = vmatmul.mubr.bf16.gmra.mrb[32].mxu1 %v9223_v54 }
 0x347   : > { %6740 = vmatpush3.bf16.msra.mxu1 %v7500_v21  ;;  %6743 = vmatprep.mubr.bf16.mxu1 %v9215_v38  ;;  %v4240_v38 = vrot.slane %v4238_v4, 4  ;;  %v4260_v21 = vsel %vm8178_vm5, %v4255_v0, %v4259_v18  ;;  %v7524_v4 = vld [vmem:[#allocation3 + $0x1a8] sm:$0xff]  }
 0x348   : > { %6741 = vmatprep.subr.bf16.mxu1 %v7501_v37 }
 0x349   : > { %v4244_v56 = vor.u32 %v4243_v1, %v4240_v38  ;;  %v7528_v38 = vld [vmem:[#allocation3 + $0x1c8] sm:$0xff]   ;;  %v7529_v1 = vld [vmem:[#allocation3 + $0x1d0] sm:$0xff]  }
 0x34b   : > { %6742 = vmatpush3.bf16.msra.mxu1 %v7501_v37  ;;  %v4245_v42 = vrot.slane %v4244_v56, 4  ;;  %v7517_v37 = vld [vmem:[#allocation3 + $0x170] sm:$0xff]  }
 0x34c   : > { %6759 = vmatprep.subr.bf16.mxu1 %v7502_v11 }
 0x34d   : > { %v4250_v6 = vsel %vm8178_vm5, %v4245_v42, %v4249_v23  ;;  %v7530_v23 = vld [vmem:[#allocation3 + $0x1d8] sm:$0xff]  }
 0x34e   : > { %6744 = vmatmul.mubr.bf16.vlgmr.msra.gmra.mrb[20].mxu1 %v9221_v17 }
 0x34f   : > { %6760 = vmatpush3.bf16.msra.mxu1 %v7502_v11  ;;  %6747 = vmatprep.mubr.bf16.mxu1 %v9229_v46  ;;  %v9293_v11 = vcombine.low %v4250_v6, %v4260_v21 }
 0x350   : > { %6761 = vmatprep.subr.bf16.mxu1 %v7503_v29 }
 0x353   : > { %6762 = vmatpush3.bf16.msra.mxu1 %v7503_v29  ;;  %v7518_v29 = vld [vmem:[#allocation3 + $0x178] sm:$0xff]  }
 0x354   : > { %6763 = vmatprep.subr.bf16.mxu1 %v7504_v49 }
 0x356   : > { %6748 = vmatmul.mubr.bf16.gmra.mrb[24].mxu1 %v9233_v36 }
 0x357   : > { %6764 = vmatpush3.bf16.msra.mxu1 %v7504_v49  ;;  %6751 = vmatprep.mubr.bf16.mxu1 %v9239_v48  ;;  %v7519_v49 = vld [vmem:[#allocation3 + $0x180] sm:$0xff]  }
 0x358   : > { %6765 = vmatprep.subr.bf16.mxu1 %v7505_v53 }
 0x35b   : > { %6766 = vmatpush3.bf16.msra.mxu1 %v7505_v53  ;;  %v7520_v53 = vld [vmem:[#allocation3 + $0x188] sm:$0xff]  }
 0x35c   : > { %6767 = vmatprep.subr.bf16.mxu1 %v7506_v27 }
 0x35e   : > { %6752 = vmatmul.mubr.bf16.gmra.mrb[28].mxu1 %v9243_v39 }
 0x35f   : > { %6768 = vmatpush3.bf16.msra.mxu1 %v7506_v27  ;;  %6755 = vmatprep.mubr.bf16.mxu1 %v9249_v22  ;;  %v7521_v27 = vld [vmem:[#allocation3 + $0x190] sm:$0xff]  }
 0x360   : > { %6769 = vmatprep.subr.bf16.mxu1 %v7507_v26 }
 0x363   : > { %6770 = vmatpush3.bf16.msra.mxu1 %v7507_v26  ;;  %v7522_v26 = vld [vmem:[#allocation3 + $0x198] sm:$0xff]  }
 0x364   : > { %6771 = vmatprep.subr.bf16.mxu1 %v7509_v14 }
 0x366   : > { %6756 = vmatmul.mubr.bf16.gmra.mrb[32].mxu1 %v9275_v41 }
 0x367   : > { %6772 = vmatpush3.bf16.msra.mxu1 %v7509_v14  ;;  %6775 = vmatprep.mubr.bf16.mxu1 %v9061_v43  ;;  %v7513_v43 = vld [vmem:[#allocation3 + $0x150] sm:$0xff]   ;;  %v7523_v14 = vld [vmem:[#allocation3 + $0x1a0] sm:$0xff]  }
 0x368   : > { %6773 = vmatprep.subr.bf16.mxu1 %v7510_v40 }
 0x36b   : > { %6774 = vmatpush3.bf16.msra.mxu1 %v7510_v40  ;;  %v5933_v40 = vrot.slane %v9269_v24, 9  ;;  %v7526_v24 = vld [vmem:[#allocation3 + $0x1b8] sm:$0xff]  }
 0x36c   : > { %6791 = vmatprep.subr.bf16.mxu1 %v7511_v5 }
 0x36e   : > { %6776 = vmatmul.mubr.bf16.vlgmr.msra.gmra.mrb[20].mxu1 %v9064_v63 }
 0x36f   : > { %6792 = vmatpush3.bf16.msra.mxu1 %v7511_v5  ;;  %6779 = vmatprep.mubr.bf16.mxu1 %v9103_v3 }
 0x370   : > { %6793 = vmatprep.subr.bf16.mxu1 %v7512_v55 }
 0x373   : > { %6794 = vmatpush3.bf16.msra.mxu1 %v7512_v55  ;;  %v4449_v55 = vrot.slane %v3180_v10, 5 }
 0x374   : > { %6795 = vmatprep.subr.bf16.mxu1 %v7513_v43 }
 0x376   : > { %6780 = vmatmul.mubr.bf16.gmra.mrb[24].mxu1 %v9107_v15 }
 0x377   : > { %6796 = vmatpush3.bf16.msra.mxu1 %v7513_v43  ;;  %6783 = vmatprep.mubr.bf16.mxu1 %v9125_v20  ;;  %v7527_v43 = vld [vmem:[#allocation3 + $0x1c0] sm:$0xff]  }
 0x378   : > { %6797 = vmatprep.subr.bf16.mxu1 %v7514_v12 }
 0x37b   : > { %6798 = vmatpush3.bf16.msra.mxu1 %v7514_v12  ;;  %v7534_v12 = vld [vmem:[#allocation3 + $0x1f0] sm:$0xff]  }
 0x37c   : > { %6799 = vmatprep.subr.bf16.mxu1 %v7515_v8 }
 0x37e   : > { %6784 = vmatmul.mubr.bf16.gmra.mrb[28].mxu1 %v9130_v62 }
 0x37f   : > { %6800 = vmatpush3.bf16.msra.mxu1 %v7515_v8  ;;  %6787 = vmatprep.mubr.bf16.mxu1 %v9152_v51 }
 0x380   : > { %6801 = vmatprep.subr.bf16.mxu1 %v7516_v2 }
 0x383   : > { %6802 = vmatpush3.bf16.msra.mxu1 %v7516_v2  ;;  %v3183_v2 = vld [vmem:[#allocation2 + $0x74] sm:$0x1] }
 0x384   : > { %6803 = vmatprep.subr.bf16.mxu1 %v7517_v37  ;;  %v4837_v21 = vshll.u32 %v3183_v2, 16 }
 0x386   : > { %6788 = vmatmul.mubr.bf16.gmra.mrb[32].mxu1 %v9293_v11 }
 0x387   : > { %6804 = vmatpush3.bf16.msra.mxu1 %v7517_v37  ;;  %6807 = vmatprep.mubr.bf16.mxu1 %v9147_v19  ;;  %v4446_v19 = vrot.slane %v9271_v60, 5  ;;  %v7540_v37 = vld [vmem:[#allocation3 + $0x220] sm:$0xff]  }
 0x388   : > { %6805 = vmatprep.subr.bf16.mxu1 %v7518_v29 }
 0x389   : > { %v4448_v5 = vrot.slane %v4446_v19, 4  ;;  %v4447_v33 = vsel %vm8065_vm2, %v5933_v40, %v4446_v19  ;;  %v5029_v40 = vrot.slane %v3183_v2, 5 }
 0x38b   : > { %6806 = vmatpush3.bf16.msra.mxu1 %v7518_v29  ;;  %v4450_v60 = vsel %vm8065_vm2, %v4448_v5, %v4449_v55 }
 0x38c   : > { %6823 = vmatprep.subr.bf16.mxu1 %v7519_v49  ;;  %v9309_v57 = vcombine.low %v4447_v33, %v4450_v60 }
 0x38e   : > { %6808 = vmatmul.mubr.bf16.vlgmr.msra.gmra.mrb[20].mxu1 %v9173_v50 }
 0x38f   : > { %6824 = vmatpush3.bf16.msra.mxu1 %v7519_v49  ;;  %6811 = vmatprep.mubr.bf16.mxu1 %v9187_v28 }
 0x390   : > { %6825 = vmatprep.subr.bf16.mxu1 %v7520_v53 }
 0x393   : > { %6826 = vmatpush3.bf16.msra.mxu1 %v7520_v53  ;;  %v4839_v53 = vrot.slane %v4837_v21, 5  ;;  %v9663_v21 = vld [vmem:[#allocation17_spill] sm:$0xff] }
 0x394   : > { %6827 = vmatprep.subr.bf16.mxu1 %v7521_v27 }
 0x396   : > { %6812 = vmatmul.mubr.bf16.gmra.mrb[24].mxu1 %v9193_v32 }
 0x397   : > { %6828 = vmatpush3.bf16.msra.mxu1 %v7521_v27  ;;  %6815 = vmatprep.mubr.bf16.mxu1 %v9200_v58  ;;  %v7541_v27 = vld [vmem:[#allocation3 + $0x228] sm:$0xff]  }
 0x398   : > { %6829 = vmatprep.subr.bf16.mxu1 %v7522_v26 }
 0x39b   : > { %6830 = vmatpush3.bf16.msra.mxu1 %v7522_v26  ;;  %v7542_v26 = vld [vmem:[#allocation3 + $0x230] sm:$0xff]  }
 0x39c   : > { %6831 = vmatprep.subr.bf16.mxu1 %v7523_v14 }
 0x39e   : > { %6816 = vmatmul.mubr.bf16.gmra.mrb[28].mxu1 %v9209_v7 }
 0x39f   : > { %6832 = vmatpush3.bf16.msra.mxu1 %v7523_v14  ;;  %6819 = vmatprep.mubr.bf16.mxu1 %v9223_v54  ;;  %v7543_v14 = vld [vmem:[#allocation3 + $0x238] sm:$0xff]  }
 0x3a0   : > { %6833 = vmatprep.subr.bf16.mxu1 %v7524_v4 }
 0x3a3   : > { %6834 = vmatpush3.bf16.msra.mxu1 %v7524_v4 }
 0x3a4   : > { %6835 = vmatprep.subr.bf16.mxu1 %v7525_v30 }
 0x3a6   : > { %6820 = vmatmul.mubr.bf16.gmra.mrb[32].mxu1 %v9309_v57 }
 0x3a7   : > { %6836 = vmatpush3.bf16.msra.mxu1 %v7525_v30  ;;  %6839 = vmatprep.mubr.bf16.mxu1 %v9221_v17  ;;  %v7531_v17 = vld [vmem:[#allocation3 + $0x1e0] sm:$0xff]  }
 0x3a8   : > { %6837 = vmatprep.subr.bf16.mxu1 %v7526_v24 }
 0x3ab   : > { %6838 = vmatpush3.bf16.msra.mxu1 %v7526_v24 }
 0x3ac   : > { %6855 = vmatprep.subr.bf16.mxu1 %v7527_v43 }
 0x3ae   : > { %6840 = vmatmul.mubr.bf16.vlgmr.msra.gmra.mrb[20].mxu1 %v9229_v46  ;;  %v9319_v46 = vld [vmem:[#allocation2 + $0x6c] sm:$0xf] }
 0x3af   : > { %6856 = vmatpush3.bf16.msra.mxu1 %v7527_v43  ;;  %6843 = vmatprep.mubr.bf16.mxu1 %v9233_v36  ;;  %v9321_v36 = vld [vmem:[#allocation2 + $0x70] sm:$0xf]  ;;  %v4818_v10 = vshrl.u32 %v9319_v46, 16  ;;  %v4821_v56 = vshll.u32 %v9319_v46, 16 }
 0x3b0   : > { %6857 = vmatprep.subr.bf16.mxu1 %v7528_v38  ;;  %v4827_v52 = vshll.u32 %v9321_v36, 16  ;;  %v4831_v25 = vshrl.u32 %v9321_v36, 16  ;;  %v5026_v16 = vrot.slane %v9321_v36, 5 }
 0x3b1   : > { %v4820_v8 = vrot.slane %v4818_v10, 4  ;;  %v4823_v42 = vrot.slane %v4821_v56, 5 }
 0x3b2   : > { %v4829_v0 = vrot.slane %v4827_v52, 5  ;;  %v4833_v18 = vrot.slane %v4831_v25, 4  ;;  %v9661_v52 = vld [vmem:[#allocation9_spill] sm:$0xff] }
 0x3b3   : > { %6858 = vmatpush3.bf16.msra.mxu1 %v7528_v38 }
 0x3b4   : > { %6859 = vmatprep.subr.bf16.mxu1 %v7529_v1  ;;  %v4834_v6 = vor.u32 %v4833_v18, %v4829_v0 }
 0x3b6   : > { %6844 = vmatmul.mubr.bf16.gmra.mrb[24].mxu1 %v9239_v48  ;;  %v5943_v48 = vcombine.low %v9319_v46, %v9321_v36  ;;  %v4835_v49 = vrot.slane %v4834_v6, 4  ;;  %v5336_v36 = vunpack.c.l.bf16 %v7960_v35  ;;  %v5333_v35 = vunpack.c.l.bf16 %v9661_v52 }
 0x3b7   : > { %6860 = vmatpush3.bf16.msra.mxu1 %v7529_v1  ;;  %6847 = vmatprep.mubr.bf16.mxu1 %v9243_v39  ;;  %v7535_v39 = vld [vmem:[#allocation3 + $0x1f8] sm:$0xff]  }
 0x3b8   : > { %6861 = vmatprep.subr.bf16.mxu1 %v7530_v23 }
 0x3bb   : > { %6862 = vmatpush3.bf16.msra.mxu1 %v7530_v23 }
 0x3bc   : > { %6863 = vmatprep.subr.bf16.mxu1 %v7531_v17 }
 0x3be   : > { %6848 = vmatmul.mubr.bf16.gmra.mrb[28].mxu1 %v9249_v22  ;;  %v7536_v22 = vld [vmem:[#allocation3 + $0x200] sm:$0xff]  }
 0x3bf   : > { %6864 = vmatpush3.bf16.msra.mxu1 %v7531_v17  ;;  %6851 = vmatprep.mubr.bf16.mxu1 %v9275_v41  ;;  %v7537_v41 = vld [vmem:[#allocation3 + $0x208] sm:$0xff]  }
 0x3c0   : > { %6865 = vmatprep.subr.bf16.mxu1 %v7532_v13 }
 0x3c3   : > { %6866 = vmatpush3.bf16.msra.mxu1 %v7532_v13 }
 0x3c4   : > { %6867 = vmatprep.subr.bf16.mxu1 %v7534_v12 }
 0x3c6   : > { %6852 = vmatmul.mubr.bf16.gmra.mrb[32].mxu1 %v5943_v48 }
 0x3c7   : > { %6868 = vmatpush3.bf16.msra.mxu1 %v7534_v12  ;;  %6871 = vmatprep.mubr.bf16.mxu1 %v9064_v63  ;;  %v7538_v63 = vld [vmem:[#allocation3 + $0x210] sm:$0xff]  }
 0x3c8   : > { %6869 = vmatprep.subr.bf16.mxu1 %v7535_v39 }
 0x3cb   : > { %6870 = vmatpush3.bf16.msra.mxu1 %v7535_v39 }
 0x3cc   : > { %6887 = vmatprep.subr.bf16.mxu1 %v7536_v22 }
 0x3ce   : > { %6872 = vmatmul.mubr.bf16.vlgmr.msra.gmra.mrb[20].mxu1 %v9103_v3  ;;  %v7539_v3 = vld [vmem:[#allocation3 + $0x218] sm:$0xff]  }
 0x3cf   : > { %6888 = vmatpush3.bf16.msra.mxu1 %v7536_v22  ;;  %6875 = vmatprep.mubr.bf16.mxu1 %v9107_v15  ;;  %v4824_v15 = vor.u32 %v4823_v42, %v4820_v8  ;;  %v5387_v42 = vrot.slane %v5336_v36, 1 }
 0x3d0   : > { %6889 = vmatprep.subr.bf16.mxu1 %v7537_v41 }
 0x3d1   : > { %v4825_v29 = vrot.slane %v4824_v15, 4 }
 0x3d3   : > { %6890 = vmatpush3.bf16.msra.mxu1 %v7537_v41 }
 0x3d4   : > { %6891 = vmatprep.subr.bf16.mxu1 %v7538_v63 }
 0x3d6   : > { %6876 = vmatmul.mubr.bf16.gmra.mrb[24].mxu1 %v9125_v20  ;;  %v4830_v20 = vsel %vm8178_vm5, %v4825_v29, %v4829_v0 }
 0x3d7   : > { %6892 = vmatpush3.bf16.msra.mxu1 %v7538_v63  ;;  %6879 = vmatprep.mubr.bf16.mxu1 %v9130_v62  ;;  %v4840_v62 = vsel %vm8178_vm5, %v4835_v49, %v4839_v53 }
 0x3d8   : > { %6893 = vmatprep.subr.bf16.mxu1 %v7539_v3  ;;  %v5952_v19 = vcombine.low %v4830_v20, %v4840_v62  ;;  %v5382_v62 = vrot.slane %v5333_v35, 1  ;;  %v9664_v35 = vld [vmem:[#allocation10_spill] sm:$0xff] }
 0x3db   : > { %6894 = vmatpush3.bf16.msra.mxu1 %v7539_v3  ;;  %v9662_v3 = vld [vmem:[#allocation19_spill] sm:$0xff] }
 0x3dc   : > { %6895 = vmatprep.subr.bf16.mxu1 %v7540_v37  ;;  %v5337_v2 = vunpack.c.l.bf16 %v9662_v3 }
 0x3de   : > { %6880 = vmatmul.mubr.bf16.gmra.mrb[28].mxu1 %v9152_v51  ;;  %v5961_v51 = vrot.slane %v9319_v46, 9  ;;  %v5335_v46 = vunpack.c.l.bf16 %v7953_v31  ;;  %v5332_v31 = vunpack.c.l.bf16 %v7918_v9  ;;  %v5334_v9 = vunpack.c.l.bf16 %v9663_v21 }
 0x3df   : > { %6896 = vmatpush3.bf16.msra.mxu1 %v7540_v37  ;;  %6883 = vmatprep.mubr.bf16.mxu1 %v9293_v11  ;;  %v5028_v11 = vrot.slane %v5026_v16, 4 }
 0x3e0   : > { %6897 = vmatprep.subr.bf16.mxu1 %v7541_v27  ;;  %v5386_v8 = vrot.slane %v5335_v46, 1  ;;  %v5381_v29 = vrot.slane %v5332_v31, 1 }
 0x3e2   : > { %v9397_v20 = vsel %vm5380_vm15, %v5386_v8, %v5387_v42  ;;  %v5383_v46 = vsel %vm5380_vm15, %v5381_v29, %v5382_v62 }
 0x3e3   : > { %6898 = vmatpush3.bf16.msra.mxu1 %v7541_v27 }
 0x3e4   : > { %6899 = vmatprep.subr.bf16.mxu1 %v7542_v26 }
 0x3e6   : > { %6884 = vmatmul.mubr.bf16.gmra.mrb[32].mxu1 %v5952_v19 }
 0x3e7   : > { %6900 = vmatpush3.bf16.msra.mxu1 %v7542_v26  ;;  %6903 = vmatprep.mubr.bf16.mxu1 %v9173_v50  ;;  %v5027_v50 = vsel %vm8065_vm2, %v5961_v51, %v5026_v16  ;;  %v5389_v51 = vrot.slane %v5337_v2, 1 }
 0x3e8   : > { %6901 = vmatprep.subr.bf16.mxu1 %v7543_v14 }
 0x3e9   : > { %v5390_v36 = vsel %vm5380_vm15, %v5387_v42, %v5389_v51 }
 0x3eb   : > { %6902 = vmatpush3.bf16.msra.mxu1 %v7543_v14 }
 0x3ee   : > { %6904 = vmatmul.mubr.bf16.vlgmr.msra.gmra.mrb[20].mxu1 %v9187_v28  ;;  %v5030_v28 = vsel %vm8065_vm2, %v5028_v11, %v5029_v40 }
 0x3ef   : > { %6907 = vmatprep.mubr.bf16.mxu1 %v9193_v32  ;;  %v5962_v32 = vcombine.low %v5027_v50, %v5030_v28 }
 0x3f6   : > { %6908 = vmatmul.mubr.bf16.gmra.mrb[24].mxu1 %v9200_v58  ;;  %v9356_v58 = vld [vmem:[%s9568_s4] ss:$0 sm:$0xff] }
 0x3f7   : > { %6911 = vmatprep.mubr.bf16.mxu1 %v9209_v7 }
 0x3fe   : > { %6912 = vmatmul.mubr.bf16.gmra.mrb[28].mxu1 %v9223_v54 }
 0x3ff   : > { %6915 = vmatprep.mubr.bf16.mxu1 %v9309_v57 }
 0x406   : > { %6916 = vmatmul.mubr.bf16.gmra.mrb[32].mxu1 %v5962_v32  ;;  %v5384_v32 = vrot.slane %v5334_v9, 1 }
 0x4c1   : > { %v6905_v7 = vpop.f32.mrb[20].mxu1 }
 0x4c2   : > { %v9359_v5 = vadd.f32 %v6905_v7, %v9356_v58  ;;  %v5134_v54 = vpop.f32.mrb[21].mxu1 }
 0x4c3   : > { %v9362_v55 = vadd.f32 %v9356_v58, %v5134_v54  ;;  %v6906_v4 = vpop.f32.mrb[22].mxu1 }
 0x4c4   : > { %v5238_v33 = vsub.f32 0.0, %v9359_v5  ;;  %v9366_v47 = vadd.f32 %v6906_v4, %v9356_v58  ;;  %v5137_v60 = vpop.f32.mrb[23].mxu1 }
 0x4c5   : > { %v5236_v30 = vsub.f32 0.0, %v9362_v55  ;;  %v9370_v57 = vadd.f32 %v9356_v58, %v5137_v60 }
 0x4c6   : > { %v5256_v24 = vmul.f32 1.442695, %v5238_v33  ;;  %v5239_v43 = vsub.f32 0.0, %v9366_v47 }
 0x4c7   : > { %v5252_v38 = vmul.f32 1.442695, %v5236_v30  ;;  %v5237_v1 = vsub.f32 0.0, %v9370_v57 }
 0x4c8   : > { %7544 = vpow2.f32 %v5256_v24  ;;  %v5258_v23 = vmul.f32 1.442695, %v5239_v43 }
 0x4c9   : > { %7546 = vpow2.f32 %v5252_v38  ;;  %v5254_v17 = vmul.f32 1.442695, %v5237_v1  ;;  %v6909_v13 = vpop.f32.mrb[24].mxu1 }
 0x4ca   : > { %7548 = vpow2.f32 %v5258_v23  ;;  %v9377_v12 = vadd.f32 %v6909_v13, %v9356_v58  ;;  %v5150_v48 = vpop.f32.mrb[25].mxu1  ;;  %v5341_v23 = vunpack.c.l.bf16 %v7975_v44  ;;  %v5338_v44 = vunpack.c.l.bf16 %v9664_v35 }
 0x4cb   : > { %7550 = vpow2.f32 %v5254_v17  ;;  %v9380_v39 = vadd.f32 %v9356_v58, %v5150_v48  ;;  %v6910_v22 = vpop.f32.mrb[26].mxu1 }
 0x4cc   : > { %v5242_v41 = vsub.f32 0.0, %v9377_v12  ;;  %v9384_v10 = vadd.f32 %v6910_v22, %v9356_v58  ;;  %v5153_v56 = vpop.f32.mrb[27].mxu1  ;;  %v9419_v22 = vsel %vm5380_vm15, %v5382_v62, %v5384_v32  ;;  %v5396_v2 = vrot.slane %v5341_v23, 1 }
 0x4cd   : > { %v5240_v25 = vsub.f32 0.0, %v9380_v39  ;;  %v9390_v63 = vadd.f32 %v9356_v58, %v5153_v56 }
 0x4ce   : > { %v5264_v0 = vmul.f32 1.442695, %v5242_v41  ;;  %v5243_v18 = vsub.f32 0.0, %v9384_v10  ;;  %v5342_v41 = vunpack.c.l.bf16 %v7978_v45 }
 0x4cf   : > { %v5260_v15 = vmul.f32 1.442695, %v5240_v25  ;;  %v5241_v6 = vsub.f32 0.0, %v9390_v63  ;;  %v9665_v25 = vld [vmem:[#allocation11_spill] sm:$0xff] }
 0x4d0   : > { %7552 = vpow2.f32 %v5264_v0  ;;  %v5266_v37 = vmul.f32 1.442695, %v5243_v18  ;;  %v5339_v8 = vunpack.c.l.bf16 %v9665_v25 }
 0x4d1   : > { %7554 = vpow2.f32 %v5260_v15  ;;  %v5262_v49 = vmul.f32 1.442695, %v5241_v6  ;;  %v6913_v53 = vpop.f32.mrb[28].mxu1 }
 0x4d2   : > { %v7545_v27 = vpop.eup %7544  ;;  %7556 = vpow2.f32 %v5266_v37  ;;  %v9400_v26 = vadd.f32 %v6913_v53, %v9356_v58  ;;  %v5166_v19 = vpop.f32.mrb[29].mxu1 }
 0x4d3   : > { %v7547_v14 = vpop.eup %7546  ;;  %v5286_v16 = vadd.f32 1.0, %v7545_v27  ;;  %7558 = vpow2.f32 %v5262_v49  ;;  %v9403_v11 = vadd.f32 %v9356_v58, %v5166_v19  ;;  %v6914_v40 = vpop.f32.mrb[30].mxu1 }
 0x4d4   : > { %v7549_v50 = vpop.eup %7548  ;;  %v5284_v28 = vadd.f32 1.0, %v7547_v14  ;;  %v5246_v7 = vsub.f32 0.0, %v9400_v26  ;;  %v9407_v54 = vadd.f32 %v6914_v40, %v9356_v58  ;;  %v5169_v4 = vpop.f32.mrb[31].mxu1  ;;  %v5397_v40 = vrot.slane %v5342_v41, 1 }
 0x4d5   : > { %v7551_v33 = vpop.eup %7550  ;;  %7560 = vrcp.f32 %v5286_v16  ;;  %v5287_v60 = vadd.f32 1.0, %v7549_v50  ;;  %v5244_v30 = vsub.f32 0.0, %v9403_v11  ;;  %v9411_v24 = vadd.f32 %v9356_v58, %v5169_v4 }
 0x4d6   : > { %7562 = vrcp.f32 %v5284_v28  ;;  %v5285_v43 = vadd.f32 1.0, %v7551_v33  ;;  %v5272_v38 = vmul.f32 1.442695, %v5246_v7  ;;  %v5247_v1 = vsub.f32 0.0, %v9407_v54 }
 0x4d7   : > { %7564 = vrcp.f32 %v5287_v60  ;;  %v5268_v17 = vmul.f32 1.442695, %v5244_v30  ;;  %v5245_v13 = vsub.f32 0.0, %v9411_v24  ;;  %v5343_v4 = vunpack.c.l.bf16 %v8124_v34  ;;  %v9666_v30 = vld [vmem:[#allocation20_spill] sm:$0xff] }
 0x4d8   : > { %7566 = vrcp.f32 %v5285_v43  ;;  %v5274_v48 = vmul.f32 1.442695, %v5247_v1  ;;  %v5340_v43 = vunpack.c.l.bf16 %v9666_v30  ;;  %v5392_v41 = vrot.slane %v5339_v8, 1 }
 0x4d9   : > { %7568 = vpow2.f32 %v5272_v38  ;;  %v5270_v56 = vmul.f32 1.442695, %v5245_v13  ;;  %v6917_v31 = vpop.f32.mrb[32].mxu1  ;;  %v5391_v13 = vrot.slane %v5338_v44, 1 }
 0x4da   : > { %v7553_v52 = vpop.eup %7552  ;;  %7570 = vpow2.f32 %v5268_v17  ;;  %v9425_v0 = vadd.f32 %v6917_v31, %v9356_v58  ;;  %v5182_v42 = vpop.f32.mrb[33].mxu1  ;;  %v5394_v35 = vrot.slane %v5340_v43, 1 }
 0x4db   : > { %v7555_v18 = vpop.eup %7554  ;;  %v5290_v3 = vadd.f32 1.0, %v7553_v52  ;;  %7572 = vpow2.f32 %v5274_v48  ;;  %v9428_v15 = vadd.f32 %v9356_v58, %v5182_v42  ;;  %v6918_v45 = vpop.f32.mrb[34].mxu1 }
 0x4dc   : > { %v7557_v6 = vpop.eup %7556  ;;  %v5288_v21 = vadd.f32 1.0, %v7555_v18  ;;  %7574 = vpow2.f32 %v5270_v56  ;;  %v5250_v9 = vsub.f32 0.0, %v9425_v0  ;;  %v9432_v37 = vadd.f32 %v6918_v45, %v9356_v58  ;;  %v5185_v29 = vpop.f32.mrb[35].mxu1 }
 0x4dd   : > { %v7559_v49 = vpop.eup %7558  ;;  %7576 = vrcp.f32 %v5290_v3  ;;  %v5291_v53 = vadd.f32 1.0, %v7557_v6  ;;  %v5248_v27 = vsub.f32 0.0, %v9428_v15  ;;  %v9436_v62 = vadd.f32 %v9356_v58, %v5185_v29  ;;  %v9667_v6 = vld [vmem:[#allocation12_spill] sm:$0xff] }
 0x4de   : > { %7578 = vrcp.f32 %v5288_v21  ;;  %v5289_v19 = vadd.f32 1.0, %v7559_v49  ;;  %v5280_v14 = vmul.f32 1.442695, %v5250_v9  ;;  %v5251_v16 = vsub.f32 0.0, %v9432_v37  ;;  %v9668_v9 = vld [vmem:[#allocation13_spill] sm:$0xff] }
 0x4df   : > { %v7561_v51 = vpop.eup %7560  ;;  %7580 = vrcp.f32 %v5291_v53  ;;  %v5276_v50 = vmul.f32 1.442695, %v5248_v27  ;;  %v5249_v28 = vsub.f32 0.0, %v9436_v62  ;;  %v5348_v18 = vunpack.c.l.bf16 %v8015_v61 }
 0x4e0   : > { %v7563_v32 = vpop.eup %7562  ;;  %v5318_v7 = vmul.f32 %v7561_v51, %v9359_v5  ;;  %7582 = vrcp.f32 %v5289_v19  ;;  %v5282_v33 = vmul.f32 1.442695, %v5251_v16  ;;  %v5344_v21 = vunpack.c.l.bf16 %v9667_v6 }
 0x4e1   : > { %v7565_v58 = vpop.eup %7564  ;;  %v5316_v60 = vmul.f32 %v7563_v32, %v9362_v55  ;;  %7584 = vpow2.f32 %v5280_v14  ;;  %v5278_v38 = vmul.f32 1.442695, %v5249_v28  ;;  %v5345_v29 = vunpack.c.l.bf16 %v9668_v9  ;;  %v9669_v14 = vld [vmem:[#allocation22_spill] sm:$0xff] }
 0x4e2   : > { %v7567_v1 = vpop.eup %7566  ;;  %v5439_v23 = vadd.f32 %v9397_v20, %v5318_v7  ;;  %v5319_v17 = vmul.f32 %v7565_v58, %v9366_v47  ;;  %7586 = vpow2.f32 %v5276_v50  ;;  %v5399_v47 = vrot.slane %v5343_v4, 1 }
 0x4e3   : > { %v7569_v5 = vpop.eup %7568  ;;  %v5437_v34 = vadd.f32 %v5383_v46, %v5316_v60  ;;  %v5317_v48 = vmul.f32 %v7567_v1, %v9370_v57  ;;  %7588 = vpow2.f32 %v5282_v33  ;;  %v5398_v46 = vsel %vm5380_vm15, %v5396_v2, %v5397_v40 }
 0x4e4   : > { %v7571_v55 = vpop.eup %7570  ;;  %5455 = vst [vmem:[%s8974_s15 + $0x10] sm:$0xff] %v5439_v23  ;;  %v5440_v56 = vadd.f32 %v5390_v36, %v5319_v17  ;;  %v5294_v31 = vadd.f32 1.0, %v7569_v5  ;;  %7590 = vpow2.f32 %v5278_v38  ;;  %v5347_v57 = vunpack.c.l.bf16 %v8008_v59 }
 0x4e5   : > { %v7573_v52 = vpop.eup %7572  ;;  %5453 = vst [vmem:[%s8974_s15] sm:$0xff] %v5437_v34  ;;  %v5438_v20 = vadd.f32 %v9419_v22, %v5317_v48  ;;  %v5292_v44 = vadd.f32 1.0, %v7571_v55  ;;  %v5393_v36 = vsel %vm5380_vm15, %v5391_v13, %v5392_v41  ;;  %v5400_v49 = vsel %vm5380_vm15, %v5397_v40, %v5399_v47  ;;  %v9671_v48 = vld [vmem:[#allocation16_spill] sm:$0xff]  ;;  %v9672_v55 = vld [vmem:[#allocation18_spill] sm:$0xff] }
 0x4e6   : > { %v7575_v25 = vpop.eup %7574  ;;  %5456 = vst [vmem:[%s8974_s15 + $0x18] sm:$0xff] %v5440_v56  ;;  %7592 = vrcp.f32 %v5294_v31  ;;  %v5295_v8 = vadd.f32 1.0, %v7573_v52  ;;  %v5395_v53 = vsel %vm5380_vm15, %v5392_v41, %v5394_v35  ;;  %v5349_v16 = vunpack.c.l.bf16 %v9669_v14  ;;  %v9674_v35 = vld [vmem:[#allocation15_spill] sm:$0xff] }
 0x4e7   : > { %v7577_v42 = vpop.eup %7576  ;;  %5454 = vst [vmem:[%s8974_s15 + $0x8] sm:$0xff] %v5438_v20  ;;  %7594 = vrcp.f32 %v5292_v44  ;;  %v5293_v3 = vadd.f32 1.0, %v7575_v25  ;;  %v5407_v32 = vrot.slane %v5348_v18, 1  ;;  %v5401_v33 = vrot.slane %v5344_v21, 1  ;;  %v9673_v20 = vld [vmem:[#allocation14_spill] sm:$0xff] }
 0x4e8   : > { %v7579_v22 = vpop.eup %7578  ;;  %v5322_v45 = vmul.f32 %v7577_v42, %v9377_v12  ;;  %7596 = vrcp.f32 %v5295_v8  ;;  %v5406_v12 = vrot.slane %v5347_v57, 1  ;;  %v5402_v58 = vrot.slane %v5345_v29, 1  ;;  %v9675_v8 = vld [vmem:[#allocation24_spill] sm:$0xff] }
 0x4e9   : > { %v7581_v2 = vpop.eup %7580  ;;  %v5320_v59 = vmul.f32 %v7579_v22, %v9380_v39  ;;  %7598 = vrcp.f32 %v5293_v3  ;;  %v9670_v39 = vld [vmem:[#allocation21_spill] sm:$0xff]  ;;  %v5409_v1 = vrot.slane %v5349_v16, 1  ;;  %v5353_v41 = vunpack.c.l.bf16 %v9671_v48  ;;  %v9676_v22 = vld [vmem:[#allocation23_spill] sm:$0xff] }
 0x4ea   : > { %v7583_v61 = vpop.eup %7582  ;;  %v5443_v27 = vadd.f32 %v5398_v46, %v5322_v45  ;;  %v5323_v19 = vmul.f32 %v7581_v2, %v9384_v10  ;;  %v5346_v7 = vunpack.c.l.bf16 %v9670_v39  ;;  %v5403_v34 = vsel %vm5380_vm15, %v5401_v33, %v5402_v58 }
 0x4eb   : > { %v7585_v51 = vpop.eup %7584  ;;  %v5441_v50 = vadd.f32 %v5393_v36, %v5320_v59  ;;  %v5321_v28 = vmul.f32 %v7583_v61, %v9390_v63  ;;  %v5408_v63 = vsel %vm5380_vm15, %v5406_v12, %v5407_v32  ;;  %v5354_v56 = vunpack.c.l.bf16 %v9672_v55 }
 0x4ec   : > { %v7587_v40 = vpop.eup %7586  ;;  %5459 = vst [vmem:[%s8974_s15 + $0x30] sm:$0xff] %v5443_v27  ;;  %v5444_v4 = vadd.f32 %v5400_v49, %v5323_v19  ;;  %v5298_v60 = vadd.f32 1.0, %v7585_v51  ;;  %v5404_v17 = vrot.slane %v5346_v7, 1  ;;  %v5350_v47 = vunpack.c.l.bf16 %v9673_v20 }
 0x4ed   : > { %v7589_v30 = vpop.eup %7588  ;;  %5457 = vst [vmem:[%s8974_s15 + $0x20] sm:$0xff] %v5441_v50  ;;  %v5442_v10 = vadd.f32 %v5395_v53, %v5321_v28  ;;  %v5296_v43 = vadd.f32 1.0, %v7587_v40  ;;  %v5351_v44 = vunpack.c.l.bf16 %v9674_v35  ;;  %v5410_v57 = vsel %vm5380_vm15, %v5407_v32, %v5409_v1 }
 0x4ee   : > { %v7591_v38 = vpop.eup %7590  ;;  %5460 = vst [vmem:[%s8974_s15 + $0x38] sm:$0xff] %v5444_v4  ;;  %7600 = vrcp.f32 %v5298_v60  ;;  %v5299_v23 = vadd.f32 1.0, %v7589_v30  ;;  %v5355_v42 = vunpack.c.l.bf16 %v9675_v8  ;;  %v5405_v3 = vsel %vm5380_vm15, %v5402_v58, %v5404_v17 }
 0x4ef   : > { %5458 = vst [vmem:[%s8974_s15 + $0x28] sm:$0xff] %v5442_v10  ;;  %7602 = vrcp.f32 %v5296_v43  ;;  %v5297_v13 = vadd.f32 1.0, %v7591_v38  ;;  %v5352_v45 = vunpack.c.l.bf16 %v9676_v22  ;;  %v5416_v9 = vrot.slane %v5353_v41, 1 }
 0x4f0   : > { %v7593_v5 = vpop.eup %7592  ;;  %7604 = vrcp.f32 %v5299_v23  ;;  %v5411_v2 = vrot.slane %v5350_v47, 1  ;;  %v5412_v59 = vrot.slane %v5351_v44, 1  ;;  %v5419_v49 = vrot.slane %v5355_v42, 1 }
 0x4f1   : > { %v7595_v31 = vpop.eup %7594  ;;  %v5326_v52 = vmul.f32 %v7593_v5, %v9400_v26  ;;  %7606 = vrcp.f32 %v5297_v13  ;;  %v5414_v53 = vrot.slane %v5352_v45, 1 }
 0x4f2   : > { %v7597_v25 = vpop.eup %7596  ;;  %v5324_v46 = vmul.f32 %v7595_v31, %v9403_v11  ;;  %v5417_v11 = vrot.slane %v5354_v56, 1  ;;  %v5413_v12 = vsel %vm5380_vm15, %v5411_v2, %v5412_v59 }
 0x4f3   : > { %v7599_v36 = vpop.eup %7598  ;;  %v5447_v18 = vadd.f32 %v5408_v63, %v5326_v52  ;;  %v5327_v26 = vmul.f32 %v7597_v25, %v9407_v54 }
 0x4f4   : > { %v5445_v6 = vadd.f32 %v5403_v34, %v5324_v46  ;;  %v5325_v21 = vmul.f32 %v7599_v36, %v9411_v24  ;;  %v5418_v24 = vsel %vm5380_vm15, %v5416_v9, %v5417_v11  ;;  %v5420_v51 = vsel %vm5380_vm15, %v5417_v11, %v5419_v49 }
 0x4f5   : > { %5463 = vst [vmem:[%s8974_s15 + $0x50] sm:$0xff] %v5447_v18  ;;  %v5448_v29 = vadd.f32 %v5410_v57, %v5327_v26 }
 0x4f6   : > { %5461 = vst [vmem:[%s8974_s15 + $0x40] sm:$0xff] %v5445_v6  ;;  %v5446_v54 = vadd.f32 %v5405_v3, %v5325_v21 }
 0x4f7   : > { %5464 = vst [vmem:[%s8974_s15 + $0x58] sm:$0xff] %v5448_v29 }
 0x4f8   : > { %v7601_v61 = vpop.eup %7600  ;;  %5462 = vst [vmem:[%s8974_s15 + $0x48] sm:$0xff] %v5446_v54 }
 0x4f9   : > { %v7603_v27 = vpop.eup %7602  ;;  %v5330_v19 = vmul.f32 %v7601_v61, %v9425_v0  ;;  %v5415_v0 = vsel %vm5380_vm15, %v5412_v59, %v5414_v53 }
 0x4fa   : > { %v7605_v14 = vpop.eup %7604  ;;  %v5328_v16 = vmul.f32 %v7603_v27, %v9428_v15 }
 0x4fb   : > { %v7607_v50 = vpop.eup %7606  ;;  %v5451_v28 = vadd.f32 %v5418_v24, %v5330_v19  ;;  %v5331_v32 = vmul.f32 %v7605_v14, %v9432_v37 }
 0x4fc   : > { %v5449_v39 = vadd.f32 %v5413_v12, %v5328_v16  ;;  %v5329_v7 = vmul.f32 %v7607_v50, %v9436_v62 }
 0x4fd   : > { %5467 = vst [vmem:[%s8974_s15 + $0x70] sm:$0xff] %v5451_v28  ;;  %v5452_v40 = vadd.f32 %v5420_v51, %v5331_v32 }
 0x4fe   : > { %5465 = vst [vmem:[%s8974_s15 + $0x60] sm:$0xff] %v5449_v39  ;;  %v5450_v15 = vadd.f32 %v5415_v0, %v5329_v7 }
 0x4ff   : > { %5468 = vst [vmem:[%s8974_s15 + $0x78] sm:$0xff] %v5452_v40 }
 0x500   : > { %5466 = vst [vmem:[%s8974_s15 + $0x68] sm:$0xff] %v5450_v15 }
 0x501   : > { %7649 = shalt.err (!%p7646_p11)
}
 0x502   : > { %s7650_s11 = scalar_lea.hbm %s9503_s26, 2048  ;;  %s7654_s6 = scalar_lea.hbm %s9569_s5, 8192 }
 0x503   : > { %p7651_p13 = scmp.ne.s32.totalorder %s9503_s26, %s7650_s11  ;;  %p7655_p3 = scmp.lt.u32.totalorder %s9503_s26, %s9569_s5 }
 0x504   : > { %p7656_p8 = scmp.lt.u32.totalorder %s7654_s6, %s7650_s11  ;;  %p7658_p12 = scmp.lt.u32.totalorder %s7650_s11, %s9503_s26 }
 0x505   : > { %p7652_p1 = pnand %p7651_p13, %p9677_p0 }
 0x506   : > { %p7657_p10 = por %p7656_p8, %p7655_p3 }
 0x507   : > { %p7653_p4 = pneg %p7652_p1 }
 0x508   : > { %p7659_p2 = por %p7658_p12, %p7657_p10 }
 0x50a   : > { %p7660_p5 = pnand %p7659_p2, %p7653_p4 }
 0x50c   : > { %7663 = shalt.err (!%p7660_p5)
}
 0x50d   : > { %s7742_s16 = smov 128   ;;  %s7743_s30 = smov 8  }
 0x50e   : > { %7212 = dma.vmem_to_hbm [thread:$0]  (%p9677_p0), %s9505_s22, 2048, %s9503_s26, %s9512_s10, %s7742_s16, %s7742_s16, %s7743_s30  }
 0x50f PF: > { %p7224_p6 = scmp.ge.s32.totalorder %s7734_s25, 2  ;;  %s5501_s12 = sand.u32 1, %s7706_s18  }
 0x510   : > { %p9678_p7 = scmp.ne.s32.totalorder %s9592_s8, 0  ;;  %s5502_s14 = scalar_lea.sflag [#allocation5], %s5501_s12 }
 0x512   : > { %p7219_p9 = pnand %p7224_p6, %p9678_p7 }
 0x514   : > { %7701 = dma.done.wait (!%p7219_p9), %s5502_s14, 2048  }
 0x515   : > { %7703 = vsyncadd (!%p7219_p9), %s5502_s14, 4294965248  ;;  %s19_s25 = sadd.s32 1, %s7734_s25   ;;  %s9679_s18 = smov %s7710_s19 }
 0x516   : > { %p16_p11 = scmp.ge.s32.totalorder %s19_s25, 6   ;;  %s9680_s19 = smov %s7714_s20 }
 0x517   : > { %s9681_s20 = smov %s7853_s13  ;;  %s9682_s21 = smov %s7726_s23 }
 0x518   : > { %s9683_s22 = smov %s7730_s24  ;;  %s9684_s23 = smov %s9687_s28 }
 0x519   : > { %s9685_s24 = smov %s9691_s29  ;;  %18 = sbr.rel (!%p16_p11) target bundleno = 6 (0x6), region = 106 }
 0x520   :  { %5507 = vsyncpa [#allocation4], 1 }
 0x521   :  { %5509 = vsyncpa [#allocation4 + $0x1], 1 }
 0x522   :  { %5510 = vsyncpa [#allocation5], 1 }
 0x523   :  { %5512 = vsyncpa [#allocation5 + $0x1], 1 }

</bundles_post_ra>
